<compile_context>
chip_gen: v6e
topology: v6e:2x2x1
jax: 0.10.0
libtpu: 0.0.40
codegen_flags: <defaults>
</compile_context>

<pallas_src>
import jax
import jax.numpy as jnp
from jax import lax
from jax.experimental import pallas as pl
from jax.experimental.pallas import tpu as pltpu


def _round_up(x, m):
    return -(-x // m) * m


def _vmem_capacity_bytes():
    """Per-core VMEM capacity; conservative 64 MiB (v7x-sized) fallback."""
    try:
        return int(pltpu.get_tpu_info().vmem_capacity_bytes)
    except Exception:
        return 64 * 1024 * 1024


def _vmem_estimate(tq, hw, dim, attn_dim, head, head_dim, shared):
    """Rough per-grid-step VMEM footprint (bytes): double-buffered blocks,
    persistent lane-padded K/V scratch and the dominant f32 transients."""
    bf, f4 = 2, 4
    pdim = _round_up(dim, 128)
    pad = _round_up(attn_dim, 128)
    phd = _round_up(head_dim, 128)
    est = 0
    est += 2 * hw * pdim * bf                                  # full-context block
    if not shared:
        est += 2 * tq * pdim * bf                              # query-tile block
    est += 2 * tq * pdim * f4                                  # f32 output block
    est += 2 * head * hw * phd * bf                            # persistent K + V scratch
    est += 2 * (pdim * pad + pdim * 2 * pad + head * phd * pdim) * bf   # weights
    est += 3 * tq * hw * f4                                    # score/exp/cast transients
    est += hw * 2 * pad * (f4 + bf)                            # one-off fused KV projection
    return est


def _choose_q_tile(hw, budget_bytes, dim, attn_dim, head, head_dim, shared, cap=512):
    """Largest multiple-of-16 divisor of hw (<= cap) whose footprint fits budget."""
    cands = [t for t in range(16, min(hw, cap) + 1, 16) if hw % t == 0]
    if hw <= cap:
        cands.append(hw)
    cands = sorted(set(cands), reverse=True)
    if not cands:
        # TODO(synk): flash-style KV tiling (online softmax) for awkward hw with
        # no small divisor; today we fall back to an un-tiled query axis.
        cands = [hw]
    for t in cands:
        if _vmem_estimate(t, hw, dim, attn_dim, head, head_dim, shared) <= budget_bytes:
            return t
    return cands[-1]


def _attention_kernel(head, head_dim, attn_dim, tq, shared):
    """Kernel body closed over static head config / tile size / input aliasing."""

    def kernel(*refs):
        if shared:
            x_ref, wq_ref, wkv_ref, wo_ref, o_ref, k_sc, v_sc = refs
            xc_ref = x_ref
        else:
            xq_ref, xc_ref, wq_ref, wkv_ref, wo_ref, o_ref, k_sc, v_sc = refs

        qi = pl.program_id(1)

        # ---- K/V: one fused (hw, dim) @ (dim, 2*attn_dim) MXU matmul per batch,
        # written head-major into persistent VMEM scratch (qi axis "arbitrary").
        @pl.when(qi == 0)
        def _():
            x_c = xc_ref[0]                                        # (hw, dim) bf16
            kv = jnp.dot(x_c, wkv_ref[...],
                         preferred_element_type=jnp.float32)       # (hw, 2*attn_dim)
            kv = kv.astype(jnp.bfloat16)
            for h in range(head):                                  # once per batch only
                lo = h * head_dim
                k_sc[h] = kv[:, lo:lo + head_dim]
                v_sc[h] = kv[:, attn_dim + lo:attn_dim + lo + head_dim]

        # ---- Q projection for this query-row tile (softmax scale pre-folded into Wq).
        if shared:
            row0 = pl.multiple_of(qi * tq, tq)
            x_q = x_ref[0, pl.ds(row0, tq), :]                     # (tq, dim) bf16
        else:
            x_q = xq_ref[0]                                        # (tq, dim) bf16
        q = jnp.dot(x_q, wq_ref[...],
                    preferred_element_type=jnp.float32).astype(jnp.bfloat16)

        # ---- Per-head attention (statically unrolled) with per-head output
        # projection accumulated into a single (tq, dim) f32 accumulator.
        out = jnp.zeros(o_ref.shape[1:], dtype=jnp.float32)        # (tq, dim)
        for h in range(head):
            lo = h * head_dim
            qh = q[:, lo:lo + head_dim]                            # (tq, hd) tiny slice
            kh = k_sc[h]                                           # (hw, hd) leading index
            vh = v_sc[h]

            # score[i, j] = <q_i, k_j>  (scale folded into Wq; contraction on the
            # last axes, no explicit transpose of k before the MXU).
            s = lax.dot_general(
                qh, kh, dimension_numbers=(((1,), (1,)), ((), ())),
                preferred_element_type=jnp.float32)                # (tq, hw)

            # Numerically stable softmax numerator in f32 (exp on the EUP).
            s = s - jnp.max(s, axis=-1, keepdims=True)
            p = jnp.exp(s)
            inv = pl.reciprocal(jnp.sum(p, axis=-1, keepdims=True), approx=True)

            # Unnormalized PV matmul, then normalize the small (tq, hd) context.
            ctx = jnp.dot(p.astype(jnp.bfloat16), vh,
                          preferred_element_type=jnp.float32)      # (tq, hd)
            ctx = (ctx * inv).astype(jnp.bfloat16)

            out = out + jnp.dot(ctx, wo_ref[h],
                                preferred_element_type=jnp.float32)  # (tq, dim)

        o_ref[0] = out.astype(o_ref.dtype)

    return kernel


def attention_forward(query, context, wq, wk, wv, wout, head):
    """Pallas implementation of Attention.forward.

    query, context : (b, dim, h, w) float32, NCHW (same as the PyTorch module)
    wq, wk, wv     : (attn_dim, dim) squeezed 1x1-conv weights
    wout           : (dim, attn_dim) squeezed 1x1-conv weight
    returns        : (b, dim, h, w) float32
    """
    b, dim, h, w = query.shape
    attn_dim = wq.shape[0]
    assert attn_dim % head == 0
    head_dim = attn_dim // head
    hw = h * w
    scale = float(dim) ** (-0.5)        # matches the PyTorch module (dim ** -0.5)

    # NOTE: identity check — inside a larger jitted program the same logical
    # tensor may arrive as distinct tracers; that only disables the shared
    # single-stream fast path, never correctness.
    shared = context is query           # how the UNet Block calls it: attn(x, x)

    vmem_cap = _vmem_capacity_bytes()
    budget = min(int(vmem_cap * 0.55), 48 << 20)
    tq = _choose_q_tile(hw, budget, dim, attn_dim, head, head_dim, shared, cap=512)
    n_q = hw // tq
    est = _vmem_estimate(tq, hw, dim, attn_dim, head, head_dim, shared)
    vmem_limit = int(max(24 << 20,
                         min(vmem_cap - (8 << 20), max(32 << 20, (est * 5) // 4))))

    # NCHW -> channels-last bf16 activations (cast fused into the transpose pass).
    # TODO(synk): keep UNet activations channels-last (and bf16) end-to-end so
    # these full-HBM layout passes disappear at the network level.
    xq = jnp.transpose(query, (0, 2, 3, 1)).reshape(b, hw, dim).astype(jnp.bfloat16)
    xc = xq if shared else jnp.transpose(
        context, (0, 2, 3, 1)).reshape(b, hw, dim).astype(jnp.bfloat16)

    # 1x1-conv weights for channels-last matmuls: softmax scale folded into Wq,
    # K/V fused into one (dim, 2*attn_dim) weight, Wout stored head-major.
    wq_t = (wq.T * scale).astype(jnp.bfloat16)                          # (dim, attn_dim)
    wkv_t = jnp.concatenate([wk.T, wv.T], axis=1).astype(jnp.bfloat16)  # (dim, 2*attn_dim)
    wo_h = wout.T.reshape(head, head_dim, dim).astype(jnp.bfloat16)     # (head, hd, dim)

    x_full_spec = pl.BlockSpec((1, hw, dim), lambda bi, qi: (bi, 0, 0))
    xq_spec = pl.BlockSpec((1, tq, dim), lambda bi, qi: (bi, qi, 0))
    wq_spec = pl.BlockSpec((dim, attn_dim), lambda bi, qi: (0, 0))
    wkv_spec = pl.BlockSpec((dim, 2 * attn_dim), lambda bi, qi: (0, 0))
    wo_spec = pl.BlockSpec((head, head_dim, dim), lambda bi, qi: (0, 0, 0))
    out_spec = pl.BlockSpec((1, tq, dim), lambda bi, qi: (bi, qi, 0))

    if shared:
        in_specs = [x_full_spec, wq_spec, wkv_spec, wo_spec]
        args = (xq, wq_t, wkv_t, wo_h)
    else:
        in_specs = [xq_spec, x_full_spec, wq_spec, wkv_spec, wo_spec]
        args = (xq, xc, wq_t, wkv_t, wo_h)

    flops = b * (2 * hw * dim * 3 * attn_dim       # Q + fused KV projections (once/batch)
                 + 4 * hw * hw * attn_dim          # scores + PV
                 + 2 * hw * attn_dim * dim)        # output projection
    transcendentals = b * head * hw * hw           # exp over scores
    act_streams = 1 if shared else 2
    bytes_accessed = (b * hw * dim * 2 * act_streams   # bf16 activations in
                      + b * hw * dim * 4               # f32 output
                      + (3 * dim * attn_dim + attn_dim * dim) * 2)  # bf16 weights

    out_nlc = pl.pallas_call(
        _attention_kernel(head, head_dim, attn_dim, tq, shared),
        out_shape=jax.ShapeDtypeStruct((b, hw, dim), jnp.float32),
        grid_spec=pltpu.PrefetchScalarGridSpec(
            num_scalar_prefetch=0,
            grid=(b, n_q),
            in_specs=in_specs,
            out_specs=out_spec,
            scratch_shapes=[
                pltpu.VMEM((head, hw, head_dim), jnp.bfloat16),   # persistent K
                pltpu.VMEM((head, hw, head_dim), jnp.bfloat16),   # persistent V
            ],
        ),
        # bi is "parallel" (megacore shards batches); qi must be "arbitrary" so
        # the K/V scratch legally carries across q-row tiles of one batch.
        # TODO(synk): add a parallel head/tile grid axis so b == 1 still uses
        # both v7x TensorCores.
        compiler_params=pltpu.CompilerParams(
            dimension_semantics=("parallel", "arbitrary"),
            vmem_limit_bytes=vmem_limit),
        cost_estimate=pl.CostEstimate(flops=int(flops),
                                      transcendentals=int(transcendentals),
                                      bytes_accessed=int(bytes_accessed)),
    )(*args)

    # (b, hw, dim) -> NCHW
    return jnp.transpose(out_nlc.reshape(b, h, w, dim), (0, 3, 1, 2))


def attention_reference(query, context, wq, wk, wv, wout, head):
    """Pure-JAX f32 reference mirroring the PyTorch Attention.forward."""
    b, dim, h, w = query.shape
    attn_dim = wq.shape[0]
    head_dim = attn_dim // head
    scale = float(dim) ** (-0.5)

    def conv1x1(x, wgt):  # x: (b, cin, h, w), wgt: (cout, cin)
        return jnp.einsum("oc,bchw->bohw", wgt, x)

    q = conv1x1(query, wq).reshape(b, head, head_dim, h * w)
    k = conv1x1(context, wk).reshape(b, head, head_dim, h * w)
    v = conv1x1(context, wv).reshape(b, head, head_dim, h * w)
    score = jnp.einsum("bhdi,bhdj->bhij", q, k) * scale
    attn = jax.nn.softmax(score, axis=-1)
    out = jnp.einsum("bhij,bhdj->bhdi", attn, v).reshape(b, attn_dim, h, w)
    return conv1x1(out, wout)


if __name__ == "__main__":
    # Small shapes consistent with the module: attn_dim = dim // 2, divisible by head.
    batch, dim, hgt, wdt = 2, 32, 16, 16
    head = 2
    attn_dim = dim // 2

    key = jax.random.PRNGKey(0)
    k1, k2, k3, k4, k5, k6 = jax.random.split(key, 6)

    query = jax.random.normal(k1, (batch, dim, hgt, wdt), dtype=jnp.float32)
    context = jax.random.normal(k2, (batch, dim, hgt, wdt), dtype=jnp.float32)

    # Deterministic synthetic 1x1-conv weights (kernel_size=1, bias=False),
    # stored squeezed: (out_channels, in_channels).
    wq = jax.random.normal(k3, (attn_dim, dim), dtype=jnp.float32) * 0.1
    wk = jax.random.normal(k4, (attn_dim, dim), dtype=jnp.float32) * 0.1
    wv = jax.random.normal(k5, (attn_dim, dim), dtype=jnp.float32) * 0.1
    wout = jax.random.normal(k6, (dim, attn_dim), dtype=jnp.float32) * 0.1

    # Cross-attention path (separate query / context streams).
    out = jax.block_until_ready(
        attention_forward(query, context, wq, wk, wv, wout, head))
    ref = attention_reference(query, context, wq, wk, wv, wout, head)
    assert out.shape == (batch, dim, hgt, wdt)
    assert jnp.allclose(out, ref, atol=2e-2, rtol=2e-2), \
        "cross-attention mismatch vs reference"

    # Self-attention path (query is context -> single activation stream),
    # which is how the UNet Block invokes Attention: attn(x, x).
    out_self = jax.block_until_ready(
        attention_forward(query, query, wq, wk, wv, wout, head))
    ref_self = attention_reference(query, query, wq, wk, wv, wout, head)
    assert jnp.allclose(out_self, ref_self, atol=2e-2, rtol=2e-2), \
        "self-attention mismatch vs reference"

    print("KERNEL_OK")
</pallas_src>

<mosaic_0001>
module attributes {stable_mosaic.version = 11 : i64} {
  func.func @kernel(%arg0: i32, %arg1: i32, %arg2: memref<1x256x32xbf16, #tpu.memory_space<vmem>>, %arg3: memref<1x256x32xbf16, #tpu.memory_space<vmem>>, %arg4: memref<32x16xbf16, #tpu.memory_space<vmem>>, %arg5: memref<32x32xbf16, #tpu.memory_space<vmem>>, %arg6: memref<2x8x32xbf16, #tpu.memory_space<vmem>>, %arg7: memref<1x256x32xf32, #tpu.memory_space<vmem>>, %arg8: memref<2x256x8xbf16, #tpu.memory_space<vmem>>, %arg9: memref<2x256x8xbf16, #tpu.memory_space<vmem>>) attributes {dimension_semantics = [#tpu.dimension_semantics<parallel>, #tpu.dimension_semantics<arbitrary>], iteration_bounds = array<i64: 2, 1>, scalar_prefetch = 0 : i64, scratch_operands = 2 : i64, tpu.core_type = #tpu.core_type<tc>, window_params = [{transform_indices = @transform_0, window_bounds = array<i64: 1, 256, 32>}, {transform_indices = @transform_1, window_bounds = array<i64: 1, 256, 32>}, {pipeline_mode = #tpu.pipeline_mode<synchronous>, transform_indices = @transform_2, window_bounds = array<i64: 32, 16>}, {pipeline_mode = #tpu.pipeline_mode<synchronous>, transform_indices = @transform_3, window_bounds = array<i64: 32, 32>}, {pipeline_mode = #tpu.pipeline_mode<synchronous>, transform_indices = @transform_4, window_bounds = array<i64: 2, 8, 32>}, {transform_indices = @transform_5, window_bounds = array<i64: 1, 256, 32>}]} {
    %c0_i32 = arith.constant 0 : i32
    %0 = arith.cmpi eq, %arg1, %c0_i32 : i32
    %1 = arith.extui %0 : i1 to i32
    %c0_i32_0 = arith.constant 0 : i32
    %2 = arith.cmpi ne, %1, %c0_i32_0 : i32
    scf.if %2 {
      %c0_36 = arith.constant 0 : index
      %c0_37 = arith.constant 0 : index
      %c0_38 = arith.constant 0 : index
      %58 = vector.load %arg3[%c0_36, %c0_37, %c0_38] : memref<1x256x32xbf16, #tpu.memory_space<vmem>>, vector<1x256x32xbf16>
      %59 = vector.shape_cast %58 : vector<1x256x32xbf16> to vector<256x32xbf16>
      %c0_39 = arith.constant 0 : index
      %c0_40 = arith.constant 0 : index
      %60 = vector.load %arg5[%c0_39, %c0_40] : memref<32x32xbf16, #tpu.memory_space<vmem>>, vector<32x32xbf16>
      %cst_41 = arith.constant dense<0.000000e+00> : vector<256x32xf32>
      %61 = tpu.matmul %59, %60, %cst_41 {dimension_numbers = #tpu.dot_dimension_numbers<[1], [0], [0], [1], [0, 0, 1, 1], [], []>} : vector<256x32xbf16>, vector<32x32xbf16>, vector<256x32xf32> -> vector<256x32xf32>
      %62 = arith.truncf %61 : vector<256x32xf32> to vector<256x32xbf16>
      %63 = vector.extract_strided_slice %62 {offsets = [0, 0], sizes = [256, 8], strides = [1, 1]} : vector<256x32xbf16> to vector<256x8xbf16>
      %c0_42 = arith.constant 0 : index
      %c0_43 = arith.constant 0 : index
      %c0_44 = arith.constant 0 : index
      %64 = vector.load %arg8[%c0_42, %c0_43, %c0_44] : memref<2x256x8xbf16, #tpu.memory_space<vmem>>, vector<1x256x8xbf16>
      %65 = vector.shape_cast %64 : vector<1x256x8xbf16> to vector<256x8xbf16>
      %66 = vector.shape_cast %63 : vector<256x8xbf16> to vector<1x256x8xbf16>
      tpu.vector_store %arg8[%c0_42, %c0_43, %c0_44], %66 {strides = array<i32>} : memref<2x256x8xbf16, #tpu.memory_space<vmem>>, vector<1x256x8xbf16>,
      %67 = vector.extract_strided_slice %62 {offsets = [0, 16], sizes = [256, 8], strides = [1, 1]} : vector<256x32xbf16> to vector<256x8xbf16>
      %c0_45 = arith.constant 0 : index
      %c0_46 = arith.constant 0 : index
      %c0_47 = arith.constant 0 : index
      %68 = vector.load %arg9[%c0_45, %c0_46, %c0_47] : memref<2x256x8xbf16, #tpu.memory_space<vmem>>, vector<1x256x8xbf16>
      %69 = vector.shape_cast %68 : vector<1x256x8xbf16> to vector<256x8xbf16>
      %70 = vector.shape_cast %67 : vector<256x8xbf16> to vector<1x256x8xbf16>
      tpu.vector_store %arg9[%c0_45, %c0_46, %c0_47], %70 {strides = array<i32>} : memref<2x256x8xbf16, #tpu.memory_space<vmem>>, vector<1x256x8xbf16>,
      %71 = vector.extract_strided_slice %62 {offsets = [0, 8], sizes = [256, 8], strides = [1, 1]} : vector<256x32xbf16> to vector<256x8xbf16>
      %c1_48 = arith.constant 1 : index
      %c0_49 = arith.constant 0 : index
      %c0_50 = arith.constant 0 : index
      %72 = vector.load %arg8[%c1_48, %c0_49, %c0_50] : memref<2x256x8xbf16, #tpu.memory_space<vmem>>, vector<1x256x8xbf16>
      %73 = vector.shape_cast %72 : vector<1x256x8xbf16> to vector<256x8xbf16>
      %74 = vector.shape_cast %71 : vector<256x8xbf16> to vector<1x256x8xbf16>
      tpu.vector_store %arg8[%c1_48, %c0_49, %c0_50], %74 {strides = array<i32>} : memref<2x256x8xbf16, #tpu.memory_space<vmem>>, vector<1x256x8xbf16>,
      %75 = vector.extract_strided_slice %62 {offsets = [0, 24], sizes = [256, 8], strides = [1, 1]} : vector<256x32xbf16> to vector<256x8xbf16>
      %c1_51 = arith.constant 1 : index
      %c0_52 = arith.constant 0 : index
      %c0_53 = arith.constant 0 : index
      %76 = vector.load %arg9[%c1_51, %c0_52, %c0_53] : memref<2x256x8xbf16, #tpu.memory_space<vmem>>, vector<1x256x8xbf16>
      %77 = vector.shape_cast %76 : vector<1x256x8xbf16> to vector<256x8xbf16>
      %78 = vector.shape_cast %75 : vector<256x8xbf16> to vector<1x256x8xbf16>
      tpu.vector_store %arg9[%c1_51, %c0_52, %c0_53], %78 {strides = array<i32>} : memref<2x256x8xbf16, #tpu.memory_space<vmem>>, vector<1x256x8xbf16>,
    } else {
    }
    %c0 = arith.constant 0 : index
    %c0_1 = arith.constant 0 : index
    %c0_2 = arith.constant 0 : index
    %3 = vector.load %arg2[%c0, %c0_1, %c0_2] : memref<1x256x32xbf16, #tpu.memory_space<vmem>>, vector<1x256x32xbf16>
    %4 = vector.shape_cast %3 : vector<1x256x32xbf16> to vector<256x32xbf16>
    %c0_3 = arith.constant 0 : index
    %c0_4 = arith.constant 0 : index
    %5 = vector.load %arg4[%c0_3, %c0_4] : memref<32x16xbf16, #tpu.memory_space<vmem>>, vector<32x16xbf16>
    %cst = arith.constant dense<0.000000e+00> : vector<256x16xf32>
    %6 = tpu.matmul %4, %5, %cst {dimension_numbers = #tpu.dot_dimension_numbers<[1], [0], [0], [1], [0, 0, 1, 1], [], []>} : vector<256x32xbf16>, vector<32x16xbf16>, vector<256x16xf32> -> vector<256x16xf32>
    %7 = arith.truncf %6 : vector<256x16xf32> to vector<256x16xbf16>
    %cst_5 = arith.constant 0.000000e+00 : f32
    %8 = vector.broadcast %cst_5 : f32 to vector<256x32xf32>
    %9 = vector.extract_strided_slice %7 {offsets = [0, 0], sizes = [256, 8], strides = [1, 1]} : vector<256x16xbf16> to vector<256x8xbf16>
    %c0_6 = arith.constant 0 : index
    %c0_7 = arith.constant 0 : index
    %c0_8 = arith.constant 0 : index
    %10 = vector.load %arg8[%c0_6, %c0_7, %c0_8] : memref<2x256x8xbf16, #tpu.memory_space<vmem>>, vector<1x256x8xbf16>
    %11 = vector.shape_cast %10 : vector<1x256x8xbf16> to vector<256x8xbf16>
    %c0_9 = arith.constant 0 : index
    %c0_10 = arith.constant 0 : index
    %c0_11 = arith.constant 0 : index
    %12 = vector.load %arg9[%c0_9, %c0_10, %c0_11] : memref<2x256x8xbf16, #tpu.memory_space<vmem>>, vector<1x256x8xbf16>
    %13 = vector.shape_cast %12 : vector<1x256x8xbf16> to vector<256x8xbf16>
    %cst_12 = arith.constant dense<0.000000e+00> : vector<256x256xf32>
    %14 = tpu.matmul %9, %11, %cst_12 {dimension_numbers = #tpu.dot_dimension_numbers<[1], [1], [0], [0], [0, 0, 1, 0], [], []>} : vector<256x8xbf16>, vector<256x8xbf16>, vector<256x256xf32> -> vector<256x256xf32>
    %cst_13 = arith.constant dense<0xFF800000> : vector<256xf32>
    %15 = vector.multi_reduction <maximumf>, %14, %cst_13 [1] : vector<256x256xf32> to vector<256xf32>
    %16 = vector.shape_cast %15 : vector<256xf32> to vector<256x1xf32>
    %17 = vector.broadcast %16 : vector<256x1xf32> to vector<256x256xf32>
    %18 = arith.subf %14, %17 : vector<256x256xf32>
    %19 = math.exp %18 : vector<256x256xf32>
    %cst_14 = arith.constant dense<0.000000e+00> : vector<256xf32>
    %20 = vector.multi_reduction <add>, %19, %cst_14 [1] : vector<256x256xf32> to vector<256xf32>
    %21 = vector.shape_cast %20 : vector<256xf32> to vector<256x1xf32>
    %22 = tpu.reciprocal %21 {approx = true} : vector<256x1xf32> -> vector<256x1xf32>
    %23 = arith.truncf %19 : vector<256x256xf32> to vector<256x256xbf16>
    %cst_15 = arith.constant dense<0.000000e+00> : vector<256x8xf32>
    %24 = tpu.matmul %23, %13, %cst_15 {dimension_numbers = #tpu.dot_dimension_numbers<[1], [0], [0], [1], [0, 0, 1, 1], [], []>} : vector<256x256xbf16>, vector<256x8xbf16>, vector<256x8xf32> -> vector<256x8xf32>
    %25 = vector.broadcast %22 : vector<256x1xf32> to vector<256x8xf32>
    %26 = arith.mulf %24, %25 : vector<256x8xf32>
    %27 = arith.truncf %26 : vector<256x8xf32> to vector<256x8xbf16>
    %c0_16 = arith.constant 0 : index
    %c0_17 = arith.constant 0 : index
    %c0_18 = arith.constant 0 : index
    %28 = vector.load %arg6[%c0_16, %c0_17, %c0_18] : memref<2x8x32xbf16, #tpu.memory_space<vmem>>, vector<1x8x32xbf16>
    %29 = vector.shape_cast %28 : vector<1x8x32xbf16> to vector<8x32xbf16>
    %cst_19 = arith.constant dense<0.000000e+00> : vector<256x32xf32>
    %30 = tpu.matmul %27, %29, %cst_19 {dimension_numbers = #tpu.dot_dimension_numbers<[1], [0], [0], [1], [0, 0, 1, 1], [], []>} : vector<256x8xbf16>, vector<8x32xbf16>, vector<256x32xf32> -> vector<256x32xf32>
    %31 = arith.addf %8, %30 : vector<256x32xf32>
    %32 = vector.extract_strided_slice %7 {offsets = [0, 8], sizes = [256, 8], strides = [1, 1]} : vector<256x16xbf16> to vector<256x8xbf16>
    %c1 = arith.constant 1 : index
    %c0_20 = arith.constant 0 : index
    %c0_21 = arith.constant 0 : index
    %33 = vector.load %arg8[%c1, %c0_20, %c0_21] : memref<2x256x8xbf16, #tpu.memory_space<vmem>>, vector<1x256x8xbf16>
    %34 = vector.shape_cast %33 : vector<1x256x8xbf16> to vector<256x8xbf16>
    %c1_22 = arith.constant 1 : index
    %c0_23 = arith.constant 0 : index
    %c0_24 = arith.constant 0 : index
    %35 = vector.load %arg9[%c1_22, %c0_23, %c0_24] : memref<2x256x8xbf16, #tpu.memory_space<vmem>>, vector<1x256x8xbf16>
    %36 = vector.shape_cast %35 : vector<1x256x8xbf16> to vector<256x8xbf16>
    %cst_25 = arith.constant dense<0.000000e+00> : vector<256x256xf32>
    %37 = tpu.matmul %32, %34, %cst_25 {dimension_numbers = #tpu.dot_dimension_numbers<[1], [1], [0], [0], [0, 0, 1, 0], [], []>} : vector<256x8xbf16>, vector<256x8xbf16>, vector<256x256xf32> -> vector<256x256xf32>
    %cst_26 = arith.constant dense<0xFF800000> : vector<256xf32>
    %38 = vector.multi_reduction <maximumf>, %37, %cst_26 [1] : vector<256x256xf32> to vector<256xf32>
    %39 = vector.shape_cast %38 : vector<256xf32> to vector<256x1xf32>
    %40 = vector.broadcast %39 : vector<256x1xf32> to vector<256x256xf32>
    %41 = arith.subf %37, %40 : vector<256x256xf32>
    %42 = math.exp %41 : vector<256x256xf32>
    %cst_27 = arith.constant dense<0.000000e+00> : vector<256xf32>
    %43 = vector.multi_reduction <add>, %42, %cst_27 [1] : vector<256x256xf32> to vector<256xf32>
    %44 = vector.shape_cast %43 : vector<256xf32> to vector<256x1xf32>
    %45 = tpu.reciprocal %44 {approx = true} : vector<256x1xf32> -> vector<256x1xf32>
    %46 = arith.truncf %42 : vector<256x256xf32> to vector<256x256xbf16>
    %cst_28 = arith.constant dense<0.000000e+00> : vector<256x8xf32>
    %47 = tpu.matmul %46, %36, %cst_28 {dimension_numbers = #tpu.dot_dimension_numbers<[1], [0], [0], [1], [0, 0, 1, 1], [], []>} : vector<256x256xbf16>, vector<256x8xbf16>, vector<256x8xf32> -> vector<256x8xf32>
    %48 = vector.broadcast %45 : vector<256x1xf32> to vector<256x8xf32>
    %49 = arith.mulf %47, %48 : vector<256x8xf32>
    %50 = arith.truncf %49 : vector<256x8xf32> to vector<256x8xbf16>
    %c1_29 = arith.constant 1 : index
    %c0_30 = arith.constant 0 : index
    %c0_31 = arith.constant 0 : index
    %51 = vector.load %arg6[%c1_29, %c0_30, %c0_31] : memref<2x8x32xbf16, #tpu.memory_space<vmem>>, vector<1x8x32xbf16>
    %52 = vector.shape_cast %51 : vector<1x8x32xbf16> to vector<8x32xbf16>
    %cst_32 = arith.constant dense<0.000000e+00> : vector<256x32xf32>
    %53 = tpu.matmul %50, %52, %cst_32 {dimension_numbers = #tpu.dot_dimension_numbers<[1], [0], [0], [1], [0, 0, 1, 1], [], []>} : vector<256x8xbf16>, vector<8x32xbf16>, vector<256x32xf32> -> vector<256x32xf32>
    %54 = arith.addf %31, %53 : vector<256x32xf32>
    %c0_33 = arith.constant 0 : index
    %c0_34 = arith.constant 0 : index
    %c0_35 = arith.constant 0 : index
    %55 = vector.load %arg7[%c0_33, %c0_34, %c0_35] : memref<1x256x32xf32, #tpu.memory_space<vmem>>, vector<1x256x32xf32>
    %56 = vector.shape_cast %55 : vector<1x256x32xf32> to vector<256x32xf32>
    %57 = vector.shape_cast %54 : vector<256x32xf32> to vector<1x256x32xf32>
    tpu.vector_store %arg7[%c0_33, %c0_34, %c0_35], %57 {strides = array<i32>} : memref<1x256x32xf32, #tpu.memory_space<vmem>>, vector<1x256x32xf32>,
    return
  }
  func.func @transform_0(%arg0: i32, %arg1: i32) -> (i32, i32, i32) {
    %c0_i32 = arith.constant 0 : i32
    %c0_i32_0 = arith.constant 0 : i32
    return %arg0, %arg1, %c0_i32 : i32, i32, i32
  }
  func.func @transform_1(%arg0: i32, %arg1: i32) -> (i32, i32, i32) {
    %c0_i32 = arith.constant 0 : i32
    %c0_i32_0 = arith.constant 0 : i32
    %c0_i32_1 = arith.constant 0 : i32
    return %arg0, %c0_i32, %c0_i32_0 : i32, i32, i32
  }
  func.func @transform_2(%arg0: i32, %arg1: i32) -> (i32, i32) {
    %c0_i32 = arith.constant 0 : i32
    %c0_i32_0 = arith.constant 0 : i32
    %c0_i32_1 = arith.constant 0 : i32
    return %c0_i32, %c0_i32_0 : i32, i32
  }
  func.func @transform_3(%arg0: i32, %arg1: i32) -> (i32, i32) {
    %c0_i32 = arith.constant 0 : i32
    %c0_i32_0 = arith.constant 0 : i32
    %c0_i32_1 = arith.constant 0 : i32
    return %c0_i32, %c0_i32_0 : i32, i32
  }
  func.func @transform_4(%arg0: i32, %arg1: i32) -> (i32, i32, i32) {
    %c0_i32 = arith.constant 0 : i32
    %c0_i32_0 = arith.constant 0 : i32
    %c0_i32_1 = arith.constant 0 : i32
    %c0_i32_2 = arith.constant 0 : i32
    return %c0_i32, %c0_i32_0, %c0_i32_1 : i32, i32, i32
  }
  func.func @transform_5(%arg0: i32, %arg1: i32) -> (i32, i32, i32) {
    %c0_i32 = arith.constant 0 : i32
    %c0_i32_0 = arith.constant 0 : i32
    return %arg0, %arg1, %c0_i32 : i32, i32, i32
  }
}

</mosaic_0001>

<bundles_post_ra>
// kernel: tpu_custom_call.1
= control target key start
LH: loop header
LB: loop body
LE: loop exit
PB: predicated region body
PF: predicated region fallthrough
CT: control target
= control target key end

     0   :  { %s5903_s18 = smov 0   ;;  %s5905_s19 = smov 0   ;;  %s7798_s0 = inlined_call_operand.vmem [shape: bf16[2,256,32], index: 0, kind: input, shape index: {}]   ;;  %s7799_s1 = inlined_call_operand.vmem [shape: bf16[2,256,32], index: 1, kind: input, shape index: {}]   ;;  %s7800_s2 = inlined_call_operand.vmem [shape: bf16[32,16], index: 2, kind: input, shape index: {}]   ;;  %s7801_s3 = inlined_call_operand.vmem [shape: bf16[32,32], index: 3, kind: input, shape index: {}]   ;;  %s7802_s4 = inlined_call_operand.vmem [shape: bf16[2,8,32], index: 4, kind: input, shape index: {}]   ;;  %s7803_s5 = inlined_call_operand.vmem [shape: f32[2,256,32], index: 5, kind: output, shape index: {}]  }
   0x1   :  { %s5907_s20 = smov 0  }
   0x2 LB: > { %s27_s21 = sadd.s32 1, %s5864_s19  ;;  %p4514_p0 = scmp.ge.s32.totalorder %s5868_s20, 1  ;;  %s5868_s20 = sphi %s5907_s20, %s15_s20   ;;  %s5864_s19 = sphi %s5905_s19, %s7993_s19   ;;  %s5860_s18 = sphi %s5903_s18, %s7992_s18  }
   0x3   : > { %p29_p1 = scmp.ge.s32.totalorder %s27_s21, 2  ;;  %p218_p2 = scmp.lt.s32.totalorder %s5868_s20, 3 }
   0x5   : > { %s7995_s21 = smov (%p29_p1, %s27_s21), 0  ;;  %p219_p3 = pnand %p4514_p0, %p218_p2 }
   0x7   : > { %222 = sbr.rel (%p219_p3) target bundleno = 1412 (0x584), region = 40 }
   0xc   : > { %v5362_v0 = vld [vmem:[%s7801_s3 + $0x8] sm:$0xff]   ;;  %p260_p4 = scmp.lt.s32.totalorder %s5860_s18, 1  ;;  %v5363_v1 = vld [vmem:[%s7801_s3] sm:$0xff]   ;;  %vm417_vm0 = vcmask 261120   ;;  %vm755_vm1 = vcmask 60416   ;;  %s5870_s12 = smov 120  }
   0xd   : > { %5177 = vmatprep.subr.bf16.mxu0 %v5362_v0  ;;  %v5374_v2 = vld [vmem:[%s7800_s2 + $0x8] sm:$0xff]   ;;  %v5375_v3 = vld [vmem:[%s7800_s2] sm:$0xff]   ;;  %vm1672_vm2 = vcmask 64512   ;;  %s5871_s13 = smov 112   ;;  %s5872_s14 = smov 104   ;;  %vm4002_vm3 = vcmask 1043456  }
   0xe   : > { %s7997_s18 = smov (!%p260_p4, %s5860_s18), 1  ;;  %5178 = vmatpush3.bf16.msra.mxu0 %v5362_v0  ;;  %5213 = vmatprep.subr.bf16.mxu1 %v5374_v2 }
   0xf   : > { %5179 = vmatprep.subr.bf16.mxu0 %v5363_v1  ;;  %s4752_s30 = sshll.u32 %s7997_s18, 7  ;;  %5214 = vmatpush3.bf16.msra.mxu1 %v5374_v2  ;;  %s4754_s23 = sshll.u32 %s7997_s18, 8 }
  0x10   : > { %s5939_s8 = scalar_lea.vmem %s7799_s1, %s4752_s30  ;;  %5215 = vmatprep.subr.bf16.mxu1 %v5375_v3  ;;  %s5951_s11 = scalar_lea.vmem %s7798_s0, %s4752_s30 }
  0x11   : > { %v5364_v4 = vld [vmem:[%s5939_s8] sm:$0xff]   ;;  %v5365_v5 = vld [vmem:[%s5939_s8 + $0x8] sm:$0xff]   ;;  %v5366_v6 = vld [vmem:[%s5939_s8 + $0x10] sm:$0xff]   ;;  %s7723_s26 = scalar_lea.vmem %s7803_s5, %s4754_s23 }
  0x12   : > { %5180 = vmatpush3.bf16.msra.mxu0 %v5363_v1  ;;  %5181 = vmatprep.mubr.msk.bf16.mxu0 %vm417_vm0, %v5364_v4  ;;  %v5367_v7 = vld [vmem:[%s5939_s8 + $0x18] sm:$0xff]   ;;  %v5368_v8 = vld [vmem:[%s5939_s8 + $0x20] sm:$0xff]   ;;  %v5379_v10 = vld [vmem:[%s5951_s11 + $0x8] sm:$0xff]  }
  0x13   : > { %5216 = vmatpush3.bf16.msra.mxu1 %v5375_v3  ;;  %v5377_v9 = vld [vmem:[%s5951_s11] sm:$0xff]   ;;  %v5381_v11 = vld [vmem:[%s5951_s11 + $0x10] sm:$0xff]   ;;  %v5369_v12 = vld [vmem:[%s5939_s8 + $0x28] sm:$0xff]  }
  0x14   : > { %5217 = vmatprep.mubr.msk.bf16.mxu1 %vm417_vm0, %v5377_v9  ;;  %v5370_v13 = vld [vmem:[%s5939_s8 + $0x30] sm:$0xff]   ;;  %v5383_v14 = vld [vmem:[%s5951_s11 + $0x18] sm:$0xff]   ;;  %v5385_v15 = vld [vmem:[%s5951_s11 + $0x20] sm:$0xff]  }
  0x15   : > { %5182 = vmatmul.mubr.msk.bf16.vlgmr.msra.gmra.mxu0 %vm417_vm0, %v5365_v5  ;;  %v5371_v16 = vld [vmem:[%s5939_s8 + $0x38] sm:$0xff]   ;;  %v5372_v17 = vld [vmem:[%s5939_s8 + $0x40] sm:$0xff]   ;;  %v5387_v18 = vld [vmem:[%s5951_s11 + $0x28] sm:$0xff]  }
  0x16   : > { %5185 = vmatprep.mubr.msk.bf16.mxu0 %vm417_vm0, %v5366_v6  ;;  %5218 = vmatmul.mubr.msk.bf16.vlgmr.msra.gmra.mxu1 %vm417_vm0, %v5379_v10  ;;  %v5388_v19 = vld [vmem:[%s5951_s11 + $0x30] sm:$0xff]   ;;  %v5373_v20 = vld [vmem:[%s5939_s8 + $0x48] sm:$0xff]   ;;  %v5389_v22 = vld [vmem:[%s5951_s11 + $0x38] sm:$0xff]  }
  0x17   : > { %5221 = vmatprep.mubr.msk.bf16.mxu1 %vm417_vm0, %v5381_v11  ;;  %v5376_v21 = vld [vmem:[%s5939_s8 + $0x50] sm:$0xff]   ;;  %v5390_v23 = vld [vmem:[%s5951_s11 + $0x40] sm:$0xff]   ;;  %v5378_v24 = vld [vmem:[%s5939_s8 + $0x58] sm:$0xff]  }
  0x18   : > { %v5380_v25 = vld [vmem:[%s5939_s8 + $0x60] sm:$0xff]   ;;  %v5391_v26 = vld [vmem:[%s5951_s11 + $0x48] sm:$0xff]   ;;  %v5392_v27 = vld [vmem:[%s5951_s11 + $0x50] sm:$0xff]  }
  0x19   : > { %v5382_v28 = vld [vmem:[%s5939_s8 + $0x68] sm:$0xff]   ;;  %v5384_v29 = vld [vmem:[%s5939_s8 + $0x70] sm:$0xff]   ;;  %v5393_v30 = vld [vmem:[%s5951_s11 + $0x58] sm:$0xff]  }
  0x1a   : > { %v5394_v31 = vld [vmem:[%s5951_s11 + $0x60] sm:$0xff]   ;;  %v5386_v32 = vld [vmem:[%s5939_s8 + $0x78] sm:$0xff]   ;;  %v5395_v33 = vld [vmem:[%s5951_s11 + $0x68] sm:$0xff]  }
  0x1b   : > { %v5396_v34 = vld [vmem:[%s5951_s11 + $0x70] sm:$0xff]   ;;  %v5397_v35 = vld [vmem:[%s5951_s11 + $0x78] sm:$0xff]  }
  0x1d   : > { %5186 = vmatmul.mubr.msk.bf16.gmra.mxu0 %vm417_vm0, %v5367_v7 }
  0x1e   : > { %5189 = vmatprep.mubr.msk.bf16.mxu0 %vm417_vm0, %v5368_v8  ;;  %5222 = vmatmul.mubr.msk.bf16.gmra.mxu1 %vm417_vm0, %v5383_v14 }
  0x1f   : > { %5225 = vmatprep.mubr.msk.bf16.mxu1 %vm417_vm0, %v5385_v15 }
  0x25   : > { %5190 = vmatmul.mubr.msk.bf16.gmra.mxu0 %vm417_vm0, %v5369_v12 }
  0x26   : > { %5193 = vmatprep.mubr.msk.bf16.mxu0 %vm417_vm0, %v5370_v13  ;;  %5226 = vmatmul.mubr.msk.bf16.gmra.mxu1 %vm417_vm0, %v5387_v18 }
  0x27   : > { %5229 = vmatprep.mubr.msk.bf16.mxu1 %vm417_vm0, %v5388_v19 }
  0x2d   : > { %5194 = vmatmul.mubr.msk.bf16.gmra.mxu0 %vm417_vm0, %v5371_v16 }
  0x2e   : > { %5197 = vmatprep.mubr.msk.bf16.mxu0 %vm417_vm0, %v5372_v17  ;;  %5230 = vmatmul.mubr.msk.bf16.gmra.mxu1 %vm417_vm0, %v5389_v22 }
  0x2f   : > { %5233 = vmatprep.mubr.msk.bf16.mxu1 %vm417_vm0, %v5390_v23 }
  0x35   : > { %5198 = vmatmul.mubr.msk.bf16.gmra.mxu0 %vm417_vm0, %v5373_v20 }
  0x36   : > { %5201 = vmatprep.mubr.msk.bf16.mxu0 %vm417_vm0, %v5376_v21  ;;  %5234 = vmatmul.mubr.msk.bf16.gmra.mxu1 %vm417_vm0, %v5391_v26 }
  0x37   : > { %5237 = vmatprep.mubr.msk.bf16.mxu1 %vm417_vm0, %v5392_v27 }
  0x3d   : > { %5202 = vmatmul.mubr.msk.bf16.gmra.mxu0 %vm417_vm0, %v5378_v24 }
  0x3e   : > { %5205 = vmatprep.mubr.msk.bf16.mxu0 %vm417_vm0, %v5380_v25  ;;  %5238 = vmatmul.mubr.msk.bf16.gmra.mxu1 %vm417_vm0, %v5393_v30 }
  0x3f   : > { %5241 = vmatprep.mubr.msk.bf16.mxu1 %vm417_vm0, %v5394_v31 }
  0x45   : > { %5206 = vmatmul.mubr.msk.bf16.gmra.mxu0 %vm417_vm0, %v5382_v28 }
  0x46   : > { %5209 = vmatprep.mubr.msk.bf16.mxu0 %vm417_vm0, %v5384_v29  ;;  %5242 = vmatmul.mubr.msk.bf16.gmra.mxu1 %vm417_vm0, %v5395_v33 }
  0x47   : > { %5245 = vmatprep.mubr.msk.bf16.mxu1 %vm417_vm0, %v5396_v34 }
  0x4d   : > { %5210 = vmatmul.mubr.msk.bf16.gmra.mxu0 %vm417_vm0, %v5386_v32 }
  0x4e   : > { %5246 = vmatmul.mubr.msk.bf16.gmra.mxu1 %vm417_vm0, %v5397_v35 }
  0xd5   : > { %v5183_v36 = vpop.f32.mrf.mxu0 }
  0xd6   : > { %v6010_v37 = vpack.c.bf16 %v5183_v36, %v5183_v36  ;;  %v5219_v48 = vpop.f32.mrf.mxu1 }
  0xd7   : > { %v500_v38 = vpop.f32.mrf.mxu0 }
  0xd8   : > { %758 = vst.msk [vmem:[#allocation2 + $0x8] sm:$0xf] %vm755_vm1, %v6010_v37  ;;  %v6014_v39 = vpack.c.bf16 %v500_v38, %v500_v38  ;;  %920 = vrot.lane.b32.xlu0 %v6010_v37, %s5870_s12  ;;  %v1385_v51 = vpop.f32.mrf.mxu1 }
  0xd9   : > { %v5184_v40 = vpop.f32.mrf.mxu0 }
  0xda   : > { %756 = vst.msk [vmem:[#allocation2] sm:$0xf] %vm755_vm1, %v6014_v39  ;;  %v6020_v41 = vpack.c.bf16 %v5184_v40, %v5184_v40  ;;  %v5220_v54 = vpop.f32.mrf.mxu1 }
  0xdb   : > { %v503_v42 = vpop.f32.mrf.mxu0  ;;  %v6050_v56 = vpack.c.bf16 %v5220_v54, %v5219_v48 }
  0xdc   : > { %759 = vst.msk [vmem:[#allocation2 + $0xc] sm:$0xf] %vm755_vm1, %v6020_v41  ;;  %v6024_v43 = vpack.c.bf16 %v503_v42, %v503_v42  ;;  %922 = vrot.lane.b32.xlu1 %v6020_v41, %s5870_s12  ;;  %v1388_v58 = vpop.f32.mrf.mxu1 }
  0xdd   : > { %v5187_v44 = vpop.f32.mrf.mxu0  ;;  %v6056_v60 = vpack.c.bf16 %v1388_v58, %v1385_v51 }
  0xde   : > { %757 = vst.msk [vmem:[#allocation2 + $0x4] sm:$0xf] %vm755_vm1, %v6024_v43  ;;  %v6030_v45 = vpack.c.bf16 %v5187_v44, %v5187_v44  ;;  %v6066_v62 = vpop.f32.mrf.mxu1 }
  0xdf   : > { %v516_v46 = vpop.f32.mrf.mxu0  ;;  %4839 = vmatprep.mubr.msk.bf16.mxu0 %vm1672_vm2, %v6056_v60 }
  0xe0   : > { %762 = vst.msk [vmem:[#allocation2 + $0x18] sm:$0xf] %vm755_vm1, %v6030_v45  ;;  %v6034_v47 = vpack.c.bf16 %v516_v46, %v516_v46  ;;  %928 = vrot.lane.b32.xlu0 %v6030_v45, %s5870_s12  ;;  %v6074_v1 = vpop.f32.mrf.mxu1 }
  0xe1   : > { %v5188_v49 = vpop.f32.mrf.mxu0 }
  0xe2   : > { %760 = vst.msk [vmem:[#allocation2 + $0x10] sm:$0xf] %vm755_vm1, %v6034_v47  ;;  %v6040_v50 = vpack.c.bf16 %v5188_v49, %v5188_v49  ;;  %v6084_v4 = vpop.f32.mrf.mxu1 }
  0xe3   : > { %v519_v52 = vpop.f32.mrf.mxu0 }
  0xe4   : > { %763 = vst.msk [vmem:[#allocation2 + $0x1c] sm:$0xf] %vm755_vm1, %v6040_v50  ;;  %v6044_v53 = vpack.c.bf16 %v519_v52, %v519_v52  ;;  %924 = vrot.lane.b32.xlu0 %v6034_v47, %s5870_s12  ;;  %930 = vrot.lane.b32.xlu1 %v6040_v50, %s5870_s12  ;;  %v6090_v7 = vpop.f32.mrf.mxu1 }
  0xe5   : > { %v5191_v55 = vpop.f32.mrf.mxu0 }
  0xe6   : > { %761 = vst.msk [vmem:[#allocation2 + $0x14] sm:$0xf] %vm755_vm1, %v6044_v53  ;;  %v6054_v57 = vpack.c.bf16 %v5191_v55, %v5191_v55  ;;  %v6100_v10 = vpop.f32.mrf.mxu1 }
  0xe7   : > { %v532_v59 = vpop.f32.mrf.mxu0 }
  0xe8   : > { %766 = vst.msk [vmem:[#allocation2 + $0x28] sm:$0xf] %vm755_vm1, %v6054_v57  ;;  %v6060_v61 = vpack.c.bf16 %v532_v59, %v532_v59  ;;  %926 = vrot.lane.b32.xlu1 %v6044_v53, %s5870_s12  ;;  %936 = vrot.lane.b32.xlu0 %v6054_v57, %s5870_s12  ;;  %v6106_v13 = vpop.f32.mrf.mxu1 }
  0xe9   : > { %v5192_v63 = vpop.f32.mrf.mxu0 }
  0xea   : > { %764 = vst.msk [vmem:[#allocation2 + $0x20] sm:$0xf] %vm755_vm1, %v6060_v61  ;;  %v6072_v0 = vpack.c.bf16 %v5192_v63, %v5192_v63  ;;  %v6114_v16 = vpop.f32.mrf.mxu1 }
  0xeb   : > { %v535_v2 = vpop.f32.mrf.mxu0 }
  0xec   : > { %767 = vst.msk [vmem:[#allocation2 + $0x2c] sm:$0xf] %vm755_vm1, %v6072_v0  ;;  %v6078_v3 = vpack.c.bf16 %v535_v2, %v535_v2  ;;  %932 = vrot.lane.b32.xlu0 %v6060_v61, %s5870_s12  ;;  %938 = vrot.lane.b32.xlu1 %v6072_v0, %s5870_s12  ;;  %v6122_v19 = vpop.f32.mrf.mxu1 }
  0xed   : > { %v5195_v5 = vpop.f32.mrf.mxu0 }
  0xee   : > { %765 = vst.msk [vmem:[#allocation2 + $0x24] sm:$0xf] %vm755_vm1, %v6078_v3  ;;  %v6088_v6 = vpack.c.bf16 %v5195_v5, %v5195_v5  ;;  %v6130_v22 = vpop.f32.mrf.mxu1 }
  0xef   : > { %v548_v8 = vpop.f32.mrf.mxu0 }
  0xf0   : > { %770 = vst.msk [vmem:[#allocation2 + $0x38] sm:$0xf] %vm755_vm1, %v6088_v6  ;;  %v6094_v9 = vpack.c.bf16 %v548_v8, %v548_v8  ;;  %934 = vrot.lane.b32.xlu1 %v6078_v3, %s5870_s12  ;;  %944 = vrot.lane.b32.xlu0 %v6088_v6, %s5870_s12  ;;  %v6136_v25 = vpop.f32.mrf.mxu1 }
  0xf1   : > { %v5196_v11 = vpop.f32.mrf.mxu0 }
  0xf2   : > { %768 = vst.msk [vmem:[#allocation2 + $0x30] sm:$0xf] %vm755_vm1, %v6094_v9  ;;  %v6104_v12 = vpack.c.bf16 %v5196_v11, %v5196_v11  ;;  %v6144_v28 = vpop.f32.mrf.mxu1 }
  0xf3   : > { %v551_v14 = vpop.f32.mrf.mxu0 }
  0xf4   : > { %771 = vst.msk [vmem:[#allocation2 + $0x3c] sm:$0xf] %vm755_vm1, %v6104_v12  ;;  %v6110_v15 = vpack.c.bf16 %v551_v14, %v551_v14  ;;  %940 = vrot.lane.b32.xlu0 %v6094_v9, %s5870_s12  ;;  %v6150_v32 = vpop.f32.mrf.mxu1 }
  0xf5   : > { %v5199_v17 = vpop.f32.mrf.mxu0 }
  0xf6   : > { %769 = vst.msk [vmem:[#allocation2 + $0x34] sm:$0xf] %vm755_vm1, %v6110_v15  ;;  %v6118_v18 = vpack.c.bf16 %v5199_v17, %v5199_v17  ;;  %942 = vrot.lane.b32.xlu1 %v6110_v15, %s5870_s12  ;;  %v6162_v38 = vpop.f32.mrf.mxu1 }
  0xf7   : > { %v564_v20 = vpop.f32.mrf.mxu0 }
  0xf8   : > { %774 = vst.msk [vmem:[#allocation2 + $0x48] sm:$0xf] %vm755_vm1, %v6118_v18  ;;  %v6126_v21 = vpack.c.bf16 %v564_v20, %v564_v20  ;;  %946 = vrot.lane.b32.xlu0 %v6104_v12, %s5870_s12  ;;  %v6176_v48 = vpop.f32.mrf.mxu1 }
  0xf9   : > { %v5200_v23 = vpop.f32.mrf.mxu0 }
  0xfa   : > { %772 = vst.msk [vmem:[#allocation2 + $0x40] sm:$0xf] %vm755_vm1, %v6126_v21  ;;  %v6134_v24 = vpack.c.bf16 %v5200_v23, %v5200_v23  ;;  %v6190_v55 = vpop.f32.mrf.mxu1 }
  0xfb   : > { %v567_v26 = vpop.f32.mrf.mxu0 }
  0xfc   : > { %775 = vst.msk [vmem:[#allocation2 + $0x4c] sm:$0xf] %vm755_vm1, %v6134_v24  ;;  %v6140_v27 = vpack.c.bf16 %v567_v26, %v567_v26  ;;  %952 = vrot.lane.b32.xlu0 %v6118_v18, %s5870_s12  ;;  %v1452_v5 = vpop.f32.mrf.mxu1 }
  0xfd   : > { %v5203_v29 = vpop.f32.mrf.mxu0 }
  0xfe   : > { %773 = vst.msk [vmem:[#allocation2 + $0x44] sm:$0xf] %vm755_vm1, %v6140_v27  ;;  %v6148_v30 = vpack.c.bf16 %v5203_v29, %v5203_v29  ;;  %v6216_v20 = vpop.f32.mrf.mxu1  ;;  %v5399_v29 = vld [vmem:[#allocation2 + $0x38] sm:$0xff]  }
  0xff   : > { %v580_v31 = vpop.f32.mrf.mxu0 }
 0x100   : > { %778 = vst.msk [vmem:[#allocation2 + $0x58] sm:$0xf] %vm755_vm1, %v6148_v30  ;;  %v6154_v33 = vpack.c.bf16 %v580_v31, %v580_v31  ;;  %960 = vrot.lane.b32.xlu0 %v6148_v30, %s5870_s12  ;;  %v1465_v26 = vpop.f32.mrf.mxu1 }
 0x101   : > { %v5204_v34 = vpop.f32.mrf.mxu0 }
 0x102   : > { %776 = vst.msk [vmem:[#allocation2 + $0x50] sm:$0xf] %vm755_vm1, %v6154_v33  ;;  %v6160_v35 = vpack.c.bf16 %v5204_v34, %v5204_v34  ;;  %v5240_v34 = vpop.f32.mrf.mxu1 }
 0x103   : > { %v583_v36 = vpop.f32.mrf.mxu0 }
 0x104   : > { %779 = vst.msk [vmem:[#allocation2 + $0x5c] sm:$0xf] %vm755_vm1, %v6160_v35  ;;  %v6166_v40 = vpack.c.bf16 %v583_v36, %v583_v36  ;;  %956 = vrot.lane.b32.xlu0 %v6154_v33, %s5870_s12  ;;  %962 = vrot.lane.b32.xlu1 %v6160_v35, %s5870_s12  ;;  %v1743_v36 = vsel %vm1672_vm2, %v5399_v29, 0 }
 0x105   : > { %v5207_v42 = vpop.f32.mrf.mxu0 }
 0x106   : > { %777 = vst.msk [vmem:[#allocation2 + $0x54] sm:$0xf] %vm755_vm1, %v6166_v40  ;;  %v6174_v44 = vpack.c.bf16 %v5207_v42, %v5207_v42 }
 0x107   : > { %v596_v46 = vpop.f32.mrf.mxu0 }
 0x108   : > { %782 = vst.msk [vmem:[#allocation2 + $0x68] sm:$0xf] %vm755_vm1, %v6174_v44  ;;  %v6180_v49 = vpack.c.bf16 %v596_v46, %v596_v46  ;;  %958 = vrot.lane.b32.xlu1 %v6166_v40, %s5870_s12  ;;  %968 = vrot.lane.b32.xlu0 %v6174_v44, %s5870_s12  ;;  %v6238_v46 = vpack.c.bf16 %v6090_v7, %v6074_v1 }
 0x109   : > { %v5208_v51 = vpop.f32.mrf.mxu0 }
 0x10a   : > { %780 = vst.msk [vmem:[#allocation2 + $0x60] sm:$0xf] %vm755_vm1, %v6180_v49  ;;  %v6188_v52 = vpack.c.bf16 %v5208_v51, %v5208_v51  ;;  %v1468_v51 = vpop.f32.mrf.mxu1 }
 0x10b   : > { %v599_v54 = vpop.f32.mrf.mxu0 }
 0x10c   : > { %783 = vst.msk [vmem:[#allocation2 + $0x6c] sm:$0xf] %vm755_vm1, %v6188_v52  ;;  %v6194_v58 = vpack.c.bf16 %v599_v54, %v599_v54  ;;  %964 = vrot.lane.b32.xlu0 %v6180_v49, %s5870_s12  ;;  %970 = vrot.lane.b32.xlu1 %v6188_v52, %s5870_s12  ;;  %v5401_v54 = vld [vmem:[#allocation2 + $0x30] sm:$0xff]   ;;  %v5243_v1 = vpop.f32.mrf.mxu1 }
 0x10d   : > { %v5211_v59 = vpop.f32.mrf.mxu0  ;;  %v1740_v7 = vsel %vm1672_vm2, %v5401_v54, 0 }
 0x10e   : > { %781 = vst.msk [vmem:[#allocation2 + $0x64] sm:$0xf] %vm755_vm1, %v6194_v58  ;;  %v6202_v63 = vpack.c.bf16 %v5211_v59, %v5211_v59  ;;  %v6247_v59 = vpack.c.bf16 %v6122_v19, %v6106_v13  ;;  %v1481_v13 = vpop.f32.mrf.mxu1  ;;  %v5403_v19 = vld [vmem:[#allocation2 + $0x28] sm:$0xff]  }
 0x10f   : > { %v612_v2 = vpop.f32.mrf.mxu0 }
 0x110   : > { %786 = vst.msk [vmem:[#allocation2 + $0x78] sm:$0xf] %vm755_vm1, %v6202_v63  ;;  %v6206_v8 = vpack.c.bf16 %v612_v2, %v612_v2  ;;  %966 = vrot.lane.b32.xlu1 %v6194_v58, %s5870_s12  ;;  %v5244_v29 = vpop.f32.mrf.mxu1 }
 0x111   : > { %v5212_v11 = vpop.f32.mrf.mxu0 }
 0x112   : > { %784 = vst.msk [vmem:[#allocation2 + $0x70] sm:$0xf] %vm755_vm1, %v6206_v8  ;;  %v6212_v14 = vpack.c.bf16 %v5212_v11, %v5212_v11  ;;  %972 = vrot.lane.b32.xlu0 %v6206_v8, %s5870_s12  ;;  %v6256_v11 = vpack.c.bf16 %v6150_v32, %v6136_v25  ;;  %v6270_v25 = vpack.c.bf16 %v6084_v4, %v6066_v62  ;;  %v1737_v32 = vsel %vm1672_vm2, %v5403_v19, 0  ;;  %v5405_v62 = vld [vmem:[#allocation2 + $0x20] sm:$0xff]   ;;  %v5410_v19 = vld [vmem:[#allocation2 + $0x48] sm:$0xff]  }
 0x113   : > { %v615_v17 = vpop.f32.mrf.mxu0  ;;  %v5402_v2 = vld [vmem:[#allocation2 + $0x68] sm:$0xff]  }
 0x114   : > { %787 = vst.msk [vmem:[#allocation2 + $0x7c] sm:$0xf] %vm755_vm1, %v6212_v14  ;;  %v6220_v23 = vpack.c.bf16 %v615_v17, %v615_v17  ;;  %976 = vrot.lane.b32.xlu1 %v6202_v63, %s5870_s12  ;;  %v6264_v17 = vpack.c.bf16 %v1452_v5, %v6176_v48  ;;  %v1484_v48 = vpop.f32.mrf.mxu1  ;;  %v6282_v5 = vpack.c.bf16 %v6114_v16, %v6100_v10  ;;  %v5406_v10 = vld [vmem:[#allocation2 + $0x58] sm:$0xff]  }
 0x115   : > { %v6288_v4 = vpack.c.bf16 %v1484_v48, %v1481_v13  ;;  %v6302_v16 = vpack.c.bf16 %v6190_v55, %v6162_v38  ;;  %v6319_v55 = vpack.c.bf16 %v5244_v29, %v5243_v1  ;;  %v5411_v1 = vld [vmem:[#allocation2 + $0x8] sm:$0xff]  }
 0x116   : > { %785 = vst.msk [vmem:[#allocation2 + $0x74] sm:$0xf] %vm755_vm1, %v6220_v23  ;;  %916 = vrot.lane.b32.xlu0 %v6014_v39, %s5870_s12 }
 0x118   : > { %978 = vrot.lane.b32.xlu1 %v6212_v14, %s5870_s12 }
 0x11a   : > { %948 = vrot.lane.b32.xlu0 %v6126_v21, %s5870_s12 }
 0x11b   : > { %v5398_v31 = vld [vmem:[#allocation2 + $0x78] sm:$0xff]  }
 0x11c   : > { %954 = vrot.lane.b32.xlu1 %v6134_v24, %s5870_s12  ;;  %5317 = vmatprep.subr.msk.bf16.mxu0 %vm1672_vm2, %v5398_v31  ;;  %v5404_v31 = vld [vmem:[#allocation2 + $0x60] sm:$0xff]  }
 0x11d   : > { %v5400_v42 = vld [vmem:[#allocation2 + $0x70] sm:$0xff]   ;;  %4824 = vmatpush3.bf16.xpose.msra.mxu0 %v1743_v36  ;;  %v6275_v36 = vpack.c.bf16 %v1468_v51, %v1465_v26  ;;  %v6292_v26 = vpack.c.bf16 %v6144_v28, %v6130_v22  ;;  %v5407_v22 = vld [vmem:[#allocation2 + $0x18] sm:$0xff]   ;;  %v5247_v28 = vpop.f32.mrf.mxu1  ;;  %v6309_v51 = vpack.c.bf16 %v5240_v34, %v6216_v20 }
 0x11e   : > { %2798 = vrot.lane.b32.xlu0 %v6056_v60, %s5870_s12  ;;  %5318 = vmatprep.subr.msk.bf16.mxu0 %vm1672_vm2, %v5400_v42  ;;  %v1734_v42 = vsel %vm1672_vm2, %v5405_v62, 0  ;;  %v1731_v54 = vsel %vm1672_vm2, %v5407_v22, 0  ;;  %v5409_v34 = vld [vmem:[#allocation2 + $0x10] sm:$0xff]   ;;  %v5413_v62 = vld [vmem:[#allocation2] sm:$0xff]  }
 0x11f   : > { %v6314_v38 = vpop.f32.mrf.mxu1  ;;  %v1728_v13 = vsel %vm1672_vm2, %v5409_v34, 0 }
 0x120   : > { %974 = vrot.lane.b32.xlu1 %v6220_v23, %s5870_s12 }
 0x121   : > { %v5248_v20 = vpop.f32.mrf.mxu1 }
 0x122   : > { %2802 = vrot.lane.b32.xlu0 %v6238_v46, %s5870_s12 }
 0x124   : > { %918 = vrot.lane.b32.xlu1 %v6024_v43, %s5870_s12 }
 0x125   : > { %4826 = vmatpush3.bf16.xpose.msra.mxu0 %v1740_v7  ;;  %v5408_v7 = vld [vmem:[#allocation2 + $0x50] sm:$0xff]  }
 0x126   : > { %2806 = vrot.lane.b32.xlu0 %v6247_v59, %s5870_s12  ;;  %5319 = vmatprep.subr.msk.bf16.mxu0 %vm1672_vm2, %v5402_v2  ;;  %v6327_v2 = vpack.c.bf16 %v5248_v20, %v5247_v28 }
 0x128   : > { %950 = vrot.lane.b32.xlu1 %v6140_v27, %s5870_s12 }
 0x12a   : > { %2810 = vrot.lane.b32.xlu0 %v6256_v11, %s5870_s12 }
 0x12c   : > { %2800 = vrot.lane.b32.xlu1 %v6050_v56, %s5870_s12 }
 0x12d   : > { %4828 = vmatpush3.bf16.xpose.msra.mxu0 %v1737_v32  ;;  %v1725_v32 = vsel %vm1672_vm2, %v5411_v1, 0 }
 0x12e   : > { %2814 = vrot.lane.b32.xlu0 %v6264_v17, %s5870_s12  ;;  %5320 = vmatprep.subr.msk.bf16.mxu0 %vm1672_vm2, %v5404_v31  ;;  %v5412_v31 = vld [vmem:[#allocation2 + $0x40] sm:$0xff]  }
 0x130   : > { %2804 = vrot.lane.b32.xlu1 %v6270_v25, %s5870_s12 }
 0x132   : > { %2818 = vrot.lane.b32.xlu0 %v6275_v36, %s5870_s12 }
 0x134   : > { %2808 = vrot.lane.b32.xlu1 %v6282_v5, %s5870_s12 }
 0x135   : > { %4830 = vmatpush3.bf16.xpose.msra.mxu0 %v1734_v42 }
 0x136   : > { %2822 = vrot.lane.b32.xlu0 %v6288_v4, %s5870_s12  ;;  %5321 = vmatprep.subr.msk.bf16.mxu0 %vm1672_vm2, %v5406_v10  ;;  %v1722_v10 = vsel %vm1672_vm2, %v5413_v62, 0 }
 0x138   : > { %2812 = vrot.lane.b32.xlu1 %v6292_v26, %s5870_s12 }
 0x13a   : > { %848 = vrot.lane.b32.xlu0 %v6202_v63, %s5871_s13 }
 0x13c   : > { %2816 = vrot.lane.b32.xlu1 %v6302_v16, %s5870_s12 }
 0x13d   : > { %4832 = vmatpush3.bf16.xpose.msra.mxu0 %v1731_v54 }
 0x13e   : > { %816 = vrot.lane.b32.xlu0 %v6088_v6, %s5871_s13  ;;  %5322 = vmatprep.subr.msk.bf16.mxu0 %vm1672_vm2, %v5408_v7 }
 0x140   : > { %2820 = vrot.lane.b32.xlu1 %v6309_v51, %s5870_s12 }
 0x142   : > { %844 = vrot.lane.b32.xlu0 %v6206_v8, %s5871_s13 }
 0x144   : > { %2824 = vrot.lane.b32.xlu1 %v6319_v55, %s5870_s12 }
 0x145   : > { %4834 = vmatpush3.bf16.xpose.msra.mxu0 %v1728_v13 }
 0x146   : > { %812 = vrot.lane.b32.xlu0 %v6094_v9, %s5871_s13  ;;  %5323 = vmatprep.subr.msk.bf16.mxu0 %vm1672_vm2, %v5410_v19 }
 0x148   : > { %2828 = vrot.lane.b32.xlu1 %v6327_v2, %s5870_s12 }
 0x14a   : > { %v921_v29 = vpop.permute.xlu0 %920  ;;  %840 = vrot.lane.b32.xlu0 %v6174_v44, %s5871_s13 }
 0x14b   : > { %1015 = vst.msk [vmem:[#allocation2 + $0x88] sm:$0xf] %vm755_vm1, %v921_v29 }
 0x14c   : > { %850 = vrot.lane.b32.xlu1 %v6212_v14, %s5871_s13 }
 0x14d   : > { %4836 = vmatpush3.bf16.xpose.msra.mxu0 %v1725_v32 }
 0x14e   : > { %v923_v48 = vpop.permute.xlu1 %922  ;;  %808 = vrot.lane.b32.xlu0 %v6054_v57, %s5871_s13  ;;  %5324 = vmatprep.subr.msk.bf16.mxu0 %vm1672_vm2, %v5412_v31 }
 0x14f   : > { %1016 = vst.msk [vmem:[#allocation2 + $0x8c] sm:$0xf] %vm755_vm1, %v923_v48 }
 0x150   : > { %818 = vrot.lane.b32.xlu1 %v6104_v12, %s5871_s13 }
 0x152   : > { %v929_v42 = vpop.permute.xlu0 %928  ;;  %836 = vrot.lane.b32.xlu0 %v6180_v49, %s5871_s13 }
 0x153   : > { %1019 = vst.msk [vmem:[#allocation2 + $0x98] sm:$0xf] %vm755_vm1, %v929_v42 }
 0x154   : > { %814 = vrot.lane.b32.xlu1 %v6110_v15, %s5871_s13 }
 0x155   : > { %4838 = vmatpush3.bf16.xpose.msra.mxu0 %v1722_v10 }
 0x156   : > { %v925_v22 = vpop.permute.xlu0 %924  ;;  %v931_v28 = vpop.permute.xlu1 %930  ;;  %804 = vrot.lane.b32.xlu0 %v6060_v61, %s5871_s13 }
 0x157   : > { %1017 = vst.msk [vmem:[#allocation2 + $0x90] sm:$0xf] %vm755_vm1, %v925_v22  ;;  %1020 = vst.msk [vmem:[#allocation2 + $0x9c] sm:$0xf] %vm755_vm1, %v931_v28 }
 0x158   : > { %842 = vrot.lane.b32.xlu1 %v6188_v52, %s5871_s13 }
 0x15a   : > { %v927_v54 = vpop.permute.xlu1 %926  ;;  %v937_v7 = vpop.permute.xlu0 %936  ;;  %832 = vrot.lane.b32.xlu0 %v6148_v30, %s5871_s13 }
 0x15b   : > { %1018 = vst.msk [vmem:[#allocation2 + $0x94] sm:$0xf] %vm755_vm1, %v927_v54  ;;  %1023 = vst.msk [vmem:[#allocation2 + $0xa8] sm:$0xf] %vm755_vm1, %v937_v7 }
 0x15c   : > { %810 = vrot.lane.b32.xlu1 %v6072_v0, %s5871_s13  ;;  %4840 = vmatmul.mubr.msk.bf16.vlgmr.msra.gmra.mxu0 %vm1672_vm2, %v6056_v60 }
 0x15d   : > { %4841 = vmatprep.mubr.msk.bf16.mxu0 %vm1672_vm2, %v6050_v56 }
 0x15e   : > { %v933_v20 = vpop.permute.xlu0 %932  ;;  %v939_v34 = vpop.permute.xlu1 %938  ;;  %800 = vrot.lane.b32.xlu0 %v6030_v45, %s5871_s13 }
 0x15f   : > { %1021 = vst.msk [vmem:[#allocation2 + $0xa0] sm:$0xf] %vm755_vm1, %v933_v20  ;;  %1024 = vst.msk [vmem:[#allocation2 + $0xac] sm:$0xf] %vm755_vm1, %v939_v34 }
 0x160   : > { %838 = vrot.lane.b32.xlu1 %v6194_v58, %s5871_s13 }
 0x162   : > { %v935_v13 = vpop.permute.xlu1 %934  ;;  %v945_v19 = vpop.permute.xlu0 %944  ;;  %828 = vrot.lane.b32.xlu0 %v6154_v33, %s5871_s13 }
 0x163   : > { %1022 = vst.msk [vmem:[#allocation2 + $0xa4] sm:$0xf] %vm755_vm1, %v935_v13  ;;  %1027 = vst.msk [vmem:[#allocation2 + $0xb8] sm:$0xf] %vm755_vm1, %v945_v19 }
 0x164   : > { %806 = vrot.lane.b32.xlu1 %v6078_v3, %s5871_s13  ;;  %4842 = vmatmul.mubr.msk.bf16.gmra.mxu0 %vm1672_vm2, %v6050_v56 }
 0x165   : > { %4843 = vmatprep.mubr.msk.bf16.mxu0 %vm1672_vm2, %v6238_v46 }
 0x166   : > { %v941_v60 = vpop.permute.xlu0 %940  ;;  %796 = vrot.lane.b32.xlu0 %v6034_v47, %s5871_s13 }
 0x167   : > { %1025 = vst.msk [vmem:[#allocation2 + $0xb0] sm:$0xf] %vm755_vm1, %v941_v60 }
 0x168   : > { %v943_v1 = vpop.permute.xlu1 %942  ;;  %834 = vrot.lane.b32.xlu1 %v6160_v35, %s5871_s13 }
 0x169   : > { %1026 = vst.msk [vmem:[#allocation2 + $0xb4] sm:$0xf] %vm755_vm1, %v943_v1 }
 0x16a   : > { %v947_v29 = vpop.permute.xlu0 %946  ;;  %824 = vrot.lane.b32.xlu0 %v6118_v18, %s5871_s13 }
 0x16b   : > { %1028 = vst.msk [vmem:[#allocation2 + $0xbc] sm:$0xf] %vm755_vm1, %v947_v29 }
 0x16c   : > { %802 = vrot.lane.b32.xlu1 %v6040_v50, %s5871_s13  ;;  %4844 = vmatmul.mubr.msk.bf16.gmra.mxu0 %vm1672_vm2, %v6238_v46 }
 0x16d   : > { %4845 = vmatprep.mubr.msk.bf16.mxu0 %vm1672_vm2, %v6270_v25 }
 0x16e   : > { %v953_v56 = vpop.permute.xlu0 %952  ;;  %792 = vrot.lane.b32.xlu0 %v6010_v37, %s5871_s13 }
 0x16f   : > { %1031 = vst.msk [vmem:[#allocation2 + $0xc8] sm:$0xf] %vm755_vm1, %v953_v56 }
 0x170   : > { %830 = vrot.lane.b32.xlu1 %v6166_v40, %s5871_s13 }
 0x172   : > { %v961_v32 = vpop.permute.xlu0 %960  ;;  %820 = vrot.lane.b32.xlu0 %v6126_v21, %s5871_s13 }
 0x173   : > { %1035 = vst.msk [vmem:[#allocation2 + $0xd8] sm:$0xf] %vm755_vm1, %v961_v32 }
 0x174   : > { %798 = vrot.lane.b32.xlu1 %v6044_v53, %s5871_s13  ;;  %4846 = vmatmul.mubr.msk.bf16.gmra.mxu0 %vm1672_vm2, %v6270_v25 }
 0x175   : > { %4847 = vmatprep.mubr.msk.bf16.mxu0 %vm1672_vm2, %v6247_v59 }
 0x176   : > { %v957_v46 = vpop.permute.xlu0 %956  ;;  %v963_v31 = vpop.permute.xlu1 %962  ;;  %788 = vrot.lane.b32.xlu0 %v6014_v39, %s5871_s13 }
 0x177   : > { %1033 = vst.msk [vmem:[#allocation2 + $0xd0] sm:$0xf] %vm755_vm1, %v957_v46  ;;  %1036 = vst.msk [vmem:[#allocation2 + $0xdc] sm:$0xf] %vm755_vm1, %v963_v31 }
 0x178   : > { %826 = vrot.lane.b32.xlu1 %v6134_v24, %s5871_s13 }
 0x17a   : > { %v959_v48 = vpop.permute.xlu1 %958  ;;  %v969_v62 = vpop.permute.xlu0 %968  ;;  %1107 = vrot.lane.b32.xlu0 %v6212_v14, %s5872_s14 }
 0x17b   : > { %1034 = vst.msk [vmem:[#allocation2 + $0xd4] sm:$0xf] %vm755_vm1, %v959_v48  ;;  %1039 = vst.msk [vmem:[#allocation2 + $0xe8] sm:$0xf] %vm755_vm1, %v969_v62 }
 0x17c   : > { %794 = vrot.lane.b32.xlu1 %v6020_v41, %s5871_s13  ;;  %4848 = vmatmul.mubr.msk.bf16.gmra.mxu0 %vm1672_vm2, %v6247_v59 }
 0x17d   : > { %4849 = vmatprep.mubr.msk.bf16.mxu0 %vm1672_vm2, %v6282_v5 }
 0x17e   : > { %v965_v25 = vpop.permute.xlu0 %964  ;;  %v971_v42 = vpop.permute.xlu1 %970  ;;  %1101 = vrot.lane.b32.xlu0 %v6206_v8, %s5872_s14  ;;  %v5422_v29 = vld [vmem:[#allocation2 + $0xd8] sm:$0xff]  }
 0x17f   : > { %1037 = vst.msk [vmem:[#allocation2 + $0xe0] sm:$0xf] %vm755_vm1, %v965_v25  ;;  %1040 = vst.msk [vmem:[#allocation2 + $0xec] sm:$0xf] %vm755_vm1, %v971_v42 }
 0x180   : > { %822 = vrot.lane.b32.xlu1 %v6140_v27, %s5871_s13 }
 0x182   : > { %v967_v14 = vpop.permute.xlu1 %966  ;;  %1069 = vrot.lane.b32.xlu0 %v6094_v9, %s5872_s14  ;;  %v1500_v9 = vpop.f32.mrf.mxu1  ;;  %v5424_v32 = vld [vmem:[#allocation2 + $0xd0] sm:$0xff]  }
 0x183   : > { %1038 = vst.msk [vmem:[#allocation2 + $0xe4] sm:$0xf] %vm755_vm1, %v967_v14 }
 0x184   : > { %v973_v59 = vpop.permute.xlu0 %972  ;;  %790 = vrot.lane.b32.xlu1 %v6024_v43, %s5871_s13  ;;  %4850 = vmatmul.mubr.msk.bf16.gmra.mxu0 %vm1672_vm2, %v6282_v5  ;;  %v6455_v5 = vpack.c.bf16 %v1500_v9, %v6314_v38 }
 0x185   : > { %1041 = vst.msk [vmem:[#allocation2 + $0xf0] sm:$0xf] %vm755_vm1, %v973_v59  ;;  %4851 = vmatprep.mubr.msk.bf16.mxu0 %vm1672_vm2, %v6256_v11 }
 0x186   : > { %v977_v8 = vpop.permute.xlu1 %976  ;;  %1097 = vrot.lane.b32.xlu0 %v6174_v44, %s5872_s14 }
 0x187   : > { %1043 = vst.msk [vmem:[#allocation2 + $0xf8] sm:$0xf] %vm755_vm1, %v977_v8 }
 0x188   : > { %v917_v10 = vpop.permute.xlu0 %916  ;;  %1105 = vrot.lane.b32.xlu1 %v6202_v63, %s5872_s14 }
 0x189   : > { %1013 = vst.msk [vmem:[#allocation2 + $0x80] sm:$0xf] %vm755_vm1, %v917_v10 }
 0x18a   : > { %v979_v22 = vpop.permute.xlu1 %978  ;;  %1065 = vrot.lane.b32.xlu0 %v6054_v57, %s5872_s14  ;;  %v5420_v19 = vld [vmem:[#allocation2 + $0xe0] sm:$0xff]  }
 0x18b   : > { %1044 = vst.msk [vmem:[#allocation2 + $0xfc] sm:$0xf] %vm755_vm1, %v979_v22 }
 0x18c   : > { %v949_v44 = vpop.permute.xlu0 %948  ;;  %1073 = vrot.lane.b32.xlu1 %v6088_v6, %s5872_s14  ;;  %4852 = vmatmul.mubr.msk.bf16.gmra.mxu0 %vm1672_vm2, %v6256_v11  ;;  %v5415_v6 = vld [vmem:[#allocation2 + $0xb8] sm:$0xff]  }
 0x18d   : > { %1029 = vst.msk [vmem:[#allocation2 + $0xc0] sm:$0xf] %vm755_vm1, %v949_v44  ;;  %4853 = vmatprep.mubr.msk.bf16.mxu0 %vm1672_vm2, %v6292_v26 }
 0x18e   : > { %v955_v63 = vpop.permute.xlu1 %954  ;;  %2826 = vrot.lane.b32.xlu0 %v6455_v5, %s5870_s12 }
 0x18f   : > { %1032 = vst.msk [vmem:[#allocation2 + $0xcc] sm:$0xf] %vm755_vm1, %v955_v63 }
 0x190   : > { %v6468_v57 = vpop.permute.xlu0 %2798  ;;  %1075 = vrot.lane.b32.xlu1 %v6104_v12, %s5872_s14  ;;  %v2980_v12 = vsel %vm1672_vm2, %v5415_v6, 0 }
 0x192   : > { %v975_v38 = vpop.permute.xlu1 %974  ;;  %1093 = vrot.lane.b32.xlu0 %v6180_v49, %s5872_s14  ;;  %v5414_v11 = vld [vmem:[#allocation2 + $0xf8] sm:$0xff]  }
 0x193   : > { %1042 = vst.msk [vmem:[#allocation2 + $0xf4] sm:$0xf] %vm755_vm1, %v975_v38  ;;  %5325 = vmatprep.subr.msk.bf16.mxu0 %vm1672_vm2, %v5414_v11 }
 0x194   : > { %v6475_v28 = vpop.permute.xlu0 %2802  ;;  %1071 = vrot.lane.b32.xlu1 %v6110_v15, %s5872_s14  ;;  %4854 = vmatmul.mubr.msk.bf16.gmra.mxu0 %vm1672_vm2, %v6292_v26  ;;  %v5417_v15 = vld [vmem:[#allocation2 + $0xb0] sm:$0xff]  }
 0x195   : > { %4984 = vmatpush3.bf16.xpose.msra.mxu0 %v2980_v12  ;;  %4855 = vmatprep.mubr.msk.bf16.mxu0 %vm1672_vm2, %v6264_v17 }
 0x196   : > { %v919_v54 = vpop.permute.xlu1 %918  ;;  %1061 = vrot.lane.b32.xlu0 %v6060_v61, %s5872_s14  ;;  %v2977_v61 = vsel %vm1672_vm2, %v5417_v15, 0  ;;  %v5426_v62 = vld [vmem:[#allocation2 + $0xc8] sm:$0xff]  }
 0x197   : > { %1014 = vst.msk [vmem:[#allocation2 + $0x84] sm:$0xf] %vm755_vm1, %v919_v54 }
 0x198   : > { %v6488_v49 = vpop.permute.xlu0 %2806  ;;  %1099 = vrot.lane.b32.xlu1 %v6188_v52, %s5872_s14  ;;  %v5418_v52 = vld [vmem:[#allocation2 + $0xe8] sm:$0xff]  }
 0x19a   : > { %v951_v7 = vpop.permute.xlu1 %950  ;;  %1089 = vrot.lane.b32.xlu0 %v6148_v30, %s5872_s14  ;;  %v5416_v26 = vld [vmem:[#allocation2 + $0xf0] sm:$0xff]   ;;  %v5419_v30 = vld [vmem:[#allocation2 + $0xa8] sm:$0xff]  }
 0x19b   : > { %1030 = vst.msk [vmem:[#allocation2 + $0xc4] sm:$0xf] %vm755_vm1, %v951_v7  ;;  %5326 = vmatprep.subr.msk.bf16.mxu0 %vm1672_vm2, %v5416_v26 }
 0x19c   : > { %v6495_v20 = vpop.permute.xlu0 %2810  ;;  %1067 = vrot.lane.b32.xlu1 %v6072_v0, %s5872_s14  ;;  %4856 = vmatmul.mubr.msk.bf16.gmra.mxu0 %vm1672_vm2, %v6264_v17 }
 0x19d   : > { %4986 = vmatpush3.bf16.xpose.msra.mxu0 %v2977_v61  ;;  %4857 = vmatprep.mubr.msk.bf16.mxu0 %vm1672_vm2, %v6302_v16 }
 0x19e   : > { %v6503_v34 = vpop.permute.xlu1 %2800  ;;  %1057 = vrot.lane.b32.xlu0 %v6030_v45, %s5872_s14  ;;  %5327 = vmatprep.subr.msk.bf16.mxu0 %vm1672_vm2, %v5418_v52  ;;  %v2974_v45 = vsel %vm1672_vm2, %v5419_v30, 0 }
 0x1a0   : > { %v6510_v0 = vpop.permute.xlu0 %2814  ;;  %1095 = vrot.lane.b32.xlu1 %v6194_v58, %s5872_s14  ;;  %v5421_v58 = vld [vmem:[#allocation2 + $0xa0] sm:$0xff]  }
 0x1a2   : > { %v6514_v17 = vpop.permute.xlu1 %2804  ;;  %1085 = vrot.lane.b32.xlu0 %v6154_v33, %s5872_s14  ;;  %v5428_v59 = vld [vmem:[#allocation2 + $0xc0] sm:$0xff]  }
 0x1a4   : > { %v6518_v13 = vpop.permute.xlu0 %2818  ;;  %846 = vrot.lane.b32.xlu1 %v6220_v23, %s5871_s13  ;;  %4858 = vmatmul.mubr.msk.bf16.gmra.mxu0 %vm1672_vm2, %v6302_v16 }
 0x1a5   : > { %4988 = vmatpush3.bf16.xpose.msra.mxu0 %v2974_v45  ;;  %4859 = vmatprep.mubr.msk.bf16.mxu0 %vm1672_vm2, %v6275_v36 }
 0x1a6   : > { %v6525_v60 = vpop.permute.xlu1 %2808  ;;  %1053 = vrot.lane.b32.xlu0 %v6034_v47, %s5872_s14  ;;  %5328 = vmatprep.subr.msk.bf16.mxu0 %vm1672_vm2, %v5420_v19  ;;  %v2971_v47 = vsel %vm1672_vm2, %v5421_v58, 0 }
 0x1a8   : > { %v6532_v33 = vpop.permute.xlu0 %2822  ;;  %1103 = vrot.lane.b32.xlu1 %v6220_v23, %s5872_s14 }
 0x1aa   : > { %v6536_v1 = vpop.permute.xlu1 %2812  ;;  %1081 = vrot.lane.b32.xlu0 %v6118_v18, %s5872_s14  ;;  %v5423_v18 = vld [vmem:[#allocation2 + $0x98] sm:$0xff]  }
 0x1ac   : > { %v849_v16 = vpop.permute.xlu0 %848  ;;  %1063 = vrot.lane.b32.xlu1 %v6078_v3, %s5872_s14  ;;  %4860 = vmatmul.mubr.msk.bf16.gmra.mxu0 %vm1672_vm2, %v6275_v36 }
 0x1ad   : > { %914 = vst.msk [vmem:[#allocation3 + $0x78] sm:$0xf] %vm755_vm1, %v849_v16  ;;  %4990 = vmatpush3.bf16.xpose.msra.mxu0 %v2971_v47  ;;  %4861 = vmatprep.mubr.msk.bf16.mxu0 %vm1672_vm2, %v6309_v51 }
 0x1ae   : > { %v6546_v23 = vpop.permute.xlu1 %2816  ;;  %1049 = vrot.lane.b32.xlu0 %v6010_v37, %s5872_s14  ;;  %5329 = vmatprep.subr.msk.bf16.mxu0 %vm1672_vm2, %v5422_v29  ;;  %v2968_v37 = vsel %vm1672_vm2, %v5423_v18, 0 }
 0x1b0   : > { %v817_v3 = vpop.permute.xlu0 %816  ;;  %1091 = vrot.lane.b32.xlu1 %v6160_v35, %s5872_s14 }
 0x1b1   : > { %898 = vst.msk [vmem:[#allocation3 + $0x38] sm:$0xf] %vm755_vm1, %v817_v3 }
 0x1b2   : > { %v6556_v36 = vpop.permute.xlu1 %2820 }
 0x1b4   : > { %v845_v56 = vpop.permute.xlu0 %844  ;;  %1059 = vrot.lane.b32.xlu1 %v6040_v50, %s5872_s14  ;;  %4862 = vmatmul.mubr.msk.bf16.gmra.mxu0 %vm1672_vm2, %v6309_v51  ;;  %v5425_v50 = vld [vmem:[#allocation2 + $0x90] sm:$0xff]  }
 0x1b5   : > { %912 = vst.msk [vmem:[#allocation3 + $0x70] sm:$0xf] %vm755_vm1, %v845_v56  ;;  %4992 = vmatpush3.bf16.xpose.msra.mxu0 %v2968_v37  ;;  %4863 = vmatprep.mubr.msk.bf16.mxu0 %vm1672_vm2, %v6288_v4  ;;  %v2965_v48 = vsel %vm1672_vm2, %v5425_v50, 0 }
 0x1b6   : > { %v6564_v46 = vpop.permute.xlu1 %2824  ;;  %5330 = vmatprep.subr.msk.bf16.mxu0 %vm1672_vm2, %v5424_v32 }
 0x1b8   : > { %v813_v35 = vpop.permute.xlu0 %812  ;;  %1087 = vrot.lane.b32.xlu1 %v6166_v40, %s5872_s14 }
 0x1b9   : > { %896 = vst.msk [vmem:[#allocation3 + $0x30] sm:$0xf] %vm755_vm1, %v813_v35 }
 0x1ba   : > { %v6572_v31 = vpop.permute.xlu1 %2828 }
 0x1bc   : > { %v841_v51 = vpop.permute.xlu0 %840  ;;  %1055 = vrot.lane.b32.xlu1 %v6044_v53, %s5872_s14  ;;  %4864 = vmatmul.mubr.msk.bf16.gmra.mxu0 %vm1672_vm2, %v6288_v4  ;;  %v5427_v53 = vld [vmem:[#allocation2 + $0x88] sm:$0xff]  }
 0x1bd   : > { %910 = vst.msk [vmem:[#allocation3 + $0x68] sm:$0xf] %vm755_vm1, %v841_v51  ;;  %4994 = vmatpush3.bf16.xpose.msra.mxu0 %v2965_v48  ;;  %4865 = vmatprep.mubr.msk.bf16.mxu0 %vm1672_vm2, %v6319_v55  ;;  %v2962_v14 = vsel %vm1672_vm2, %v5427_v53, 0 }
 0x1be   : > { %v851_v25 = vpop.permute.xlu1 %850  ;;  %5331 = vmatprep.subr.msk.bf16.mxu0 %vm1672_vm2, %v5426_v62 }
 0x1bf   : > { %915 = vst.msk [vmem:[#allocation3 + $0x7c] sm:$0xf] %vm755_vm1, %v851_v25 }
 0x1c0   : > { %v809_v40 = vpop.permute.xlu0 %808  ;;  %1083 = vrot.lane.b32.xlu1 %v6134_v24, %s5872_s14 }
 0x1c1   : > { %894 = vst.msk [vmem:[#allocation3 + $0x28] sm:$0xf] %vm755_vm1, %v809_v40 }
 0x1c2   : > { %v819_v4 = vpop.permute.xlu1 %818 }
 0x1c3   : > { %899 = vst.msk [vmem:[#allocation3 + $0x3c] sm:$0xf] %vm755_vm1, %v819_v4 }
 0x1c4   : > { %v837_v42 = vpop.permute.xlu0 %836  ;;  %1051 = vrot.lane.b32.xlu1 %v6020_v41, %s5872_s14  ;;  %4866 = vmatmul.mubr.msk.bf16.gmra.mxu0 %vm1672_vm2, %v6319_v55  ;;  %v5431_v41 = vld [vmem:[#allocation2 + $0x80] sm:$0xff]  }
 0x1c5   : > { %908 = vst.msk [vmem:[#allocation3 + $0x60] sm:$0xf] %vm755_vm1, %v837_v42  ;;  %4996 = vmatpush3.bf16.xpose.msra.mxu0 %v2962_v14  ;;  %4867 = vmatprep.mubr.msk.bf16.mxu0 %vm1672_vm2, %v6455_v5  ;;  %v2959_v44 = vsel %vm1672_vm2, %v5431_v41, 0 }
 0x1c6   : > { %v815_v24 = vpop.permute.xlu1 %814  ;;  %v5429_v8 = vld [vmem:[#allocation3 + $0x78] sm:$0xff]   ;;  %5332 = vmatprep.subr.msk.bf16.mxu0 %vm1672_vm2, %v5428_v59 }
 0x1c7   : > { %897 = vst.msk [vmem:[#allocation3 + $0x34] sm:$0xf] %vm755_vm1, %v815_v24  ;;  %4871 = vmatprep.subr.bf16.mxu1 %v5429_v8 }
 0x1c8   : > { %v805_v9 = vpop.permute.xlu0 %804 }
 0x1c9   : > { %892 = vst.msk [vmem:[#allocation3 + $0x20] sm:$0xf] %vm755_vm1, %v805_v9 }
 0x1ca   : > { %v843_v10 = vpop.permute.xlu1 %842  ;;  %v5430_v55 = vld [vmem:[#allocation3 + $0x38] sm:$0xff]  }
 0x1cb   : > { %911 = vst.msk [vmem:[#allocation3 + $0x6c] sm:$0xf] %vm755_vm1, %v843_v10  ;;  %4872 = vmatpush3.bf16.msra.mxu1 %v5430_v55 }
 0x1cc   : > { %v833_v22 = vpop.permute.xlu0 %832  ;;  %4868 = vmatmul.mubr.msk.bf16.gmra.mxu0 %vm1672_vm2, %v6455_v5 }
 0x1cd   : > { %906 = vst.msk [vmem:[#allocation3 + $0x58] sm:$0xf] %vm755_vm1, %v833_v22  ;;  %4998 = vmatpush3.bf16.xpose.msra.mxu0 %v2959_v44  ;;  %4869 = vmatprep.mubr.msk.bf16.mxu0 %vm1672_vm2, %v6327_v2 }
 0x1ce   : > { %v811_v63 = vpop.permute.xlu1 %810  ;;  %v5433_v59 = vld [vmem:[#allocation3 + $0x30] sm:$0xff]  }
 0x1cf   : > { %895 = vst.msk [vmem:[#allocation3 + $0x2c] sm:$0xf] %vm755_vm1, %v811_v63 }
 0x1d0   : > { %v801_v6 = vpop.permute.xlu0 %800 }
 0x1d1   : > { %890 = vst.msk [vmem:[#allocation3 + $0x18] sm:$0xf] %vm755_vm1, %v801_v6 }
 0x1d2   : > { %v839_v38 = vpop.permute.xlu1 %838  ;;  %v5434_v9 = vld [vmem:[#allocation3 + $0x68] sm:$0xff]  }
 0x1d3   : > { %909 = vst.msk [vmem:[#allocation3 + $0x64] sm:$0xf] %vm755_vm1, %v839_v38 }
 0x1d4   : > { %v829_v11 = vpop.permute.xlu0 %828  ;;  %4870 = vmatmul.mubr.msk.bf16.gmra.mxu0 %vm1672_vm2, %v6327_v2 }
 0x1d5   : > { %904 = vst.msk [vmem:[#allocation3 + $0x50] sm:$0xf] %vm755_vm1, %v829_v11  ;;  %4999 = vmatprep.mubr.msk.bf16.mxu0 %vm1672_vm2, %v6468_v57 }
 0x1d6   : > { %v807_v5 = vpop.permute.xlu1 %806  ;;  %v5435_v55 = vld [vmem:[#allocation3 + $0x28] sm:$0xff]  }
 0x1d7   : > { %893 = vst.msk [vmem:[#allocation3 + $0x24] sm:$0xf] %vm755_vm1, %v807_v5 }
 0x1d8   : > { %v797_v12 = vpop.permute.xlu0 %796 }
 0x1d9   : > { %888 = vst.msk [vmem:[#allocation3 + $0x10] sm:$0xf] %vm755_vm1, %v797_v12 }
 0x1da   : > { %v835_v54 = vpop.permute.xlu1 %834  ;;  %v5436_v44 = vld [vmem:[#allocation3 + $0x60] sm:$0xff]  }
 0x1db   : > { %907 = vst.msk [vmem:[#allocation3 + $0x5c] sm:$0xf] %vm755_vm1, %v835_v54 }
 0x1dc   : > { %v825_v15 = vpop.permute.xlu0 %824  ;;  %5000 = vmatmul.mubr.msk.bf16.vlgmr.msra.gmra.mxu0 %vm1672_vm2, %v6468_v57 }
 0x1dd   : > { %902 = vst.msk [vmem:[#allocation3 + $0x48] sm:$0xf] %vm755_vm1, %v825_v15  ;;  %5001 = vmatprep.mubr.msk.bf16.mxu0 %vm1672_vm2, %v6503_v34 }
 0x1de   : > { %v803_v7 = vpop.permute.xlu1 %802  ;;  %v5437_v11 = vld [vmem:[#allocation3 + $0x20] sm:$0xff]  }
 0x1df   : > { %891 = vst.msk [vmem:[#allocation3 + $0x1c] sm:$0xf] %vm755_vm1, %v803_v7 }
 0x1e0   : > { %v793_v2 = vpop.permute.xlu0 %792 }
 0x1e1   : > { %886 = vst.msk [vmem:[#allocation3 + $0x8] sm:$0xf] %vm755_vm1, %v793_v2 }
 0x1e2   : > { %v831_v26 = vpop.permute.xlu1 %830  ;;  %v5438_v12 = vld [vmem:[#allocation3 + $0x58] sm:$0xff]  }
 0x1e3   : > { %905 = vst.msk [vmem:[#allocation3 + $0x54] sm:$0xf] %vm755_vm1, %v831_v26 }
 0x1e4   : > { %v821_v61 = vpop.permute.xlu0 %820  ;;  %5002 = vmatmul.mubr.msk.bf16.gmra.mxu0 %vm1672_vm2, %v6503_v34 }
 0x1e5   : > { %900 = vst.msk [vmem:[#allocation3 + $0x40] sm:$0xf] %vm755_vm1, %v821_v61  ;;  %5003 = vmatprep.mubr.msk.bf16.mxu0 %vm1672_vm2, %v6475_v28 }
 0x1e6   : > { %v799_v52 = vpop.permute.xlu1 %798  ;;  %v5439_v7 = vld [vmem:[#allocation3 + $0x18] sm:$0xff]  }
 0x1e7   : > { %889 = vst.msk [vmem:[#allocation3 + $0x14] sm:$0xf] %vm755_vm1, %v799_v52 }
 0x1e8   : > { %v789_v57 = vpop.permute.xlu0 %788 }
 0x1e9   : > { %884 = vst.msk [vmem:[#allocation3] sm:$0xf] %vm755_vm1, %v789_v57 }
 0x1ea   : > { %v827_v30 = vpop.permute.xlu1 %826  ;;  %v5440_v26 = vld [vmem:[#allocation3 + $0x50] sm:$0xff]  }
 0x1eb   : > { %903 = vst.msk [vmem:[#allocation3 + $0x4c] sm:$0xf] %vm755_vm1, %v827_v30 }
 0x1ec   : > { %v1108_v45 = vpop.permute.xlu0 %1107  ;;  %5004 = vmatmul.mubr.msk.bf16.gmra.mxu0 %vm1672_vm2, %v6475_v28 }
 0x1ed   : > { %1173 = vst.msk [vmem:[#allocation3 + $0xfc] sm:$0xf] %vm755_vm1, %v1108_v45  ;;  %5005 = vmatprep.mubr.msk.bf16.mxu0 %vm1672_vm2, %v6514_v17 }
 0x1ee   : > { %v795_v19 = vpop.permute.xlu1 %794  ;;  %v5441_v30 = vld [vmem:[#allocation3 + $0x10] sm:$0xff]  }
 0x1ef   : > { %887 = vst.msk [vmem:[#allocation3 + $0xc] sm:$0xf] %vm755_vm1, %v795_v19 }
 0x1f0   : > { %v1102_v34 = vpop.permute.xlu0 %1101 }
 0x1f1   : > { %1170 = vst.msk [vmem:[#allocation3 + $0xf0] sm:$0xf] %vm755_vm1, %v1102_v34 }
 0x1f2   : > { %v823_v58 = vpop.permute.xlu1 %822  ;;  %v5442_v19 = vld [vmem:[#allocation3 + $0x48] sm:$0xff]  }
 0x1f3   : > { %901 = vst.msk [vmem:[#allocation3 + $0x44] sm:$0xf] %vm755_vm1, %v823_v58 }
 0x1f4   : > { %v1070_v16 = vpop.permute.xlu0 %1069  ;;  %5006 = vmatmul.mubr.msk.bf16.gmra.mxu0 %vm1672_vm2, %v6514_v17 }
 0x1f5   : > { %1154 = vst.msk [vmem:[#allocation3 + $0xb0] sm:$0xf] %vm755_vm1, %v1070_v16  ;;  %5007 = vmatprep.mubr.msk.bf16.mxu0 %vm1672_vm2, %v6488_v49 }
 0x1f6   : > { %v791_v47 = vpop.permute.xlu1 %790  ;;  %v5443_v16 = vld [vmem:[#allocation3 + $0x8] sm:$0xff]  }
 0x1f7   : > { %885 = vst.msk [vmem:[#allocation3 + $0x4] sm:$0xf] %vm755_vm1, %v791_v47 }
 0x1f8   : > { %v1098_v28 = vpop.permute.xlu0 %1097 }
 0x1f9   : > { %1168 = vst.msk [vmem:[#allocation3 + $0xe8] sm:$0xf] %vm755_vm1, %v1098_v28 }
 0x1fa   : > { %v1106_v29 = vpop.permute.xlu1 %1105  ;;  %v5444_v28 = vld [vmem:[#allocation3 + $0x40] sm:$0xff]  }
 0x1fb   : > { %1172 = vst.msk [vmem:[#allocation3 + $0xf8] sm:$0xf] %vm755_vm1, %v1106_v29 }
 0x1fc   : > { %v1066_v3 = vpop.permute.xlu0 %1065  ;;  %5008 = vmatmul.mubr.msk.bf16.gmra.mxu0 %vm1672_vm2, %v6488_v49 }
 0x1fd   : > { %1152 = vst.msk [vmem:[#allocation3 + $0xa8] sm:$0xf] %vm755_vm1, %v1066_v3  ;;  %5009 = vmatprep.mubr.msk.bf16.mxu0 %vm1672_vm2, %v6525_v60 }
 0x1fe   : > { %v1074_v18 = vpop.permute.xlu1 %1073 }
 0x1ff   : > { %1156 = vst.msk [vmem:[#allocation3 + $0xb8] sm:$0xf] %vm755_vm1, %v1074_v18 }
 0x200   : > { %v6655_v17 = vpop.permute.xlu0 %2826 }
 0x202   : > { %v1076_v56 = vpop.permute.xlu1 %1075 }
 0x203   : > { %1157 = vst.msk [vmem:[#allocation3 + $0xbc] sm:$0xf] %vm755_vm1, %v1076_v56  ;;  %v5445_v56 = vld [vmem:[#allocation3] sm:$0xff]  }
 0x204   : > { %v1094_v37 = vpop.permute.xlu0 %1093  ;;  %5010 = vmatmul.mubr.msk.bf16.gmra.mxu0 %vm1672_vm2, %v6525_v60 }
 0x205   : > { %1166 = vst.msk [vmem:[#allocation3 + $0xe0] sm:$0xf] %vm755_vm1, %v1094_v37  ;;  %5011 = vmatprep.mubr.msk.bf16.mxu0 %vm1672_vm2, %v6495_v20 }
 0x206   : > { %v1072_v32 = vpop.permute.xlu1 %1071 }
 0x207   : > { %1155 = vst.msk [vmem:[#allocation3 + $0xb4] sm:$0xf] %vm755_vm1, %v1072_v32  ;;  %v5446_v32 = vld [vmem:[#allocation3 + $0xf8] sm:$0xff]  }
 0x208   : > { %v1062_v49 = vpop.permute.xlu0 %1061 }
 0x209   : > { %1150 = vst.msk [vmem:[#allocation3 + $0xa0] sm:$0xf] %vm755_vm1, %v1062_v49 }
 0x20a   : > { %v1100_v35 = vpop.permute.xlu1 %1099 }
 0x20b   : > { %1169 = vst.msk [vmem:[#allocation3 + $0xec] sm:$0xf] %vm755_vm1, %v1100_v35 }
 0x20c   : > { %v1090_v50 = vpop.permute.xlu0 %1089  ;;  %5012 = vmatmul.mubr.msk.bf16.gmra.mxu0 %vm1672_vm2, %v6495_v20 }
 0x20d   : > { %1164 = vst.msk [vmem:[#allocation3 + $0xd8] sm:$0xf] %vm755_vm1, %v1090_v50  ;;  %5013 = vmatprep.mubr.msk.bf16.mxu0 %vm1672_vm2, %v6536_v1 }
 0x20e   : > { %v1068_v51 = vpop.permute.xlu1 %1067 }
 0x20f   : > { %1153 = vst.msk [vmem:[#allocation3 + $0xac] sm:$0xf] %vm755_vm1, %v1068_v51 }
 0x210   : > { %v1058_v60 = vpop.permute.xlu0 %1057 }
 0x211   : > { %1148 = vst.msk [vmem:[#allocation3 + $0x98] sm:$0xf] %vm755_vm1, %v1058_v60 }
 0x212   : > { %v1096_v48 = vpop.permute.xlu1 %1095 }
 0x213   : > { %1167 = vst.msk [vmem:[#allocation3 + $0xe4] sm:$0xf] %vm755_vm1, %v1096_v48 }
 0x214   : > { %v1086_v62 = vpop.permute.xlu0 %1085  ;;  %5014 = vmatmul.mubr.msk.bf16.gmra.mxu0 %vm1672_vm2, %v6536_v1 }
 0x215   : > { %1162 = vst.msk [vmem:[#allocation3 + $0xd0] sm:$0xf] %vm755_vm1, %v1086_v62  ;;  %5015 = vmatprep.mubr.msk.bf16.mxu0 %vm1672_vm2, %v6510_v0 }
 0x216   : > { %v847_v25 = vpop.permute.xlu1 %846 }
 0x217   : > { %913 = vst.msk [vmem:[#allocation3 + $0x74] sm:$0xf] %vm755_vm1, %v847_v25 }
 0x218   : > { %v1054_v20 = vpop.permute.xlu0 %1053 }
 0x219   : > { %1146 = vst.msk [vmem:[#allocation3 + $0x90] sm:$0xf] %vm755_vm1, %v1054_v20 }
 0x21a   : > { %v1104_v40 = vpop.permute.xlu1 %1103 }
 0x21b   : > { %1171 = vst.msk [vmem:[#allocation3 + $0xf4] sm:$0xf] %vm755_vm1, %v1104_v40 }
 0x21c   : > { %v1082_v53 = vpop.permute.xlu0 %1081  ;;  %v6683_v4 = vpop.f32.mrf.mxu0  ;;  %5016 = vmatmul.mubr.msk.bf16.gmra.mxu0 %vm1672_vm2, %v6510_v0 }
 0x21d   : > { %1160 = vst.msk [vmem:[#allocation3 + $0xc8] sm:$0xf] %vm755_vm1, %v1082_v53  ;;  %5017 = vmatprep.mubr.msk.bf16.mxu0 %vm1672_vm2, %v6546_v23 }
 0x21e   : > { %v1064_v1 = vpop.permute.xlu1 %1063  ;;  %v5432_v42 = vld [vmem:[#allocation3 + $0x70] sm:$0xff]   ;;  %v6690_v14 = vpop.f32.mrf.mxu0 }
 0x21f   : > { %1151 = vst.msk [vmem:[#allocation3 + $0xa4] sm:$0xf] %vm755_vm1, %v1064_v1  ;;  %v1962_v24 = vmax.f32 %v6683_v4, %v6690_v14  ;;  %4873 = vmatprep.subr.bf16.mxu1 %v5432_v42 }
 0x220   : > { %v1050_v8 = vpop.permute.xlu0 %1049  ;;  %v6695_v41 = vpop.f32.mrf.mxu0  ;;  %4874 = vmatpush3.bf16.msra.mxu1 %v5433_v59 }
 0x221   : > { %1144 = vst.msk [vmem:[#allocation3 + $0x88] sm:$0xf] %vm755_vm1, %v1050_v8  ;;  %4875 = vmatprep.subr.bf16.mxu1 %v5434_v9  ;;  %1963 = vmax.xlane.f32.xlu0 %v1962_v24 }
 0x222   : > { %v1092_v0 = vpop.permute.xlu1 %1091  ;;  %v6698_v10 = vpop.f32.mrf.mxu0 }
 0x223   : > { %1165 = vst.msk [vmem:[#allocation3 + $0xdc] sm:$0xf] %vm755_vm1, %v1092_v0  ;;  %v1965_v22 = vmax.f32 %v6695_v41, %v6698_v10 }
 0x224   : > { %v6702_v63 = vpop.f32.mrf.mxu0  ;;  %4876 = vmatpush3.bf16.msra.mxu1 %v5435_v55  ;;  %5018 = vmatmul.mubr.msk.bf16.gmra.mxu0 %vm1672_vm2, %v6546_v23 }
 0x225   : > { %1966 = vmax.xlane.f32.xlu1 %v1965_v22  ;;  %4877 = vmatprep.subr.bf16.mxu1 %v5436_v44 }
 0x226   : > { %v1060_v6 = vpop.permute.xlu1 %1059  ;;  %v6707_v38 = vpop.f32.mrf.mxu0  ;;  %5019 = vmatprep.mubr.msk.bf16.mxu0 %vm1672_vm2, %v6518_v13 }
 0x227   : > { %1149 = vst.msk [vmem:[#allocation3 + $0x9c] sm:$0xf] %vm755_vm1, %v1060_v6  ;;  %v1968_v5 = vmax.f32 %v6702_v63, %v6707_v38 }
 0x228   : > { %v6713_v54 = vpop.f32.mrf.mxu0  ;;  %4878 = vmatpush3.bf16.msra.mxu1 %v5437_v11 }
 0x229   : > { %4879 = vmatprep.subr.bf16.mxu1 %v5438_v12  ;;  %1969 = vmax.xlane.f32.xlu0 %v1968_v5 }
 0x22a   : > { %v1088_v15 = vpop.permute.xlu1 %1087  ;;  %v6716_v23 = vpop.f32.mrf.mxu0 }
 0x22b   : > { %1163 = vst.msk [vmem:[#allocation3 + $0xd4] sm:$0xf] %vm755_vm1, %v1088_v15  ;;  %v1971_v2 = vmax.f32 %v6713_v54, %v6716_v23 }
 0x22c   : > { %v6720_v61 = vpop.f32.mrf.mxu0  ;;  %4880 = vmatpush3.bf16.msra.mxu1 %v5439_v7  ;;  %5020 = vmatmul.mubr.msk.bf16.gmra.mxu0 %vm1672_vm2, %v6518_v13 }
 0x22d   : > { %1972 = vmax.xlane.f32.xlu1 %v1971_v2  ;;  %4881 = vmatprep.subr.bf16.mxu1 %v5440_v26 }
 0x22e   : > { %v1056_v52 = vpop.permute.xlu1 %1055  ;;  %v6725_v57 = vpop.f32.mrf.mxu0  ;;  %5021 = vmatprep.mubr.msk.bf16.mxu0 %vm1672_vm2, %v6556_v36 }
 0x22f   : > { %1147 = vst.msk [vmem:[#allocation3 + $0x94] sm:$0xf] %vm755_vm1, %v1056_v52  ;;  %v1974_v45 = vmax.f32 %v6720_v61, %v6725_v57 }
 0x230   : > { %v6731_v34 = vpop.f32.mrf.mxu0  ;;  %4882 = vmatpush3.bf16.msra.mxu1 %v5441_v30 }
 0x231   : > { %4883 = vmatprep.subr.bf16.mxu1 %v5442_v19  ;;  %1975 = vmax.xlane.f32.xlu0 %v1974_v45 }
 0x232   : > { %v1084_v58 = vpop.permute.xlu1 %1083  ;;  %v6734_v13 = vpop.f32.mrf.mxu0 }
 0x233   : > { %1161 = vst.msk [vmem:[#allocation3 + $0xcc] sm:$0xf] %vm755_vm1, %v1084_v58  ;;  %v1977_v47 = vmax.f32 %v6731_v34, %v6734_v13 }
 0x234   : > { %v6738_v29 = vpop.f32.mrf.mxu0  ;;  %4884 = vmatpush3.bf16.msra.mxu1 %v5443_v16  ;;  %5022 = vmatmul.mubr.msk.bf16.gmra.mxu0 %vm1672_vm2, %v6556_v36 }
 0x235   : > { %1978 = vmax.xlane.f32.xlu1 %v1977_v47  ;;  %4885 = vmatprep.subr.bf16.mxu1 %v5444_v28 }
 0x236   : > { %v1052_v3 = vpop.permute.xlu1 %1051  ;;  %v6743_v18 = vpop.f32.mrf.mxu0  ;;  %5023 = vmatprep.mubr.msk.bf16.mxu0 %vm1672_vm2, %v6532_v33 }
 0x237   : > { %1145 = vst.msk [vmem:[#allocation3 + $0x8c] sm:$0xf] %vm755_vm1, %v1052_v3  ;;  %v1980_v37 = vmax.f32 %v6738_v29, %v6743_v18 }
 0x238   : > { %v6749_v49 = vpop.f32.mrf.mxu0  ;;  %4886 = vmatpush3.bf16.msra.mxu1 %v5445_v56 }
 0x239   : > { %5031 = vmatprep.subr.bf16.mxu1 %v5446_v32  ;;  %1981 = vmax.xlane.f32.xlu0 %v1980_v37 }
 0x23a   : > { %v6751_v36 = vpop.f32.mrf.mxu0 }
 0x23b   : > { %v1983_v35 = vmax.f32 %v6749_v49, %v6751_v36 }
 0x23c   : > { %v6755_v50 = vpop.f32.mrf.mxu0  ;;  %5024 = vmatmul.mubr.msk.bf16.gmra.mxu0 %vm1672_vm2, %v6532_v33 }
 0x23d   : > { %1984 = vmax.xlane.f32.xlu1 %v1983_v35  ;;  %5025 = vmatprep.mubr.msk.bf16.mxu0 %vm1672_vm2, %v6564_v46 }
 0x23e   : > { %v6761_v51 = vpop.f32.mrf.mxu0 }
 0x23f   : > { %v1986_v60 = vmax.f32 %v6755_v50, %v6761_v51 }
 0x240   : > { %v6765_v48 = vpop.f32.mrf.mxu0 }
 0x241   : > { %1987 = vmax.xlane.f32.xlu0 %v1986_v60 }
 0x242   : > { %v6767_v62 = vpop.f32.mrf.mxu0 }
 0x243   : > { %v1989_v25 = vmax.f32 %v6765_v48, %v6767_v62 }
 0x244   : > { %v6771_v20 = vpop.f32.mrf.mxu0  ;;  %5026 = vmatmul.mubr.msk.bf16.gmra.mxu0 %vm1672_vm2, %v6564_v46 }
 0x245   : > { %1990 = vmax.xlane.f32.xlu0 %v1989_v25  ;;  %5027 = vmatprep.mubr.msk.bf16.mxu0 %vm1672_vm2, %v6655_v17 }
 0x246   : > { %v6777_v33 = vpop.f32.mrf.mxu0 }
 0x247   : > { %v1992_v40 = vmax.f32 %v6771_v20, %v6777_v33 }
 0x248   : > { %v6781_v53 = vpop.f32.mrf.mxu0 }
 0x249   : > { %1993 = vmax.xlane.f32.xlu1 %v1992_v40 }
 0x24a   : > { %v6783_v1 = vpop.f32.mrf.mxu0 }
 0x24b   : > { %v1995_v42 = vmax.f32 %v6781_v53, %v6783_v1 }
 0x24c   : > { %v6787_v59 = vpop.f32.mrf.mxu0  ;;  %5028 = vmatmul.mubr.msk.bf16.gmra.mxu0 %vm1672_vm2, %v6655_v17 }
 0x24d   : > { %1996 = vmax.xlane.f32.xlu0 %v1995_v42  ;;  %5029 = vmatprep.mubr.msk.bf16.mxu0 %vm1672_vm2, %v6572_v31 }
 0x24e   : > { %v6793_v46 = vpop.f32.mrf.mxu0 }
 0x24f   : > { %v1998_v24 = vmax.f32 %v6787_v59, %v6793_v46 }
 0x250   : > { %v6797_v8 = vpop.f32.mrf.mxu0 }
 0x251   : > { %1999 = vmax.xlane.f32.xlu1 %v1998_v24 }
 0x252   : > { %v6799_v9 = vpop.f32.mrf.mxu0 }
 0x253   : > { %v2001_v0 = vmax.f32 %v6797_v8, %v6799_v9 }
 0x254   : > { %v6803_v55 = vpop.f32.mrf.mxu0  ;;  %5030 = vmatmul.mubr.msk.bf16.gmra.mxu0 %vm1672_vm2, %v6572_v31 }
 0x255   : > { %2002 = vmax.xlane.f32.xlu0 %v2001_v0 }
 0x256   : > { %v6807_v17 = vpop.f32.mrf.mxu0 }
 0x257   : > { %v2004_v56 = vmax.f32 %v6803_v55, %v6807_v17 }
 0x258   : > { %v6809_v22 = vpop.f32.mrf.mxu0 }
 0x25a   : > { %v6811_v44 = vpop.f32.mrf.mxu0 }
 0x25b   : > { %v2007_v35 = vmax.f32 %v6809_v22, %v6811_v44 }
 0x25c   : > { %v6813_v6 = vpop.f32.mrf.mxu0 }
 0x25d   : > { %7866 = vst [vmem:[#allocation4_spill] sm:$0xff] %v6813_v6 }
 0x25e   : > { %v6815_v11 = vpop.f32.mrf.mxu0 }
 0x25f   : > { %7867 = vst [vmem:[#allocation5_spill] sm:$0xff] %v6815_v11  ;;  %v2010_v60 = vmax.f32 %v6813_v6, %v6815_v11 }
 0x260   : > { %v6817_v5 = vpop.f32.mrf.mxu0 }
 0x262   : > { %v6819_v12 = vpop.f32.mrf.mxu0  ;;  %1079 = vrot.lane.b32.xlu1 %v6140_v27, %s5872_s14 }
 0x263   : > { %v2013_v42 = vmax.f32 %v6817_v5, %v6819_v12 }
 0x264   : > { %v6823_v15 = vpop.f32.mrf.mxu0 }
 0x265   : > { %7868 = vst [vmem:[#allocation6_spill] sm:$0xff] %v6823_v15 }
 0x266   : > { %v6825_v31 = vpop.f32.mrf.mxu0 }
 0x267   : > { %v2016_v24 = vmax.f32 %v6823_v15, %v6825_v31 }
 0x268   : > { %v6827_v7 = vpop.f32.mrf.mxu0 }
 0x269   : > { %7869 = vst [vmem:[#allocation7_spill] sm:$0xff] %v6827_v7 }
 0x26a   : > { %v6829_v2 = vpop.f32.mrf.mxu0 }
 0x26b   : > { %1077 = vrot.lane.b32.xlu0 %v6126_v21, %s5872_s14  ;;  %v2019_v6 = vmax.f32 %v6827_v7, %v6829_v2 }
 0x26c   : > { %v6833_v26 = vpop.f32.mrf.mxu0 }
 0x26d   : > { %7870 = vst [vmem:[#allocation8_spill] sm:$0xff] %v6833_v26 }
 0x26e   : > { %v6835_v52 = vpop.f32.mrf.mxu0 }
 0x26f   : > { %v2022_v11 = vmax.f32 %v6833_v26, %v6835_v52 }
 0x270   : > { %v6837_v30 = vpop.f32.mrf.mxu0 }
 0x271   : > { %7871 = vst [vmem:[#allocation9_spill] sm:$0xff] %v6837_v30 }
 0x272   : > { %v6839_v45 = vpop.f32.mrf.mxu0 }
 0x273   : > { %v2025_v15 = vmax.f32 %v6837_v30, %v6839_v45 }
 0x274   : > { %v6841_v27 = vpop.f32.mrf.mxu0 }
 0x275   : > { %7872 = vst [vmem:[#allocation10_spill] sm:$0xff] %v6841_v27 }
 0x276   : > { %v6843_v19 = vpop.f32.mrf.mxu0 }
 0x278   : > { %v6845_v58 = vpop.f32.mrf.mxu0 }
 0x279   : > { %7873 = vst [vmem:[#allocation11_spill] sm:$0xff] %v6845_v58 }
 0x27a   : > { %v6847_v16 = vpop.f32.mrf.mxu0 }
 0x27b   : > { %v2031_v26 = vmax.f32 %v6845_v58, %v6847_v16 }
 0x27c   : > { %v6849_v47 = vpop.f32.mrf.mxu0 }
 0x27e   : > { %v6851_v28 = vpop.f32.mrf.mxu0 }
 0x27f   : > { %7874 = vst [vmem:[#allocation12_spill] sm:$0xff] %v6851_v28 }
 0x280   : > { %v6853_v21 = vpop.f32.mrf.mxu0 }
 0x281   : > { %7875 = vst [vmem:[#allocation13_spill] sm:$0xff] %v6853_v21 }
 0x282   : > { %v6855_v3 = vpop.f32.mrf.mxu0 }
 0x284   : > { %v6859_v37 = vpop.f32.mrf.mxu0 }
 0x285   : > { %7876 = vst [vmem:[#allocation14_spill] sm:$0xff] %v6859_v37 }
 0x286   : > { %v6861_v32 = vpop.f32.mrf.mxu0  ;;  %2005 = vmax.xlane.f32.xlu1 %v2004_v56 }
 0x287   : > { %7877 = vst [vmem:[#allocation15_spill] sm:$0xff] %v6861_v32 }
 0x288   : > { %v6867_v25 = vpop.f32.mrf.mxu0 }
 0x289   : > { %7878 = vst [vmem:[#allocation16_spill] sm:$0xff] %v6867_v25 }
 0x28a   : > { %v6869_v40 = vpop.f32.mrf.mxu0  ;;  %2011 = vmax.xlane.f32.xlu1 %v2010_v60  ;;  %2008 = vmax.xlane.f32.xlu0 %v2007_v35 }
 0x28b   : > { %7879 = vst [vmem:[#allocation17_spill] sm:$0xff] %v6869_v40 }
 0x28c   : > { %v6875_v0 = vpop.f32.mrf.mxu0 }
 0x28d   : > { %7880 = vst [vmem:[#allocation18_spill] sm:$0xff] %v6875_v0 }
 0x28e   : > { %2017 = vmax.xlane.f32.xlu1 %v2016_v24  ;;  %2014 = vmax.xlane.f32.xlu0 %v2013_v42  ;;  %v6877_v56 = vpop.f32.mrf.mxu0  ;;  %v2028_v42 = vmax.f32 %v6841_v27, %v6843_v19  ;;  %v2037_v27 = vmax.f32 %v6853_v21, %v6855_v3 }
 0x28f   : > { %7881 = vst [vmem:[#allocation19_spill] sm:$0xff] %v6877_v56 }
 0x290   : > { %v6883_v60 = vpop.f32.mrf.mxu0 }
 0x291   : > { %7882 = vst [vmem:[#allocation20_spill] sm:$0xff] %v6883_v60 }
 0x292   : > { %2023 = vmax.xlane.f32.xlu1 %v2022_v11  ;;  %2020 = vmax.xlane.f32.xlu0 %v2019_v6  ;;  %v6885_v35 = vpop.f32.mrf.mxu0  ;;  %v2034_v6 = vmax.f32 %v6849_v47, %v6851_v28  ;;  %v2043_v28 = vmax.f32 %v6867_v25, %v6869_v40 }
 0x293   : > { %7883 = vst [vmem:[#allocation21_spill] sm:$0xff] %v6885_v35 }
 0x294   : > { %v6891_v24 = vpop.f32.mrf.mxu0 }
 0x295   : > { %7884 = vst [vmem:[#allocation22_spill] sm:$0xff] %v6891_v24 }
 0x296   : > { %2029 = vmax.xlane.f32.xlu1 %v2028_v42  ;;  %2026 = vmax.xlane.f32.xlu0 %v2025_v15  ;;  %v6893_v7 = vpop.f32.mrf.mxu0  ;;  %v2040_v15 = vmax.f32 %v6859_v37, %v6861_v32  ;;  %v2049_v32 = vmax.f32 %v6883_v60, %v6885_v35  ;;  %v5456_v60 = vld [vmem:[#allocation3 + $0xd0] sm:$0xff]  }
 0x297   : > { %7885 = vst [vmem:[#allocation23_spill] sm:$0xff] %v6893_v7  ;;  %v2052_v25 = vmax.f32 %v6891_v24, %v6893_v7 }
 0x298   : > { %v6899_v11 = vpop.f32.mrf.mxu0 }
 0x299   : > { %7886 = vst [vmem:[#allocation24_spill] sm:$0xff] %v6899_v11 }
 0x29a   : > { %2035 = vmax.xlane.f32.xlu1 %v2034_v6  ;;  %2032 = vmax.xlane.f32.xlu0 %v2031_v26  ;;  %v6901_v30 = vpop.f32.mrf.mxu0  ;;  %v2046_v26 = vmax.f32 %v6875_v0, %v6877_v56 }
 0x29b   : > { %7887 = vst [vmem:[#allocation25_spill] sm:$0xff] %v6901_v30 }
 0x29c   : > { %v6907_v42 = vpop.f32.mrf.mxu0 }
 0x29d   : > { %7888 = vst [vmem:[#allocation26_spill] sm:$0xff] %v6907_v42 }
 0x29e   : > { %2041 = vmax.xlane.f32.xlu1 %v2040_v15  ;;  %2038 = vmax.xlane.f32.xlu0 %v2037_v27  ;;  %v6909_v58 = vpop.f32.mrf.mxu0  ;;  %v2055_v27 = vmax.f32 %v6899_v11, %v6901_v30 }
 0x29f   : > { %7889 = vst [vmem:[#allocation27_spill] sm:$0xff] %v6909_v58  ;;  %v3199_v11 = vmax.f32 %v6907_v42, %v6909_v58 }
 0x2a0   : > { %v6915_v6 = vpop.f32.mrf.mxu0 }
 0x2a1   : > { %7890 = vst [vmem:[#allocation28_spill] sm:$0xff] %v6915_v6 }
 0x2a2   : > { %2044 = vmax.xlane.f32.xlu0 %v2043_v28  ;;  %2047 = vmax.xlane.f32.xlu1 %v2046_v26  ;;  %v6917_v21 = vpop.f32.mrf.mxu0 }
 0x2a3   : > { %7891 = vst [vmem:[#allocation29_spill] sm:$0xff] %v6917_v21  ;;  %v3202_v28 = vmax.f32 %v6915_v6, %v6917_v21 }
 0x2a4   : > { %v6923_v15 = vpop.f32.mrf.mxu0 }
 0x2a5   : > { %7892 = vst [vmem:[#allocation30_spill] sm:$0xff] %v6923_v15 }
 0x2a6   : > { %2050 = vmax.xlane.f32.xlu0 %v2049_v32  ;;  %v6925_v37 = vpop.f32.mrf.mxu0  ;;  %2056 = vmax.xlane.f32.xlu1 %v2055_v27 }
 0x2a7   : > { %7893 = vst [vmem:[#allocation31_spill] sm:$0xff] %v6925_v37 }
 0x2a8   : > { %v6931_v26 = vpop.f32.mrf.mxu0 }
 0x2a9   : > { %7894 = vst [vmem:[#allocation32_spill] sm:$0xff] %v6931_v26 }
 0x2aa   : > { %v1964_v56 = vpop.xlane.xlu0 %1963  ;;  %2053 = vmax.xlane.f32.xlu0 %v2052_v25  ;;  %v6933_v35 = vpop.f32.mrf.mxu0  ;;  %3203 = vmax.xlane.f32.xlu1 %v3202_v28 }
 0x2ab   : > { %7895 = vst [vmem:[#allocation33_spill] sm:$0xff] %v6933_v35  ;;  %v2058_v30 = vsub.f32 %v6683_v4, %v1964_v56  ;;  %v2059_v32 = vsub.f32 %v6690_v14, %v1964_v56  ;;  %v3208_v27 = vmax.f32 %v6931_v26, %v6933_v35  ;;  %v3205_v56 = vmax.f32 %v6923_v15, %v6925_v37  ;;  %v5448_v15 = vld [vmem:[#allocation3 + $0xf0] sm:$0xff]  }
 0x2ac   : > { %v6941_v7 = vpop.f32.mrf.mxu0 }
 0x2ad   : > { %7896 = vst [vmem:[#allocation34_spill] sm:$0xff] %v6941_v7  ;;  %v2122_v21 = vmul.f32 1.442695, %v2058_v30  ;;  %v2124_v6 = vmul.f32 1.442695, %v2059_v32 }
 0x2ae   : > { %v1967_v24 = vpop.xlane.xlu1 %1966  ;;  %3200 = vmax.xlane.f32.xlu0 %v3199_v11  ;;  %v6943_v25 = vpop.f32.mrf.mxu0  ;;  %3209 = vmax.xlane.f32.xlu1 %v3208_v27 }
 0x2af   : > { %7897 = vst [vmem:[#allocation35_spill] sm:$0xff] %v6943_v25  ;;  %5462 = vpow2.f32 %v2122_v21  ;;  %v2060_v4 = vsub.f32 %v6695_v41, %v1967_v24  ;;  %v2061_v14 = vsub.f32 %v6698_v10, %v1967_v24  ;;  %v3211_v10 = vmax.f32 %v6941_v7, %v6943_v25 }
 0x2b0   : > { %5464 = vpow2.f32 %v2124_v6  ;;  %v6949_v28 = vpop.f32.mrf.mxu0 }
 0x2b1   : > { %7898 = vst [vmem:[#allocation36_spill] sm:$0xff] %v6949_v28  ;;  %v2126_v35 = vmul.f32 1.442695, %v2060_v4  ;;  %v2128_v26 = vmul.f32 1.442695, %v2061_v14 }
 0x2b2   : > { %v1970_v30 = vpop.xlane.xlu0 %1969  ;;  %3206 = vmax.xlane.f32.xlu0 %v3205_v56  ;;  %v6951_v32 = vpop.f32.mrf.mxu0 }
 0x2b3   : > { %7899 = vst [vmem:[#allocation37_spill] sm:$0xff] %v6951_v32  ;;  %5466 = vpow2.f32 %v2126_v35  ;;  %v2062_v11 = vsub.f32 %v6702_v63, %v1970_v30  ;;  %v2063_v21 = vsub.f32 %v6707_v38, %v1970_v30  ;;  %v3214_v41 = vmax.f32 %v6949_v28, %v6951_v32 }
 0x2b4   : > { %5468 = vpow2.f32 %v2128_v26  ;;  %v6959_v24 = vpop.f32.mrf.mxu0 }
 0x2b5   : > { %v2130_v6 = vmul.f32 1.442695, %v2062_v11  ;;  %v2132_v27 = vmul.f32 1.442695, %v2063_v21  ;;  %3215 = vmax.xlane.f32.xlu1 %v3214_v41 }
 0x2b6   : > { %v1973_v4 = vpop.xlane.xlu1 %1972  ;;  %3212 = vmax.xlane.f32.xlu0 %v3211_v10  ;;  %v6961_v14 = vpop.f32.mrf.mxu0 }
 0x2b7   : > { %7900 = vst [vmem:[#allocation38_spill] sm:$0xff] %v6961_v14  ;;  %5470 = vpow2.f32 %v2130_v6  ;;  %v2064_v63 = vsub.f32 %v6713_v54, %v1973_v4  ;;  %v2065_v38 = vsub.f32 %v6716_v23, %v1973_v4 }
 0x2b8   : > { %5472 = vpow2.f32 %v2132_v27  ;;  %v6965_v35 = vpop.f32.mrf.mxu0 }
 0x2b9   : > { %v2134_v26 = vmul.f32 1.442695, %v2064_v63  ;;  %v2136_v56 = vmul.f32 1.442695, %v2065_v38 }
 0x2ba   : > { %v1976_v30 = vpop.xlane.xlu0 %1975  ;;  %v6967_v32 = vpop.f32.mrf.mxu0 }
 0x2bb   : > { %7901 = vst [vmem:[#allocation39_spill] sm:$0xff] %v6967_v32  ;;  %5474 = vpow2.f32 %v2134_v26  ;;  %v2066_v11 = vsub.f32 %v6720_v61, %v1976_v30  ;;  %v2067_v21 = vsub.f32 %v6725_v57, %v1976_v30 }
 0x2bc   : > { %v5463_v41 = vpop.eup %5462  ;;  %5476 = vpow2.f32 %v2136_v56  ;;  %v6971_v10 = vpop.f32.mrf.mxu0 }
 0x2bd   : > { %7902 = vst [vmem:[#allocation40_spill] sm:$0xff] %v6971_v10  ;;  %v5465_v54 = vpop.eup %5464  ;;  %v2138_v6 = vmul.f32 1.442695, %v2066_v11  ;;  %v2140_v23 = vmul.f32 1.442695, %v2067_v21 }
 0x2be   : > { %v1979_v27 = vpop.xlane.xlu1 %1978  ;;  %v6973_v4 = vpop.f32.mrf.mxu0  ;;  %v6975_v63 = vadd.f32 %v5465_v54, %v5463_v41 }
 0x2bf   : > { %7903 = vst [vmem:[#allocation41_spill] sm:$0xff] %v6973_v4  ;;  %5478 = vpow2.f32 %v2138_v6  ;;  %v2068_v38 = vsub.f32 %v6731_v34, %v1979_v27  ;;  %v2069_v26 = vsub.f32 %v6734_v13, %v1979_v27  ;;  %v5447_v27 = vld [vmem:[#allocation3 + $0xb8] sm:$0xff]  }
 0x2c0   : > { %v5467_v61 = vpop.eup %5466  ;;  %5480 = vpow2.f32 %v2140_v23  ;;  %v6979_v57 = vpop.f32.mrf.mxu0 }
 0x2c1   : > { %v5469_v56 = vpop.eup %5468  ;;  %v2142_v30 = vmul.f32 1.442695, %v2068_v38  ;;  %v2144_v28 = vmul.f32 1.442695, %v2069_v26  ;;  %v2378_v25 = vpack.c.bf16 %v5467_v61, %v5463_v41 }
 0x2c2   : > { %v1982_v11 = vpop.xlane.xlu0 %1981  ;;  %v6981_v21 = vpop.f32.mrf.mxu0  ;;  %v2379_v7 = vpack.c.bf16 %v5469_v56, %v5465_v54  ;;  %v6983_v37 = vadd.f32 %v5469_v56, %v5467_v61 }
 0x2c3   : > { %7904 = vst [vmem:[#allocation42_spill] sm:$0xff] %v6981_v21  ;;  %5482 = vpow2.f32 %v2142_v30  ;;  %v2070_v6 = vsub.f32 %v6738_v29, %v1982_v11  ;;  %v2071_v34 = vsub.f32 %v6743_v18, %v1982_v11 }
 0x2c4   : > { %v5471_v13 = vpop.eup %5470  ;;  %5484 = vpow2.f32 %v2144_v28  ;;  %2538 = vmatprep.mubr.bf16.mxu1 %v2379_v7  ;;  %v6987_v23 = vpop.f32.mrf.mxu0 }
 0x2c5   : > { %v5473_v38 = vpop.eup %5472  ;;  %v2146_v26 = vmul.f32 1.442695, %v2070_v6  ;;  %v2148_v41 = vmul.f32 1.442695, %v2071_v34  ;;  %2539 = vmatmul.mubr.bf16.vlgmr.msra.gmra.mxu1 %v2378_v25  ;;  %v5449_v25 = vld [vmem:[#allocation3 + $0xb0] sm:$0xff]   ;;  %v5450_v34 = vld [vmem:[#allocation3 + $0xe8] sm:$0xff]  }
 0x2c6   : > { %5032 = vmatpush3.bf16.msra.mxu1 %v5447_v27  ;;  %v1985_v54 = vpop.xlane.xlu1 %1984  ;;  %v6989_v61 = vpop.f32.mrf.mxu0  ;;  %1047 = vrot.lane.b32.xlu1 %v6024_v43, %s5872_s14  ;;  %v6993_v29 = vadd.f32 %v5473_v38, %v5471_v13 }
 0x2c7   : > { %5486 = vpow2.f32 %v2146_v26  ;;  %5033 = vmatprep.subr.bf16.mxu1 %v5448_v15  ;;  %v2072_v18 = vsub.f32 %v6749_v49, %v1985_v54  ;;  %v2073_v7 = vsub.f32 %v6751_v36, %v1985_v54  ;;  %v5451_v54 = vld [vmem:[#allocation3 + $0xa8] sm:$0xff]  }
 0x2c8   : > { %v5475_v28 = vpop.eup %5474  ;;  %5488 = vpow2.f32 %v2148_v41  ;;  %v6997_v56 = vpop.f32.mrf.mxu0 }
 0x2c9   : > { %v5477_v30 = vpop.eup %5476  ;;  %v2150_v11 = vmul.f32 1.442695, %v2072_v18  ;;  %v2152_v6 = vmul.f32 1.442695, %v2073_v7  ;;  %v2380_v27 = vpack.c.bf16 %v5475_v28, %v5471_v13 }
 0x2ca   : > { %5034 = vmatpush3.bf16.msra.mxu1 %v5449_v25  ;;  %v1988_v43 = vpop.xlane.xlu0 %1987  ;;  %v6999_v58 = vpop.f32.mrf.mxu0  ;;  %v2381_v26 = vpack.c.bf16 %v5477_v30, %v5473_v38  ;;  %v7001_v15 = vadd.f32 %v5477_v30, %v5475_v28  ;;  %v5452_v28 = vld [vmem:[#allocation3 + $0xe0] sm:$0xff]  }
 0x2cb   : > { %5490 = vpow2.f32 %v2150_v11  ;;  %5035 = vmatprep.subr.bf16.mxu1 %v5450_v34  ;;  %v2074_v49 = vsub.f32 %v6755_v50, %v1988_v43  ;;  %v2075_v36 = vsub.f32 %v6761_v51, %v1988_v43  ;;  %v5453_v34 = vld [vmem:[#allocation3 + $0xa0] sm:$0xff]  }
 0x2cc   : > { %v5479_v41 = vpop.eup %5478  ;;  %5492 = vpow2.f32 %v2152_v6  ;;  %2546 = vmatprep.mubr.bf16.mxu1 %v2381_v26  ;;  %1045 = vrot.lane.b32.xlu0 %v6014_v39, %s5872_s14  ;;  %v7007_v13 = vpop.f32.mrf.mxu0 }
 0x2cd   : > { %7905 = vst [vmem:[#allocation43_spill] sm:$0xff] %v7007_v13  ;;  %v5481_v18 = vpop.eup %5480  ;;  %v2154_v7 = vmul.f32 1.442695, %v2074_v49  ;;  %v2156_v38 = vmul.f32 1.442695, %v2075_v36  ;;  %2547 = vmatmul.mubr.bf16.gmra.mxu1 %v2380_v27  ;;  %v5454_v49 = vld [vmem:[#allocation3 + $0xd8] sm:$0xff]  }
 0x2ce   : > { %5036 = vmatpush3.bf16.msra.mxu1 %v5451_v54  ;;  %v1991_v25 = vpop.xlane.xlu0 %1990  ;;  %v7009_v30 = vpop.f32.mrf.mxu0  ;;  %v7011_v50 = vadd.f32 %v5481_v18, %v5479_v41 }
 0x2cf   : > { %7906 = vst [vmem:[#allocation44_spill] sm:$0xff] %v7009_v30  ;;  %5494 = vpow2.f32 %v2154_v7  ;;  %5037 = vmatprep.subr.bf16.mxu1 %v5452_v28  ;;  %v2076_v51 = vsub.f32 %v6765_v48, %v1991_v25  ;;  %v2077_v11 = vsub.f32 %v6767_v62, %v1991_v25 }
 0x2d0   : > { %v5483_v39 = vpop.eup %5482  ;;  %5496 = vpow2.f32 %v2156_v38  ;;  %v7015_v6 = vpop.f32.mrf.mxu0 }
 0x2d1   : > { %v5485_v43 = vpop.eup %5484  ;;  %v2158_v27 = vmul.f32 1.442695, %v2076_v51  ;;  %v2160_v26 = vmul.f32 1.442695, %v2077_v11  ;;  %v2382_v36 = vpack.c.bf16 %v5483_v39, %v5479_v41  ;;  %v5455_v51 = vld [vmem:[#allocation3 + $0x98] sm:$0xff]  }
 0x2d2   : > { %5038 = vmatpush3.bf16.msra.mxu1 %v5453_v34  ;;  %v1994_v54 = vpop.xlane.xlu1 %1993  ;;  %v7017_v42 = vpop.f32.mrf.mxu0  ;;  %v2383_v7 = vpack.c.bf16 %v5485_v43, %v5481_v18  ;;  %v7019_v28 = vadd.f32 %v5485_v43, %v5483_v39 }
 0x2d3   : > { %5498 = vpow2.f32 %v2158_v27  ;;  %5039 = vmatprep.subr.bf16.mxu1 %v5454_v49  ;;  %v2078_v48 = vsub.f32 %v6771_v20, %v1994_v54  ;;  %v2079_v62 = vsub.f32 %v6777_v33, %v1994_v54  ;;  %v5457_v49 = vld [vmem:[#allocation3 + $0x90] sm:$0xff]  }
 0x2d4   : > { %v5487_v38 = vpop.eup %5486  ;;  %5500 = vpow2.f32 %v2160_v26  ;;  %2554 = vmatprep.mubr.bf16.mxu1 %v2383_v7  ;;  %v7023_v25 = vpop.f32.mrf.mxu0 }
 0x2d5   : > { %v5489_v41 = vpop.eup %5488  ;;  %v2162_v11 = vmul.f32 1.442695, %v2078_v48  ;;  %v2164_v34 = vmul.f32 1.442695, %v2079_v62  ;;  %2555 = vmatmul.mubr.bf16.gmra.mxu1 %v2382_v36  ;;  %v5458_v48 = vld [vmem:[#allocation3 + $0xc8] sm:$0xff]  }
 0x2d6   : > { %5040 = vmatpush3.bf16.msra.mxu1 %v5455_v51  ;;  %v1997_v18 = vpop.xlane.xlu0 %1996  ;;  %v7025_v39 = vpop.f32.mrf.mxu0  ;;  %v7027_v43 = vadd.f32 %v5489_v41, %v5487_v38 }
 0x2d7   : > { %5502 = vpow2.f32 %v2162_v11  ;;  %5041 = vmatprep.subr.bf16.mxu1 %v5456_v60  ;;  %v2080_v20 = vsub.f32 %v6781_v53, %v1997_v18  ;;  %v2081_v33 = vsub.f32 %v6783_v1, %v1997_v18 }
 0x2d8   : > { %v5491_v27 = vpop.eup %5490  ;;  %5504 = vpow2.f32 %v2164_v34  ;;  %v7031_v26 = vpop.f32.mrf.mxu0 }
 0x2d9   : > { %7907 = vst [vmem:[#allocation45_spill] sm:$0xff] %v7031_v26  ;;  %v5493_v54 = vpop.eup %5492  ;;  %v2166_v36 = vmul.f32 1.442695, %v2080_v20  ;;  %v2168_v7 = vmul.f32 1.442695, %v2081_v33  ;;  %v2384_v62 = vpack.c.bf16 %v5491_v27, %v5487_v38  ;;  %v5459_v20 = vld [vmem:[#allocation3 + $0x88] sm:$0xff]  }
 0x2da   : > { %5042 = vmatpush3.bf16.msra.mxu1 %v5457_v49  ;;  %v2000_v51 = vpop.xlane.xlu1 %1999  ;;  %v7033_v40 = vpop.f32.mrf.mxu0  ;;  %v2385_v11 = vpack.c.bf16 %v5493_v54, %v5489_v41  ;;  %v7035_v60 = vadd.f32 %v5493_v54, %v5491_v27 }
 0x2db   : > { %7908 = vst [vmem:[#allocation46_spill] sm:$0xff] %v7033_v40  ;;  %5506 = vpow2.f32 %v2166_v36  ;;  %5043 = vmatprep.subr.bf16.mxu1 %v5458_v48  ;;  %v2082_v53 = vsub.f32 %v6787_v59, %v2000_v51  ;;  %v2083_v1 = vsub.f32 %v6793_v46, %v2000_v51 }
 0x2dc   : > { %v5495_v34 = vpop.eup %5494  ;;  %5508 = vpow2.f32 %v2168_v7  ;;  %2562 = vmatprep.mubr.bf16.mxu1 %v2385_v11  ;;  %v7039_v18 = vpop.f32.mrf.mxu0 }
 0x2dd   : > { %v5497_v38 = vpop.eup %5496  ;;  %v2170_v33 = vmul.f32 1.442695, %v2082_v53  ;;  %v2172_v49 = vmul.f32 1.442695, %v2083_v1  ;;  %2563 = vmatmul.mubr.bf16.gmra.mxu1 %v2384_v62 }
 0x2de   : > { %5044 = vmatpush3.bf16.msra.mxu1 %v5459_v20  ;;  %v1080_v41 = vpop.permute.xlu1 %1079  ;;  %v2003_v27 = vpop.xlane.xlu0 %2002  ;;  %v7041_v54 = vadd.f32 %v5497_v38, %v5495_v34 }
 0x2df   : > { %5510 = vpow2.f32 %v2170_v33  ;;  %1159 = vst.msk [vmem:[#allocation3 + $0xc4] sm:$0xf] %vm755_vm1, %v1080_v41  ;;  %v2084_v59 = vsub.f32 %v6797_v8, %v2003_v27  ;;  %v2085_v46 = vsub.f32 %v6799_v9, %v2003_v27  ;;  %v7046_v36 = vpop.f32.mrf.mxu0 }
 0x2e0   : > { %v5499_v7 = vpop.eup %5498  ;;  %5512 = vpow2.f32 %v2172_v49 }
 0x2e1   : > { %v5501_v48 = vpop.eup %5500  ;;  %v2174_v51 = vmul.f32 1.442695, %v2084_v59  ;;  %v2176_v11 = vmul.f32 1.442695, %v2085_v46  ;;  %v7048_v62 = vpop.f32.mrf.mxu0  ;;  %v2386_v53 = vpack.c.bf16 %v5499_v7, %v5495_v34  ;;  %v3217_v46 = vmax.f32 %v6959_v24, %v6961_v14 }
 0x2e2   : > { %7909 = vst [vmem:[#allocation47_spill] sm:$0xff] %v7048_v62  ;;  %v1078_v1 = vpop.permute.xlu0 %1077  ;;  %v2387_v20 = vpack.c.bf16 %v5501_v48, %v5497_v38  ;;  %v7050_v0 = vadd.f32 %v5501_v48, %v5499_v7  ;;  %v3220_v38 = vmax.f32 %v6965_v35, %v6967_v32  ;;  %v3223_v14 = vmax.f32 %v6971_v10, %v6973_v4 }
 0x2e3   : > { %5514 = vpow2.f32 %v2174_v51  ;;  %1158 = vst.msk [vmem:[#allocation3 + $0xc0] sm:$0xf] %vm755_vm1, %v1078_v1  ;;  %v7053_v8 = vpop.f32.mrf.mxu0 }
 0x2e4   : > { %7910 = vst [vmem:[#allocation48_spill] sm:$0xff] %v7050_v0  ;;  %7911 = vst [vmem:[#allocation49_spill] sm:$0xff] %v7053_v8  ;;  %v5503_v9 = vpop.eup %5502  ;;  %5516 = vpow2.f32 %v2176_v11  ;;  %2570 = vmatprep.mubr.bf16.mxu1 %v2387_v20  ;;  %v3229_v0 = vmax.f32 %v6987_v23, %v6989_v61 }
 0x2e5   : > { %v5505_v33 = vpop.eup %5504  ;;  %2571 = vmatmul.mubr.bf16.gmra.mxu1 %v2386_v53  ;;  %v7055_v49 = vpop.f32.mrf.mxu0 }
 0x2e6   : > { %v7057_v41 = vadd.f32 %v5505_v33, %v5503_v9 }
 0x2e7   : > { %v7059_v27 = vpop.f32.mrf.mxu0 }
 0x2e8   : > { %v5507_v34 = vpop.eup %5506 }
 0x2e9   : > { %v5509_v59 = vpop.eup %5508  ;;  %v7065_v7 = vpop.f32.mrf.mxu0  ;;  %v2388_v48 = vpack.c.bf16 %v5507_v34, %v5503_v9 }
 0x2ea   : > { %7912 = vst [vmem:[#allocation50_spill] sm:$0xff] %v7065_v7  ;;  %3221 = vmax.xlane.f32.xlu1 %v3220_v38  ;;  %v2389_v51 = vpack.c.bf16 %v5509_v59, %v5505_v33  ;;  %v5460_v11 = vld [vmem:[#allocation3 + $0xc0] sm:$0xff]   ;;  %v7067_v53 = vadd.f32 %v5509_v59, %v5507_v34  ;;  %v3235_v59 = vmax.f32 %v7007_v13, %v7009_v30 }
 0x2eb   : > { %v7069_v1 = vpop.f32.mrf.mxu0  ;;  %3218 = vmax.xlane.f32.xlu0 %v3217_v46  ;;  %5045 = vmatprep.subr.bf16.mxu1 %v5460_v11  ;;  %v3232_v30 = vmax.f32 %v6997_v56, %v6999_v58 }
 0x2ec   : > { %7913 = vst [vmem:[#allocation51_spill] sm:$0xff] %v7069_v1  ;;  %v5511_v20 = vpop.eup %5510  ;;  %2578 = vmatprep.mubr.bf16.mxu1 %v2389_v51  ;;  %v3226_v51 = vmax.f32 %v6979_v57, %v6981_v21 }
 0x2ed   : > { %v5513_v32 = vpop.eup %5512  ;;  %2579 = vmatmul.mubr.bf16.gmra.mxu1 %v2388_v48  ;;  %v7075_v9 = vpop.f32.mrf.mxu0 }
 0x2ee   : > { %3230 = vmax.xlane.f32.xlu1 %v3229_v0  ;;  %v7077_v33 = vadd.f32 %v5513_v32, %v5511_v20 }
 0x2ef   : > { %v7079_v34 = vpop.f32.mrf.mxu0  ;;  %3224 = vmax.xlane.f32.xlu0 %v3223_v14  ;;  %v3241_v14 = vmax.f32 %v7023_v25, %v7025_v39 }
 0x2f0   : > { %v5515_v38 = vpop.eup %5514 }
 0x2f1   : > { %v5517_v46 = vpop.eup %5516  ;;  %v7085_v11 = vpop.f32.mrf.mxu0  ;;  %v2390_v4 = vpack.c.bf16 %v5515_v38, %v5511_v20  ;;  %v3238_v20 = vmax.f32 %v7015_v6, %v7017_v42 }
 0x2f2   : > { %7914 = vst [vmem:[#allocation52_spill] sm:$0xff] %v7085_v11  ;;  %3236 = vmax.xlane.f32.xlu1 %v3235_v59  ;;  %v2391_v48 = vpack.c.bf16 %v5517_v46, %v5513_v32  ;;  %v7087_v10 = vadd.f32 %v5517_v46, %v5515_v38  ;;  %v3247_v32 = vmax.f32 %v7039_v18, %v7046_v36 }
 0x2f3   : > { %v7089_v0 = vpop.f32.mrf.mxu0  ;;  %3227 = vmax.xlane.f32.xlu0 %v3226_v51  ;;  %v3244_v46 = vmax.f32 %v7031_v26, %v7033_v40 }
 0x2f4   : > { %7915 = vst [vmem:[#allocation53_spill] sm:$0xff] %v7089_v0  ;;  %2586 = vmatprep.mubr.bf16.mxu1 %v2391_v48  ;;  %v3259_v48 = vmax.f32 %v7075_v9, %v7079_v34 }
 0x2f5   : > { %2587 = vmatmul.mubr.bf16.gmra.mxu1 %v2390_v4  ;;  %v7095_v13 = vpop.f32.mrf.mxu0  ;;  %v3253_v4 = vmax.f32 %v7055_v49, %v7059_v27 }
 0x2f6   : > { %3242 = vmax.xlane.f32.xlu1 %v3241_v14  ;;  %v3250_v14 = vmax.f32 %v7048_v62, %v7053_v8 }
 0x2f7   : > { %v7097_v21 = vpop.f32.mrf.mxu0  ;;  %3233 = vmax.xlane.f32.xlu0 %v3232_v30 }
 0x2f8   : > { %7916 = vst [vmem:[#allocation54_spill] sm:$0xff] %v7097_v21  ;;  %v3265_v40 = vmax.f32 %v7095_v13, %v7097_v21 }
 0x2f9   : > { %v7103_v38 = vpop.f32.mrf.mxu0 }
 0x2fa   : > { %7917 = vst [vmem:[#allocation55_spill] sm:$0xff] %v7103_v38  ;;  %3248 = vmax.xlane.f32.xlu1 %v3247_v32 }
 0x2fb   : > { %v7105_v59 = vpop.f32.mrf.mxu0  ;;  %3239 = vmax.xlane.f32.xlu0 %v3238_v20 }
 0x2fc   : > { %7918 = vst [vmem:[#allocation56_spill] sm:$0xff] %v7105_v59 }
 0x2fd   : > { %v7111_v51 = vpop.f32.mrf.mxu0 }
 0x2fe   : > { %7919 = vst [vmem:[#allocation57_spill] sm:$0xff] %v7111_v51  ;;  %3254 = vmax.xlane.f32.xlu1 %v3253_v4  ;;  %v3256_v4 = vmax.f32 %v7065_v7, %v7069_v1 }
 0x2ff   : > { %v7113_v30 = vpop.f32.mrf.mxu0  ;;  %3245 = vmax.xlane.f32.xlu0 %v3244_v46 }
 0x300   : > { %7920 = vst [vmem:[#allocation58_spill] sm:$0xff] %v7113_v30  ;;  %v3271_v8 = vmax.f32 %v7111_v51, %v7113_v30 }
 0x301   : > { %v7119_v32 = vpop.f32.mrf.mxu0 }
 0x302   : > { %7921 = vst [vmem:[#allocation59_spill] sm:$0xff] %v7119_v32  ;;  %3260 = vmax.xlane.f32.xlu1 %v3259_v48  ;;  %v3262_v48 = vmax.f32 %v7085_v11, %v7089_v0 }
 0x303   : > { %v7121_v20 = vpop.f32.mrf.mxu0  ;;  %3251 = vmax.xlane.f32.xlu0 %v3250_v14 }
 0x304   : > { %7922 = vst [vmem:[#allocation60_spill] sm:$0xff] %v7121_v20 }
 0x305   : > { %v7127_v26 = vpop.f32.mrf.mxu0 }
 0x306   : > { %7923 = vst [vmem:[#allocation61_spill] sm:$0xff] %v7127_v26  ;;  %3266 = vmax.xlane.f32.xlu1 %v3265_v40  ;;  %v3268_v40 = vmax.f32 %v7103_v38, %v7105_v59 }
 0x307   : > { %v7129_v46 = vpop.f32.mrf.mxu0  ;;  %3257 = vmax.xlane.f32.xlu0 %v3256_v4 }
 0x308   : > { %7924 = vst [vmem:[#allocation62_spill] sm:$0xff] %v7129_v46  ;;  %v3277_v1 = vmax.f32 %v7127_v26, %v7129_v46 }
 0x309   : > { %v7135_v62 = vpop.f32.mrf.mxu0 }
 0x30a   : > { %3272 = vmax.xlane.f32.xlu1 %v3271_v8 }
 0x30b   : > { %v7137_v14 = vpop.f32.mrf.mxu0  ;;  %3263 = vmax.xlane.f32.xlu0 %v3262_v48  ;;  %v3274_v48 = vmax.f32 %v7119_v32, %v7121_v20 }
 0x30d   : > { %v7143_v7 = vpop.f32.mrf.mxu0 }
 0x30e   : > { %7925 = vst [vmem:[#allocation63_spill] sm:$0xff] %v7143_v7  ;;  %3278 = vmax.xlane.f32.xlu1 %v3277_v1 }
 0x30f   : > { %v7145_v4 = vpop.f32.mrf.mxu0  ;;  %v2006_v30 = vpop.xlane.xlu1 %2005  ;;  %3269 = vmax.xlane.f32.xlu0 %v3268_v40  ;;  %v3280_v40 = vmax.f32 %v7135_v62, %v7137_v14 }
 0x310   : > { %7926 = vst [vmem:[#allocation64_spill] sm:$0xff] %v7145_v4  ;;  %v3283_v0 = vmax.f32 %v7143_v7, %v7145_v4  ;;  %v2086_v8 = vsub.f32 %v6803_v55, %v2006_v30  ;;  %v2087_v46 = vsub.f32 %v6807_v17, %v2006_v30  ;;  %v7928_v17 = vld [vmem:[#allocation5_spill] sm:$0xff] }
 0x311   : > { %v7153_v26 = vpop.f32.mrf.mxu0 }
 0x312   : > { %3284 = vmax.xlane.f32.xlu1 %v3283_v0  ;;  %v2178_v38 = vmul.f32 1.442695, %v2086_v8  ;;  %v2180_v4 = vmul.f32 1.442695, %v2087_v46 }
 0x313   : > { %v7155_v59 = vpop.f32.mrf.mxu0  ;;  %v2012_v1 = vpop.xlane.xlu1 %2011  ;;  %3275 = vmax.xlane.f32.xlu0 %v3274_v48 }
 0x314   : > { %7927 = vst [vmem:[#allocation65_spill] sm:$0xff] %v7155_v59  ;;  %v2009_v11 = vpop.xlane.xlu0 %2008  ;;  %v2091_v30 = vsub.f32 %v7928_v17, %v2012_v1  ;;  %5518 = vpow2.f32 %v2178_v38 }
 0x315   : > { %v2088_v55 = vsub.f32 %v6809_v22, %v2009_v11  ;;  %v2089_v7 = vsub.f32 %v6811_v44, %v2009_v11  ;;  %v7161_v20 = vpop.f32.mrf.mxu0  ;;  %5520 = vpow2.f32 %v2180_v4  ;;  %v3286_v22 = vmax.f32 %v7153_v26, %v7155_v59  ;;  %v7930_v4 = vld [vmem:[#allocation4_spill] sm:$0xff] }
 0x316   : > { %v2188_v46 = vmul.f32 1.442695, %v2091_v30  ;;  %v2090_v17 = vsub.f32 %v7930_v4, %v2012_v1 }
 0x317   : > { %v2182_v32 = vmul.f32 1.442695, %v2088_v55  ;;  %v2184_v0 = vmul.f32 1.442695, %v2089_v7  ;;  %v7164_v51 = vpop.f32.mrf.mxu0  ;;  %v2018_v21 = vpop.xlane.xlu1 %2017  ;;  %3281 = vmax.xlane.f32.xlu0 %v3280_v40 }
 0x318   : > { %7929 = vst [vmem:[#allocation5_spill] sm:$0xff] %v7164_v51  ;;  %v3289_v8 = vmax.f32 %v7161_v20, %v7164_v51  ;;  %v2015_v48 = vpop.xlane.xlu0 %2014  ;;  %v2095_v59 = vsub.f32 %v6825_v31, %v2018_v21 }
 0x319   : > { %v2093_v44 = vsub.f32 %v6819_v12, %v2015_v48  ;;  %v7171_v11 = vpop.f32.mrf.mxu0  ;;  %5522 = vpow2.f32 %v2182_v32  ;;  %v2092_v7 = vsub.f32 %v6817_v5, %v2015_v48 }
 0x31a   : > { %3290 = vmax.xlane.f32.xlu1 %v3289_v8  ;;  %5524 = vpow2.f32 %v2184_v0  ;;  %v2186_v8 = vmul.f32 1.442695, %v2090_v17  ;;  %v2196_v1 = vmul.f32 1.442695, %v2095_v59 }
 0x31b   : > { %v2192_v40 = vmul.f32 1.442695, %v2093_v44  ;;  %v7174_v38 = vpop.f32.mrf.mxu0  ;;  %v7176_v55 = vpop.xlane.xlu1 %2023  ;;  %3287 = vmax.xlane.f32.xlu0 %v3286_v22  ;;  %5526 = vpow2.f32 %v2188_v46  ;;  %v2190_v5 = vmul.f32 1.442695, %v2092_v7  ;;  %v7931_v22 = vld [vmem:[#allocation7_spill] sm:$0xff] }
 0x31c   : > { %v2021_v51 = vpop.xlane.xlu0 %2020  ;;  %v3292_v12 = vmax.f32 %v7171_v11, %v7174_v38  ;;  %v2099_v59 = vsub.f32 %v6835_v52, %v7176_v55 }
 0x31d   : > { %v2097_v32 = vsub.f32 %v6829_v2, %v2021_v51  ;;  %5528 = vpow2.f32 %v2192_v40  ;;  %v2096_v31 = vsub.f32 %v7931_v22, %v2021_v51 }
 0x31e   : > { %2251 = vadd.xlane.f32.xlu1 %v6975_v63  ;;  %5530 = vpow2.f32 %v2190_v5  ;;  %v7932_v63 = vld [vmem:[#allocation6_spill] sm:$0xff] }
 0x31f   : > { %v2200_v30 = vmul.f32 1.442695, %v2097_v32  ;;  %v7184_v0 = vpop.xlane.xlu1 %2029  ;;  %3293 = vmax.xlane.f32.xlu0 %v3292_v12  ;;  %v2094_v46 = vsub.f32 %v7932_v63, %v2018_v21  ;;  %v2204_v32 = vmul.f32 1.442695, %v2099_v59 }
 0x320   : > { %v2027_v48 = vpop.xlane.xlu0 %2026 }
 0x321   : > { %5532 = vpow2.f32 %v2200_v30  ;;  %v2101_v2 = vsub.f32 %v6839_v45, %v2027_v48  ;;  %v7195_v40 = vpop.eup %5518  ;;  %v2194_v17 = vmul.f32 1.442695, %v2094_v46 }
 0x322   : > { %2257 = vadd.xlane.f32.xlu1 %v6993_v29  ;;  %5534 = vpow2.f32 %v2186_v8  ;;  %v7199_v51 = vpop.eup %5520  ;;  %v2198_v29 = vmul.f32 1.442695, %v2096_v31  ;;  %v7934_v31 = vld [vmem:[#allocation8_spill] sm:$0xff] }
 0x323   : > { %v7189_v44 = vpop.xlane.xlu1 %2035  ;;  %2254 = vadd.xlane.f32.xlu0 %v6983_v37  ;;  %5536 = vpow2.f32 %v2196_v1  ;;  %v2208_v4 = vmul.f32 1.442695, %v2101_v2  ;;  %v2098_v2 = vsub.f32 %v7934_v31, %v7176_v55  ;;  %v7937_v31 = vld [vmem:[#allocation48_spill] sm:$0xff] }
 0x324   : > { %v7193_v7 = vpop.xlane.xlu0 %2032  ;;  %5538 = vpow2.f32 %v2198_v29 }
 0x325   : > { %5540 = vpow2.f32 %v2208_v4  ;;  %v2202_v29 = vmul.f32 1.442695, %v2098_v2  ;;  %v7935_v4 = vld [vmem:[#allocation10_spill] sm:$0xff]  ;;  %v7938_v2 = vld [vmem:[#allocation12_spill] sm:$0xff] }
 0x326   : > { %2263 = vadd.xlane.f32.xlu1 %v7011_v50  ;;  %v7202_v45 = vpop.eup %5522  ;;  %v7933_v50 = vld [vmem:[#allocation9_spill] sm:$0xff]  ;;  %5542 = vpow2.f32 %v2194_v17 }
 0x327   : > { %v7204_v37 = vpop.xlane.xlu1 %2041  ;;  %2260 = vadd.xlane.f32.xlu0 %v7001_v15  ;;  %v7207_v21 = vpop.eup %5524  ;;  %v2392_v52 = vpack.c.bf16 %v7202_v45, %v7195_v40  ;;  %v2100_v30 = vsub.f32 %v7933_v50, %v2027_v48  ;;  %v2105_v15 = vsub.f32 %v6847_v16, %v7193_v7  ;;  %5544 = vpow2.f32 %v2204_v32 }
 0x328   : > { %v7209_v12 = vpop.xlane.xlu0 %2038  ;;  %v2393_v5 = vpack.c.bf16 %v7207_v21, %v7199_v51  ;;  %v7217_v8 = vpop.eup %5526 }
 0x329   : > { %v2206_v63 = vmul.f32 1.442695, %v2100_v30  ;;  %v2216_v46 = vmul.f32 1.442695, %v2105_v15 }
 0x32a   : > { %2269 = vadd.xlane.f32.xlu1 %v7027_v43  ;;  %2594 = vmatprep.mubr.bf16.mxu1 %v2393_v5  ;;  %v7224_v22 = vpop.eup %5528  ;;  %v2103_v43 = vsub.f32 %v6843_v19, %v7184_v0  ;;  %v2102_v19 = vsub.f32 %v7935_v4, %v7184_v0  ;;  %v2109_v0 = vsub.f32 %v6855_v3, %v7209_v12 }
 0x32b   : > { %v7221_v1 = vpop.xlane.xlu1 %2047  ;;  %2266 = vadd.xlane.f32.xlu0 %v7019_v28  ;;  %2595 = vmatmul.mubr.bf16.gmra.mxu1 %v2392_v52  ;;  %v2395_v16 = vpack.c.bf16 %v7224_v22, %v7217_v8  ;;  %v7235_v28 = vpop.eup %5530  ;;  %5546 = vpow2.f32 %v2206_v63 }
 0x32c   : > { %v7228_v48 = vpop.xlane.xlu0 %2044  ;;  %v2212_v32 = vmul.f32 1.442695, %v2103_v43  ;;  %5548 = vpow2.f32 %v2216_v46  ;;  %v2107_v43 = vsub.f32 %v7938_v2, %v7189_v44  ;;  %v7939_v46 = vld [vmem:[#allocation14_spill] sm:$0xff]  ;;  %v2224_v4 = vmul.f32 1.442695, %v2109_v0 }
 0x32d   : > { %2602 = vmatprep.mubr.bf16.mxu1 %v2395_v16  ;;  %5550 = vpow2.f32 %v2202_v29  ;;  %v2110_v29 = vsub.f32 %v7939_v46, %v7204_v37 }
 0x32e   : > { %2275 = vadd.xlane.f32.xlu1 %v7041_v54  ;;  %v7240_v59 = vpop.eup %5532  ;;  %v2106_v54 = vsub.f32 %v6849_v47, %v7189_v44  ;;  %v2210_v47 = vmul.f32 1.442695, %v2102_v19  ;;  %5552 = vpow2.f32 %v2212_v32  ;;  %v2220_v19 = vmul.f32 1.442695, %v2107_v43  ;;  %v7943_v43 = vld [vmem:[#allocation17_spill] sm:$0xff] }
 0x32f   : > { %2272 = vadd.xlane.f32.xlu0 %v7035_v60  ;;  %v7238_v55 = vpop.xlane.xlu1 %2056  ;;  %v5535_v52 = vpop.eup %5534  ;;  %v7936_v60 = vld [vmem:[#allocation11_spill] sm:$0xff] }
 0x330   : > { %v7244_v17 = vpop.xlane.xlu0 %2050  ;;  %v7248_v5 = vpop.eup %5536  ;;  %v2104_v50 = vsub.f32 %v7936_v60, %v7193_v7  ;;  %v2394_v30 = vpack.c.bf16 %v7235_v28, %v5535_v52  ;;  %5554 = vpow2.f32 %v2210_v47  ;;  %v7940_v60 = vld [vmem:[#allocation15_spill] sm:$0xff] }
 0x331   : > { %v2397_v15 = vpack.c.bf16 %v7240_v59, %v7248_v5  ;;  %v7266_v3 = vpop.eup %5538  ;;  %v2111_v32 = vsub.f32 %v7940_v60, %v7204_v37  ;;  %v2226_v37 = vmul.f32 1.442695, %v2110_v29  ;;  %v2298_v60 = vadd.f32 %v5535_v52, %v7217_v8  ;;  %v7945_v29 = vld [vmem:[#allocation16_spill] sm:$0xff]  ;;  %v7947_v8 = vld [vmem:[#allocation22_spill] sm:$0xff] }
 0x332   : > { %2281 = vadd.xlane.f32.xlu1 %v7057_v41  ;;  %v2218_v41 = vmul.f32 1.442695, %v2106_v54  ;;  %v2214_v63 = vmul.f32 1.442695, %v2104_v50  ;;  %v7271_v44 = vpop.eup %5540 }
 0x333   : > { %2278 = vadd.xlane.f32.xlu0 %v7937_v31  ;;  %2603 = vmatmul.mubr.bf16.gmra.mxu1 %v2394_v30  ;;  %v7263_v16 = vpop.xlane.xlu1 %3203  ;;  %v5543_v50 = vpop.eup %5542  ;;  %v7941_v30 = vld [vmem:[#allocation13_spill] sm:$0xff] }
 0x334   : > { %v7261_v7 = vpop.xlane.xlu0 %2053  ;;  %2610 = vmatprep.mubr.bf16.mxu1 %v2397_v15  ;;  %5556 = vpow2.f32 %v2218_v41  ;;  %v2108_v15 = vsub.f32 %v7941_v30, %v7209_v12  ;;  %v5545_v0 = vpop.eup %5544  ;;  %v2396_v2 = vpack.c.bf16 %v7266_v3, %v5543_v50  ;;  %v2228_v12 = vmul.f32 1.442695, %v2111_v32  ;;  %v7944_v41 = vld [vmem:[#allocation19_spill] sm:$0xff] }
 0x335   : > { %5558 = vpow2.f32 %v2214_v63  ;;  %v2115_v63 = vsub.f32 %v7944_v41, %v7221_v1  ;;  %v2295_v30 = vadd.f32 %v7207_v21, %v7202_v45  ;;  %v2118_v52 = vsub.f32 %v7947_v8, %v7261_v7  ;;  %v7948_v45 = vld [vmem:[#allocation23_spill] sm:$0xff] }
 0x336   : > { %2287 = vadd.xlane.f32.xlu1 %v7077_v33  ;;  %v2292_v33 = vadd.f32 %v7199_v51, %v7195_v40  ;;  %5560 = vpow2.f32 %v2224_v4  ;;  %v2113_v40 = vsub.f32 %v7943_v43, %v7228_v48  ;;  %v2399_v51 = vpack.c.bf16 %v7271_v44, %v5545_v0 }
 0x337   : > { %2284 = vadd.xlane.f32.xlu0 %v7067_v53  ;;  %v7942_v53 = vld [vmem:[#allocation18_spill] sm:$0xff]  ;;  %v7283_v47 = vpop.xlane.xlu1 %3209  ;;  %5562 = vpow2.f32 %v2220_v19  ;;  %v2112_v4 = vsub.f32 %v7945_v29, %v7228_v48  ;;  %v2236_v48 = vmul.f32 1.442695, %v2115_v63  ;;  %v2119_v21 = vsub.f32 %v7948_v45, %v7261_v7  ;;  %v7950_v63 = vld [vmem:[#allocation24_spill] sm:$0xff] }
 0x338   : > { %v7275_v54 = vpop.xlane.xlu0 %3200  ;;  %v2114_v31 = vsub.f32 %v7942_v53, %v7221_v1  ;;  %v5547_v1 = vpop.eup %5546  ;;  %5564 = vpow2.f32 %v2226_v37  ;;  %v2304_v43 = vadd.f32 %v5543_v50, %v7248_v5  ;;  %v7949_v37 = vld [vmem:[#allocation21_spill] sm:$0xff]  ;;  %v2242_v5 = vmul.f32 1.442695, %v2118_v52  ;;  %v7951_v50 = vld [vmem:[#allocation26_spill] sm:$0xff] }
 0x339   : > { %5566 = vpow2.f32 %v2228_v12  ;;  %v2230_v41 = vmul.f32 1.442695, %v2112_v4  ;;  %v7953_v52 = vld [vmem:[#allocation25_spill] sm:$0xff] }
 0x33a   : > { %2293 = vadd.xlane.f32.xlu1 %v2292_v33  ;;  %v2222_v33 = vmul.f32 1.442695, %v2108_v15  ;;  %v2234_v53 = vmul.f32 1.442695, %v2114_v31  ;;  %v7305_v15 = vpop.eup %5548  ;;  %v2121_v45 = vsub.f32 %v7953_v52, %v7238_v55 }
 0x33b   : > { %2290 = vadd.xlane.f32.xlu0 %v7087_v10  ;;  %2611 = vmatmul.mubr.bf16.gmra.mxu1 %v2396_v2  ;;  %v7946_v10 = vld [vmem:[#allocation20_spill] sm:$0xff]  ;;  %v2232_v2 = vmul.f32 1.442695, %v2113_v40  ;;  %v2117_v40 = vsub.f32 %v7949_v37, %v7244_v17 }
 0x33c   : > { %v7292_v46 = vpop.xlane.xlu0 %3206  ;;  %2618 = vmatprep.mubr.bf16.mxu1 %v2399_v51  ;;  %v2116_v19 = vsub.f32 %v7946_v10, %v7244_v17  ;;  %v5551_v51 = vpop.eup %5550  ;;  %5568 = vpow2.f32 %v2222_v33  ;;  %v3295_v33 = vsub.f32 %v7951_v50, %v7275_v54 }
 0x33d   : > { %v5553_v29 = vpop.eup %5552  ;;  %5570 = vpow2.f32 %v2234_v53  ;;  %v2398_v7 = vpack.c.bf16 %v5547_v1, %v5551_v51 }
 0x33e   : > { %2299 = vadd.xlane.f32.xlu1 %v2298_v60  ;;  %v7301_v32 = vpop.xlane.xlu1 %3215  ;;  %v2301_v60 = vadd.f32 %v7235_v28, %v7224_v22  ;;  %v2238_v12 = vmul.f32 1.442695, %v2116_v19  ;;  %5572 = vpow2.f32 %v2232_v2  ;;  %v2401_v4 = vpack.c.bf16 %v7305_v15, %v5553_v29  ;;  %v7952_v28 = vld [vmem:[#allocation27_spill] sm:$0xff]  ;;  %v5555_v8 = vpop.eup %5554 }
 0x33f   : > { %2296 = vadd.xlane.f32.xlu0 %v2295_v30  ;;  %v2120_v30 = vsub.f32 %v7950_v63, %v7238_v55  ;;  %5574 = vpow2.f32 %v2236_v48  ;;  %v2244_v22 = vmul.f32 1.442695, %v2119_v21  ;;  %v3296_v17 = vsub.f32 %v7952_v28, %v7275_v54  ;;  %v7954_v54 = vld [vmem:[#allocation28_spill] sm:$0xff] }
 0x340   : > { %v7309_v31 = vpop.xlane.xlu0 %3212  ;;  %v2310_v19 = vadd.f32 %v5551_v51, %v5545_v0  ;;  %5576 = vpow2.f32 %v2230_v41  ;;  %v2240_v2 = vmul.f32 1.442695, %v2117_v40  ;;  %v3297_v37 = vsub.f32 %v7954_v54, %v7263_v16  ;;  %v7955_v41 = vld [vmem:[#allocation30_spill] sm:$0xff] }
 0x341   : > { %v7329_v48 = vpop.eup %5556  ;;  %5578 = vpow2.f32 %v2238_v12  ;;  %v2246_v21 = vmul.f32 1.442695, %v2120_v30  ;;  %v3359_v51 = vmul.f32 1.442695, %v3295_v33  ;;  %v3299_v55 = vsub.f32 %v7955_v41, %v7292_v46  ;;  %v7958_v33 = vld [vmem:[#allocation32_spill] sm:$0xff] }
 0x342   : > { %2305 = vadd.xlane.f32.xlu1 %v2304_v43  ;;  %v1048_v10 = vpop.permute.xlu1 %1047  ;;  %v2307_v43 = vadd.f32 %v7266_v3, %v7240_v59  ;;  %v5559_v0 = vpop.eup %5558  ;;  %5580 = vpow2.f32 %v2242_v5  ;;  %v7956_v59 = vld [vmem:[#allocation31_spill] sm:$0xff]  ;;  %v2316_v63 = vadd.f32 %v5555_v8, %v5553_v29  ;;  %v2248_v30 = vmul.f32 1.442695, %v2121_v45  ;;  %v7961_v45 = vld [vmem:[#allocation33_spill] sm:$0xff] }
 0x343   : > { %1143 = vst.msk [vmem:[#allocation3 + $0x84] sm:$0xf] %vm755_vm1, %v1048_v10  ;;  %2302 = vadd.xlane.f32.xlu0 %v2301_v60  ;;  %2619 = vmatmul.mubr.bf16.gmra.mxu1 %v2398_v7  ;;  %v5561_v40 = vpop.eup %5560  ;;  %5582 = vpow2.f32 %v2244_v22  ;;  %v3361_v60 = vmul.f32 1.442695, %v3296_v17  ;;  %v3300_v3 = vsub.f32 %v7956_v59, %v7292_v46  ;;  %v7957_v7 = vld [vmem:[#allocation29_spill] sm:$0xff]  ;;  %v2313_v5 = vadd.f32 %v5547_v1, %v7271_v44  ;;  %v7959_v46 = vld [vmem:[#allocation34_spill] sm:$0xff] }
 0x344   : > { %v1046_v53 = vpop.permute.xlu0 %1045  ;;  %2626 = vmatprep.mubr.bf16.mxu1 %v2401_v4  ;;  %v5563_v12 = vpop.eup %5562  ;;  %5584 = vpow2.f32 %v2240_v2  ;;  %v3298_v10 = vsub.f32 %v7957_v7, %v7263_v16  ;;  %v3363_v50 = vmul.f32 1.442695, %v3297_v37  ;;  %v3301_v4 = vsub.f32 %v7958_v33, %v7283_v47  ;;  %v7960_v44 = vld [vmem:[#allocation35_spill] sm:$0xff] }
 0x345   : > { %1142 = vst.msk [vmem:[#allocation3 + $0x80] sm:$0xf] %vm755_vm1, %v1046_v53  ;;  %5586 = vpow2.f32 %v2246_v21  ;;  %v2400_v28 = vpack.c.bf16 %v5559_v0, %v5555_v8  ;;  %v3367_v22 = vmul.f32 1.442695, %v3299_v55  ;;  %v3303_v29 = vsub.f32 %v7959_v46, %v7309_v31  ;;  %v7344_v53 = vpop.eup %5564  ;;  %v7962_v55 = vld [vmem:[#allocation36_spill] sm:$0xff] }
 0x346   : > { %2311 = vadd.xlane.f32.xlu1 %v2310_v19  ;;  %5588 = vpow2.f32 %v3359_v51  ;;  %v2403_v17 = vpack.c.bf16 %v5561_v40, %v5563_v12  ;;  %v3369_v16 = vmul.f32 1.442695, %v3300_v3  ;;  %v3304_v1 = vsub.f32 %v7960_v44, %v7309_v31  ;;  %v5567_v8 = vpop.eup %5566 }
 0x347   : > { %2308 = vadd.xlane.f32.xlu0 %v2307_v43  ;;  %5590 = vpow2.f32 %v3361_v60  ;;  %v2322_v19 = vadd.f32 %v5563_v12, %v7329_v48  ;;  %v3365_v52 = vmul.f32 1.442695, %v3298_v10  ;;  %v3302_v43 = vsub.f32 %v7961_v45, %v7283_v47 }
 0x348   : > { %5592 = vpow2.f32 %v2248_v30  ;;  %v2319_v21 = vadd.f32 %v5559_v0, %v7305_v15  ;;  %v3371_v37 = vmul.f32 1.442695, %v3301_v4  ;;  %v3375_v31 = vmul.f32 1.442695, %v3303_v29  ;;  %v7963_v0 = vld [vmem:[#allocation37_spill] sm:$0xff] }
 0x349   : > { %v5569_v54 = vpop.eup %5568  ;;  %5594 = vpow2.f32 %v3363_v50  ;;  %v3305_v60 = vsub.f32 %v7962_v55, %v7301_v32  ;;  %v3377_v59 = vmul.f32 1.442695, %v3304_v1  ;;  %v2328_v47 = vadd.f32 %v5567_v8, %v7344_v53 }
 0x34a   : > { %2317 = vadd.xlane.f32.xlu1 %v2316_v63  ;;  %v7352_v51 = vpop.eup %5570  ;;  %5596 = vpow2.f32 %v3367_v22  ;;  %v3373_v15 = vmul.f32 1.442695, %v3302_v43  ;;  %v3306_v63 = vsub.f32 %v7963_v0, %v7301_v32  ;;  %v2325_v12 = vadd.f32 %v5569_v54, %v5561_v40 }
 0x34b   : > { %2314 = vadd.xlane.f32.xlu0 %v2313_v5  ;;  %2627 = vmatmul.mubr.bf16.gmra.mxu1 %v2400_v28  ;;  %v5573_v41 = vpop.eup %5572  ;;  %5598 = vpow2.f32 %v3369_v16  ;;  %v2402_v7 = vpack.c.bf16 %v5569_v54, %v7329_v48  ;;  %v3379_v33 = vmul.f32 1.442695, %v3305_v60 }
 0x34c   : > { %v5461_v2 = vld [vmem:[#allocation3 + $0x80] sm:$0xff]   ;;  %2634 = vmatprep.mubr.bf16.mxu1 %v2403_v17  ;;  %v5575_v3 = vpop.eup %5574  ;;  %5600 = vpow2.f32 %v3365_v52  ;;  %v2405_v5 = vpack.c.bf16 %v5573_v41, %v5567_v8  ;;  %v3381_v22 = vmul.f32 1.442695, %v3306_v63 }
 0x34d   : > { %5046 = vmatpush3.bf16.msra.mxu1 %v5461_v2  ;;  %v5577_v30 = vpop.eup %5576  ;;  %5602 = vpow2.f32 %v3371_v37  ;;  %v2334_v4 = vadd.f32 %v5575_v3, %v7352_v51 }
 0x34e   : > { %2323 = vadd.xlane.f32.xlu1 %v2322_v19  ;;  %v5579_v10 = vpop.eup %5578  ;;  %5604 = vpow2.f32 %v3375_v31  ;;  %v2331_v32 = vadd.f32 %v5577_v30, %v5573_v41  ;;  %v2404_v1 = vpack.c.bf16 %v5577_v30, %v7344_v53 }
 0x34f   : > { %2320 = vadd.xlane.f32.xlu0 %v2319_v21  ;;  %v5581_v50 = vpop.eup %5580  ;;  %5606 = vpow2.f32 %v3377_v59  ;;  %v2406_v60 = vpack.c.bf16 %v5579_v10, %v7352_v51  ;;  %v2715_v51 = vld [vmem:[%s7802_s4] sm:$0xf] }
 0x350   : > { %v5583_v28 = vpop.eup %5582  ;;  %5608 = vpow2.f32 %v3373_v15  ;;  %5334 = vmatprep.subr.msk.bf16.mxu1 %vm4002_vm3, %v2715_v51 }
 0x351   : > { %v5585_v40 = vpop.eup %5584  ;;  %5610 = vpow2.f32 %v3379_v33  ;;  %v2340_v29 = vadd.f32 %v5583_v28, %v5581_v50 }
 0x352   : > { %2329 = vadd.xlane.f32.xlu1 %v2328_v47  ;;  %v5587_v46 = vpop.eup %5586  ;;  %5612 = vpow2.f32 %v3381_v22  ;;  %v2337_v16 = vadd.f32 %v5585_v40, %v5579_v10  ;;  %v2407_v2 = vpack.c.bf16 %v5585_v40, %v5575_v3 }
 0x353   : > { %2326 = vadd.xlane.f32.xlu0 %v2325_v12  ;;  %2635 = vmatmul.mubr.bf16.gmra.mxu1 %v2402_v7  ;;  %v5589_v48 = vpop.eup %5588  ;;  %v2408_v12 = vpack.c.bf16 %v5587_v46, %v5581_v50 }
 0x354   : > { %2642 = vmatprep.mubr.bf16.mxu1 %v2405_v5  ;;  %v5591_v17 = vpop.eup %5590 }
 0x355   : > { %v5593_v44 = vpop.eup %5592  ;;  %v3487_v52 = vadd.f32 %v5591_v17, %v5589_v48 }
 0x356   : > { %2335 = vadd.xlane.f32.xlu1 %v2334_v4  ;;  %v5595_v19 = vpop.eup %5594  ;;  %v2343_v43 = vadd.f32 %v5593_v44, %v5587_v46  ;;  %v2409_v59 = vpack.c.bf16 %v5593_v44, %v5583_v28  ;;  %v7964_v4 = vld [vmem:[#allocation39_spill] sm:$0xff]  ;;  %v4216_v44 = vsel %vm4002_vm3, %v2715_v51, 0 }
 0x357   : > { %2332 = vadd.xlane.f32.xlu0 %v2331_v32  ;;  %v7362_v8 = vpop.eup %5596  ;;  %v3615_v7 = vpack.c.bf16 %v5595_v19, %v5589_v48  ;;  %v7965_v32 = vld [vmem:[#allocation38_spill] sm:$0xff] }
 0x358   : > { %v5599_v45 = vpop.eup %5598 }
 0x359   : > { %v5601_v21 = vpop.eup %5600  ;;  %v3493_v31 = vadd.f32 %v5599_v45, %v7362_v8 }
 0x35a   : > { %2341 = vadd.xlane.f32.xlu1 %v2340_v29  ;;  %v5603_v54 = vpop.eup %5602  ;;  %v3490_v41 = vadd.f32 %v5601_v21, %v5595_v19  ;;  %v3616_v30 = vpack.c.bf16 %v5601_v21, %v5591_v17 }
 0x35b   : > { %2338 = vadd.xlane.f32.xlu0 %v2337_v16  ;;  %2643 = vmatmul.mubr.bf16.gmra.mxu1 %v2404_v1  ;;  %v7364_v37 = vpop.eup %5604 }
 0x35c   : > { %2650 = vmatprep.mubr.bf16.mxu1 %v2407_v2  ;;  %v7367_v53 = vpop.eup %5606  ;;  %v7966_v2 = vld [vmem:[#allocation40_spill] sm:$0xff] }
 0x35d   : > { %v5609_v55 = vpop.eup %5608  ;;  %v3499_v47 = vadd.f32 %v7367_v53, %v7364_v37 }
 0x35e   : > { %3488 = vadd.xlane.f32.xlu1 %v3487_v52  ;;  %v7372_v3 = vpop.eup %5610  ;;  %v3496_v15 = vadd.f32 %v5609_v55, %v5603_v54  ;;  %v3618_v10 = vpack.c.bf16 %v5609_v55, %v5599_v45 }
 0x35f   : > { %2344 = vadd.xlane.f32.xlu0 %v2343_v43  ;;  %v5613_v0 = vpop.eup %5612 }
 0x360   : > { %v3502_v63 = vadd.f32 %v5613_v0, %v7372_v3 }
 0x362   : > { %3494 = vadd.xlane.f32.xlu1 %v3493_v31  ;;  %v3617_v31 = vpack.c.bf16 %v5603_v54, %v7362_v8 }
 0x363   : > { %3491 = vadd.xlane.f32.xlu0 %v3490_v41  ;;  %2651 = vmatmul.mubr.bf16.gmra.mxu1 %v2406_v60  ;;  %v3620_v60 = vpack.c.bf16 %v5613_v0, %v7367_v53 }
 0x364   : > { %2658 = vmatprep.mubr.bf16.mxu1 %v2409_v59 }
 0x366   : > { %3500 = vadd.xlane.f32.xlu1 %v3499_v47  ;;  %v7969_v47 = vld [vmem:[#allocation44_spill] sm:$0xff] }
 0x367   : > { %3497 = vadd.xlane.f32.xlu0 %v3496_v15 }
 0x36b   : > { %3503 = vadd.xlane.f32.xlu0 %v3502_v63  ;;  %2659 = vmatmul.mubr.bf16.gmra.mxu1 %v2408_v12 }
 0x36c   : > { %3775 = vmatprep.mubr.bf16.mxu1 %v3616_v30  ;;  %v7970_v30 = vld [vmem:[#allocation42_spill] sm:$0xff] }
 0x373   : > { %v3222_v5 = vpop.xlane.xlu1 %3221  ;;  %3776 = vmatmul.mubr.bf16.vlgmr.msra.gmra.mxu1 %v3615_v7 }
 0x374   : > { %v3309_v33 = vsub.f32 %v6965_v35, %v3222_v5  ;;  %v3310_v28 = vsub.f32 %v7964_v4, %v3222_v5  ;;  %v3219_v50 = vpop.xlane.xlu0 %3218  ;;  %3783 = vmatprep.mubr.bf16.mxu1 %v3618_v10  ;;  %5284 = vmatpush3.bf16.msra.mxu1 %v4216_v44 }
 0x375   : > { %v3307_v22 = vsub.f32 %v6959_v24, %v3219_v50  ;;  %v3308_v40 = vsub.f32 %v7965_v32, %v3219_v50  ;;  %v7967_v24 = vld [vmem:[#allocation41_spill] sm:$0xff] }
 0x376   : > { %v3387_v46 = vmul.f32 1.442695, %v3309_v33  ;;  %v3389_v29 = vmul.f32 1.442695, %v3310_v28 }
 0x377   : > { %v3383_v17 = vmul.f32 1.442695, %v3307_v22  ;;  %v3385_v16 = vmul.f32 1.442695, %v3308_v40  ;;  %v3231_v48 = vpop.xlane.xlu1 %3230  ;;  %v3619_v22 = vpack.c.bf16 %v7372_v3, %v7364_v37 }
 0x378   : > { %5614 = vpow2.f32 %v3387_v46  ;;  %v3315_v1 = vsub.f32 %v6987_v23, %v3231_v48  ;;  %v3316_v35 = vsub.f32 %v6989_v61, %v3231_v48  ;;  %v3225_v19 = vpop.xlane.xlu0 %3224  ;;  %v7968_v61 = vld [vmem:[#allocation43_spill] sm:$0xff] }
 0x379   : > { %5616 = vpow2.f32 %v3389_v29  ;;  %v3311_v52 = vsub.f32 %v7966_v2, %v3225_v19  ;;  %v3312_v45 = vsub.f32 %v7967_v24, %v3225_v19 }
 0x37a   : > { %5618 = vpow2.f32 %v3383_v17  ;;  %v3399_v43 = vmul.f32 1.442695, %v3315_v1  ;;  %v3401_v21 = vmul.f32 1.442695, %v3316_v35 }
 0x37b   : > { %5620 = vpow2.f32 %v3385_v16  ;;  %v3391_v41 = vmul.f32 1.442695, %v3311_v52  ;;  %v3393_v55 = vmul.f32 1.442695, %v3312_v45  ;;  %v3237_v23 = vpop.xlane.xlu1 %3236  ;;  %3784 = vmatmul.mubr.bf16.gmra.mxu1 %v3617_v31  ;;  %v7972_v31 = vld [vmem:[#allocation46_spill] sm:$0xff] }
 0x37c   : > { %5622 = vpow2.f32 %v3399_v43  ;;  %v3319_v59 = vsub.f32 %v7968_v61, %v3237_v23  ;;  %v3320_v15 = vsub.f32 %v7969_v47, %v3237_v23  ;;  %v3228_v63 = vpop.xlane.xlu0 %3227  ;;  %3791 = vmatprep.mubr.bf16.mxu1 %v3620_v60  ;;  %v7971_v43 = vld [vmem:[#allocation45_spill] sm:$0xff] }
 0x37d   : > { %5624 = vpow2.f32 %v3401_v21  ;;  %v3313_v12 = vsub.f32 %v6979_v57, %v3228_v63  ;;  %v3314_v51 = vsub.f32 %v7970_v30, %v3228_v63 }
 0x37e   : > { %5626 = vpow2.f32 %v3391_v41  ;;  %v3407_v8 = vmul.f32 1.442695, %v3319_v59  ;;  %v3409_v54 = vmul.f32 1.442695, %v3320_v15 }
 0x37f   : > { %5628 = vpow2.f32 %v3393_v55  ;;  %v3395_v7 = vmul.f32 1.442695, %v3313_v12  ;;  %v3397_v53 = vmul.f32 1.442695, %v3314_v51  ;;  %v3243_v0 = vpop.xlane.xlu1 %3242 }
 0x380   : > { %5630 = vpow2.f32 %v3407_v8  ;;  %v3323_v10 = vsub.f32 %v7023_v25, %v3243_v0  ;;  %v3324_v5 = vsub.f32 %v7025_v39, %v3243_v0  ;;  %v3234_v33 = vpop.xlane.xlu0 %3233 }
 0x381   : > { %5632 = vpow2.f32 %v3409_v54  ;;  %v3317_v4 = vsub.f32 %v6997_v56, %v3234_v33  ;;  %v3318_v57 = vsub.f32 %v6999_v58, %v3234_v33 }
 0x382   : > { %5634 = vpow2.f32 %v3395_v7  ;;  %v3415_v28 = vmul.f32 1.442695, %v3323_v10  ;;  %v3417_v50 = vmul.f32 1.442695, %v3324_v5  ;;  %v7974_v10 = vld [vmem:[#allocation49_spill] sm:$0xff] }
 0x383   : > { %5636 = vpow2.f32 %v3397_v53  ;;  %v3403_v32 = vmul.f32 1.442695, %v3317_v4  ;;  %v3405_v40 = vmul.f32 1.442695, %v3318_v57  ;;  %v3249_v46 = vpop.xlane.xlu1 %3248  ;;  %3792 = vmatmul.mubr.bf16.gmra.mxu1 %v3619_v22  ;;  %v7973_v53 = vld [vmem:[#allocation47_spill] sm:$0xff] }
 0x384   : > { %5638 = vpow2.f32 %v3415_v28  ;;  %v3327_v25 = vsub.f32 %v7039_v18, %v3249_v46  ;;  %v3328_v39 = vsub.f32 %v7046_v36, %v3249_v46  ;;  %v3240_v29 = vpop.xlane.xlu0 %3239 }
 0x385   : > { %v5615_v56 = vpop.eup %5614  ;;  %5640 = vpow2.f32 %v3417_v50  ;;  %v7402_v58 = vpop.f32.mrf.mxu1  ;;  %v3321_v17 = vsub.f32 %v7015_v6, %v3240_v29  ;;  %v3322_v16 = vsub.f32 %v7017_v42, %v3240_v29 }
 0x386   : > { %v5617_v37 = vpop.eup %5616  ;;  %5642 = vpow2.f32 %v3403_v32  ;;  %v3423_v3 = vmul.f32 1.442695, %v3327_v25  ;;  %v3425_v48 = vmul.f32 1.442695, %v3328_v39  ;;  %v7975_v25 = vld [vmem:[#allocation54_spill] sm:$0xff] }
 0x387   : > { %v5619_v44 = vpop.eup %5618  ;;  %5644 = vpow2.f32 %v3405_v40  ;;  %v3411_v1 = vmul.f32 1.442695, %v3321_v17  ;;  %v3413_v35 = vmul.f32 1.442695, %v3322_v16  ;;  %v7406_v18 = vpop.f32.mrf.mxu1  ;;  %v3508_v19 = vadd.f32 %v5617_v37, %v5615_v56  ;;  %v7976_v16 = vld [vmem:[#allocation50_spill] sm:$0xff] }
 0x388   : > { %v3255_v36 = vpop.xlane.xlu1 %3254  ;;  %v5621_v2 = vpop.eup %5620  ;;  %5646 = vpow2.f32 %v3423_v3  ;;  %v3621_v63 = vpack.c.bf16 %v5615_v56, %v5619_v44  ;;  %v7977_v3 = vld [vmem:[#allocation51_spill] sm:$0xff] }
 0x389   : > { %v3331_v52 = vsub.f32 %v7055_v49, %v3255_v36  ;;  %v3332_v6 = vsub.f32 %v7059_v27, %v3255_v36  ;;  %v3246_v24 = vpop.xlane.xlu0 %3245  ;;  %v7410_v42 = vpop.eup %5622  ;;  %5648 = vpow2.f32 %v3425_v48  ;;  %3509 = vadd.xlane.f32.xlu0 %v3508_v19  ;;  %v3505_v55 = vadd.f32 %v5621_v2, %v5619_v44 }
 0x38a   : > { %v7412_v45 = vpop.f32.mrf.mxu1  ;;  %v3325_v21 = vsub.f32 %v7971_v43, %v3246_v24  ;;  %v3326_v41 = vsub.f32 %v7972_v31, %v3246_v24  ;;  %v7416_v60 = vpop.eup %5624  ;;  %5650 = vpow2.f32 %v3411_v1  ;;  %v3622_v49 = vpack.c.bf16 %v5617_v37, %v5621_v2  ;;  %v7978_v31 = vld [vmem:[#allocation57_spill] sm:$0xff] }
 0x38b   : > { %v3431_v23 = vmul.f32 1.442695, %v3331_v52  ;;  %v3433_v61 = vmul.f32 1.442695, %v3332_v6  ;;  %v7418_v59 = vpop.eup %5626  ;;  %5652 = vpow2.f32 %v3413_v35  ;;  %3506 = vadd.xlane.f32.xlu1 %v3505_v55  ;;  %v3517_v56 = vadd.f32 %v7416_v60, %v7410_v42  ;;  %v7979_v55 = vld [vmem:[#allocation58_spill] sm:$0xff] }
 0x38c   : > { %v3419_v27 = vmul.f32 1.442695, %v3325_v21  ;;  %v3421_v47 = vmul.f32 1.442695, %v3326_v41  ;;  %v7420_v15 = vpop.f32.mrf.mxu1  ;;  %v3261_v12 = vpop.xlane.xlu1 %3260  ;;  %3799 = vmatprep.mubr.bf16.mxu1 %v3622_v49 }
 0x38d   : > { %v5629_v30 = vpop.eup %5628  ;;  %5654 = vpow2.f32 %v3431_v23  ;;  %v3335_v51 = vsub.f32 %v7075_v9, %v3261_v12  ;;  %v3336_v8 = vsub.f32 %v7079_v34, %v3261_v12  ;;  %v3252_v54 = vpop.xlane.xlu0 %3251  ;;  %3800 = vmatmul.mubr.bf16.gmra.mxu1 %v3621_v63  ;;  %v7981_v12 = vld [vmem:[#allocation53_spill] sm:$0xff] }
 0x38e   : > { %v7424_v7 = vpop.eup %5630  ;;  %5656 = vpow2.f32 %v3433_v61  ;;  %v3329_v0 = vsub.f32 %v7973_v53, %v3252_v54  ;;  %v3330_v5 = vsub.f32 %v7974_v10, %v3252_v54  ;;  %v3511_v33 = vadd.f32 %v5629_v30, %v7418_v59  ;;  %v7431_v50 = vpop.f32.mrf.mxu1 }
 0x38f   : > { %v7429_v4 = vpop.eup %5632  ;;  %5658 = vpow2.f32 %v3419_v27  ;;  %v3439_v57 = vmul.f32 1.442695, %v3335_v51  ;;  %v3441_v28 = vmul.f32 1.442695, %v3336_v8 }
 0x390   : > { %v5635_v9 = vpop.eup %5634  ;;  %5660 = vpow2.f32 %v3421_v47  ;;  %v3427_v34 = vmul.f32 1.442695, %v3329_v0  ;;  %v3429_v22 = vmul.f32 1.442695, %v3330_v5  ;;  %3512 = vadd.xlane.f32.xlu1 %v3511_v33  ;;  %v3267_v32 = vpop.xlane.xlu1 %3266  ;;  %v3523_v49 = vadd.f32 %v7429_v4, %v7424_v7  ;;  %v7980_v47 = vld [vmem:[#allocation52_spill] sm:$0xff] }
 0x391   : > { %v5637_v40 = vpop.eup %5636  ;;  %5662 = vpow2.f32 %v3439_v57  ;;  %v3339_v46 = vsub.f32 %v7095_v13, %v3267_v32  ;;  %v3340_v39 = vsub.f32 %v7975_v25, %v3267_v32  ;;  %v3258_v29 = vpop.xlane.xlu0 %3257  ;;  %v3623_v24 = vpack.c.bf16 %v5635_v9, %v7418_v59  ;;  %v7984_v25 = vld [vmem:[#allocation55_spill] sm:$0xff] }
 0x392   : > { %v7437_v17 = vpop.eup %5638  ;;  %5664 = vpow2.f32 %v3441_v28  ;;  %v3333_v37 = vsub.f32 %v7976_v16, %v3258_v29  ;;  %v3334_v48 = vsub.f32 %v7977_v3, %v3258_v29  ;;  %v3624_v44 = vpack.c.bf16 %v5637_v40, %v5629_v30  ;;  %v7443_v35 = vpop.f32.mrf.mxu1  ;;  %v7985_v29 = vld [vmem:[#allocation56_spill] sm:$0xff] }
 0x393   : > { %v7441_v1 = vpop.eup %5640  ;;  %5666 = vpow2.f32 %v3427_v34  ;;  %v3447_v13 = vmul.f32 1.442695, %v3339_v46  ;;  %v3449_v36 = vmul.f32 1.442695, %v3340_v39  ;;  %v3514_v19 = vadd.f32 %v5637_v40, %v5635_v9  ;;  %v7982_v9 = vld [vmem:[#allocation61_spill] sm:$0xff] }
 0x394   : > { %v7445_v2 = vpop.eup %5642  ;;  %5668 = vpow2.f32 %v3429_v22  ;;  %v3435_v52 = vmul.f32 1.442695, %v3333_v37  ;;  %v3437_v6 = vmul.f32 1.442695, %v3334_v48  ;;  %3807 = vmatprep.mubr.bf16.mxu1 %v3624_v44  ;;  %3518 = vadd.xlane.f32.xlu1 %v3517_v56  ;;  %v3273_v43 = vpop.xlane.xlu1 %3272  ;;  %v7983_v22 = vld [vmem:[#allocation62_spill] sm:$0xff]  ;;  %v3529_v46 = vadd.f32 %v7441_v1, %v7437_v17 }
 0x395   : > { %v5645_v21 = vpop.eup %5644  ;;  %5670 = vpow2.f32 %v3447_v13  ;;  %3515 = vadd.xlane.f32.xlu0 %v3514_v19  ;;  %v3343_v41 = vsub.f32 %v7978_v31, %v3273_v43  ;;  %v3344_v23 = vsub.f32 %v7979_v55, %v3273_v43  ;;  %v3264_v61 = vpop.xlane.xlu0 %3263  ;;  %3808 = vmatmul.mubr.bf16.gmra.mxu1 %v3623_v24  ;;  %v3625_v19 = vpack.c.bf16 %v7445_v2, %v7410_v42 }
 0x396   : > { %v7452_v27 = vpop.eup %5646  ;;  %5672 = vpow2.f32 %v3449_v36  ;;  %v3337_v63 = vsub.f32 %v7980_v47, %v3264_v61  ;;  %v3338_v59 = vsub.f32 %v7981_v12, %v3264_v61  ;;  %v3520_v30 = vadd.f32 %v5645_v21, %v7445_v2  ;;  %v7459_v8 = vpop.f32.mrf.mxu1 }
 0x397   : > { %v7457_v51 = vpop.eup %5648  ;;  %5674 = vpow2.f32 %v3435_v52  ;;  %v3455_v54 = vmul.f32 1.442695, %v3343_v41  ;;  %v3457_v53 = vmul.f32 1.442695, %v3344_v23  ;;  %v3626_v0 = vpack.c.bf16 %v5645_v21, %v7416_v60  ;;  %v7986_v21 = vld [vmem:[#allocation63_spill] sm:$0xff]  ;;  %v7987_v41 = vld [vmem:[#allocation64_spill] sm:$0xff] }
 0x398   : > { %v7462_v10 = vpop.eup %5650  ;;  %5676 = vpow2.f32 %v3437_v6  ;;  %v3443_v5 = vmul.f32 1.442695, %v3337_v63  ;;  %v3445_v33 = vmul.f32 1.442695, %v3338_v59  ;;  %3524 = vadd.xlane.f32.xlu1 %v3523_v49  ;;  %v3279_v57 = vpop.xlane.xlu1 %3278  ;;  %v7988_v49 = vld [vmem:[#allocation59_spill] sm:$0xff]  ;;  %v7989_v63 = vld [vmem:[#allocation60_spill] sm:$0xff] }
 0x399   : > { %v5653_v28 = vpop.eup %5652  ;;  %5678 = vpow2.f32 %v3455_v54  ;;  %3521 = vadd.xlane.f32.xlu0 %v3520_v30  ;;  %3815 = vmatprep.mubr.bf16.mxu1 %v3626_v0  ;;  %v3347_v34 = vsub.f32 %v7982_v9, %v3279_v57  ;;  %v3348_v32 = vsub.f32 %v7983_v22, %v3279_v57  ;;  %v3270_v40 = vpop.xlane.xlu0 %3269  ;;  %v3535_v30 = vadd.f32 %v7457_v51, %v7452_v27 }
 0x39a   : > { %v7468_v60 = vpop.eup %5654  ;;  %5680 = vpow2.f32 %v3457_v53  ;;  %v3341_v39 = vsub.f32 %v7984_v25, %v3270_v40  ;;  %v3342_v56 = vsub.f32 %v7985_v29, %v3270_v40  ;;  %v3526_v16 = vadd.f32 %v5653_v28, %v7462_v10  ;;  %v7475_v3 = vpop.f32.mrf.mxu1 }
 0x39b   : > { %v7473_v37 = vpop.eup %5656  ;;  %5682 = vpow2.f32 %v3443_v5  ;;  %v3463_v48 = vmul.f32 1.442695, %v3347_v34  ;;  %v3465_v24 = vmul.f32 1.442695, %v3348_v32  ;;  %v3628_v43 = vpack.c.bf16 %v5653_v28, %v7429_v4 }
 0x39c   : > { %v7477_v44 = vpop.eup %5658  ;;  %5684 = vpow2.f32 %v3445_v33  ;;  %v3451_v13 = vmul.f32 1.442695, %v3341_v39  ;;  %v3453_v36 = vmul.f32 1.442695, %v3342_v56  ;;  %3530 = vadd.xlane.f32.xlu1 %v3529_v46  ;;  %v3285_v52 = vpop.xlane.xlu1 %3284  ;;  %v3541_v46 = vadd.f32 %v7473_v37, %v7468_v60 }
 0x39d   : > { %v7481_v6 = vpop.eup %5660  ;;  %3527 = vadd.xlane.f32.xlu0 %v3526_v16  ;;  %v3351_v31 = vsub.f32 %v7986_v21, %v3285_v52  ;;  %v3352_v55 = vsub.f32 %v7987_v41, %v3285_v52  ;;  %v3276_v23 = vpop.xlane.xlu0 %3275  ;;  %5686 = vpow2.f32 %v3463_v48  ;;  %3816 = vmatmul.mubr.bf16.gmra.mxu1 %v3625_v19  ;;  %v7990_v48 = vld [vmem:[#allocation5_spill] sm:$0xff] }
 0x39e   : > { %v7486_v61 = vpop.eup %5662  ;;  %v3345_v47 = vsub.f32 %v7988_v49, %v3276_v23  ;;  %v3346_v42 = vsub.f32 %v7989_v63, %v3276_v23  ;;  %v3532_v2 = vadd.f32 %v7481_v6, %v7477_v44  ;;  %v7494_v59 = vpop.f32.mrf.mxu1  ;;  %5688 = vpow2.f32 %v3451_v13  ;;  %3823 = vmatprep.mubr.bf16.mxu1 %v3628_v43 }
 0x39f   : > { %v7492_v12 = vpop.eup %5664  ;;  %v3471_v4 = vmul.f32 1.442695, %v3351_v31  ;;  %5690 = vpow2.f32 %v3453_v36  ;;  %v3473_v33 = vmul.f32 1.442695, %v3352_v55  ;;  %v3630_v36 = vpack.c.bf16 %v7481_v6, %v7441_v1 }
 0x3a0   : > { %v7498_v54 = vpop.eup %5666  ;;  %v3459_v53 = vmul.f32 1.442695, %v3345_v47  ;;  %v3461_v0 = vmul.f32 1.442695, %v3346_v42  ;;  %5692 = vpow2.f32 %v3465_v24  ;;  %3536 = vadd.xlane.f32.xlu1 %v3535_v30  ;;  %v7510_v40 = vpop.f32.mrf.mxu1  ;;  %v3547_v1 = vadd.f32 %v7492_v12, %v7486_v61 }
 0x3a1   : > { %v7500_v5 = vpop.eup %5668  ;;  %3533 = vadd.xlane.f32.xlu0 %v3532_v2  ;;  %v3282_v57 = vpop.xlane.xlu0 %3281  ;;  %5694 = vpow2.f32 %v3471_v4 }
 0x3a2   : > { %v7502_v28 = vpop.eup %5670  ;;  %v3349_v9 = vsub.f32 %v7135_v62, %v3282_v57  ;;  %v3350_v34 = vsub.f32 %v7137_v14, %v3282_v57  ;;  %v3538_v22 = vadd.f32 %v7500_v5, %v7498_v54  ;;  %5696 = vpow2.f32 %v3459_v53 }
 0x3a3   : > { %v7508_v32 = vpop.eup %5672  ;;  %5698 = vpow2.f32 %v3461_v0  ;;  %v3627_v62 = vpack.c.bf16 %v7462_v10, %v7424_v7  ;;  %v3291_v14 = vpop.xlane.xlu1 %3290  ;;  %v7991_v10 = vld [vmem:[#allocation65_spill] sm:$0xff]  ;;  %v3632_v57 = vpack.c.bf16 %v7500_v5, %v7457_v51 }
 0x3a4   : > { %v7514_v25 = vpop.eup %5674  ;;  %v3467_v39 = vmul.f32 1.442695, %v3349_v9  ;;  %v3469_v29 = vmul.f32 1.442695, %v3350_v34  ;;  %5700 = vpow2.f32 %v3473_v33  ;;  %3542 = vadd.xlane.f32.xlu1 %v3541_v46  ;;  %v3355_v16 = vsub.f32 %v7161_v20, %v3291_v14  ;;  %v7532_v20 = vpop.f32.mrf.mxu1 }
 0x3a5   : > { %v7518_v56 = vpop.eup %5676  ;;  %3539 = vadd.xlane.f32.xlu0 %v3538_v22  ;;  %v3356_v13 = vsub.f32 %v7990_v48, %v3291_v14  ;;  %v3288_v19 = vpop.xlane.xlu0 %3287  ;;  %3824 = vmatmul.mubr.bf16.gmra.mxu1 %v3627_v62  ;;  %v3553_v30 = vadd.f32 %v7508_v32, %v7502_v28  ;;  %v3631_v48 = vpack.c.bf16 %v7498_v54, %v7452_v27  ;;  %v4717_v54 = vld [vmem:[%s7802_s4 + $0x4] sm:$0xf] }
 0x3a6   : > { %v7524_v52 = vpop.eup %5678  ;;  %5702 = vpow2.f32 %v3467_v39  ;;  %v3353_v7 = vsub.f32 %v7153_v26, %v3288_v19  ;;  %v3354_v24 = vsub.f32 %v7991_v10, %v3288_v19  ;;  %v3544_v43 = vadd.f32 %v7518_v56, %v7514_v25  ;;  %3831 = vmatprep.mubr.bf16.mxu1 %v3630_v36  ;;  %v7546_v4 = vpop.f32.mrf.mxu1  ;;  %5333 = vmatprep.subr.msk.bf16.mxu0 %vm4002_vm3, %v4717_v54 }
 0x3a7   : > { %v7530_v21 = vpop.eup %5680  ;;  %5704 = vpow2.f32 %v3469_v29  ;;  %v3479_v31 = vmul.f32 1.442695, %v3355_v16  ;;  %v3481_v41 = vmul.f32 1.442695, %v3356_v13  ;;  %v3634_v13 = vpack.c.bf16 %v7518_v56, %v7473_v37 }
 0x3a8   : > { %v7536_v6 = vpop.eup %5682  ;;  %v3475_v55 = vmul.f32 1.442695, %v3353_v7  ;;  %v3477_v26 = vmul.f32 1.442695, %v3354_v24  ;;  %3548 = vadd.xlane.f32.xlu1 %v3547_v1  ;;  %v7564_v46 = vpop.f32.mrf.mxu1  ;;  %v4004_v1 = vsel %vm4002_vm3, %v4717_v54, 0 }
 0x3a9   : > { %v7538_v23 = vpop.eup %5684  ;;  %5706 = vpow2.f32 %v3479_v31  ;;  %3545 = vadd.xlane.f32.xlu0 %v3544_v43  ;;  %v3294_v49 = vpop.xlane.xlu0 %3293  ;;  %5250 = vmatpush3.bf16.msra.mxu0 %v4004_v1  ;;  %v4889_v1 = vadd.f32 %v7406_v18, %v7402_v58 }
 0x3aa   : > { %5708 = vpow2.f32 %v3481_v41  ;;  %v3357_v47 = vsub.f32 %v7171_v11, %v3294_v49  ;;  %v3358_v63 = vsub.f32 %v7174_v38, %v3294_v49  ;;  %v3550_v42 = vadd.f32 %v7538_v23, %v7536_v6  ;;  %v7544_v2 = vpop.eup %5686  ;;  %v7575_v62 = vpop.f32.mrf.mxu1 }
 0x3ab   : > { %5710 = vpow2.f32 %v3475_v55  ;;  %v7550_v53 = vpop.eup %5688  ;;  %v3629_v11 = vpack.c.bf16 %v7477_v44, %v7437_v17  ;;  %v3559_v17 = vadd.f32 %v7530_v21, %v7524_v52  ;;  %v3636_v49 = vpack.c.bf16 %v7538_v23, %v7492_v12 }
 0x3ac   : > { %5712 = vpow2.f32 %v3477_v26  ;;  %v3483_v0 = vmul.f32 1.442695, %v3357_v47  ;;  %v3485_v33 = vmul.f32 1.442695, %v3358_v63  ;;  %v7554_v38 = vpop.eup %5690  ;;  %3554 = vadd.xlane.f32.xlu1 %v3553_v30  ;;  %v7588_v10 = vpop.f32.mrf.mxu1  ;;  %v3633_v26 = vpack.c.bf16 %v7514_v25, %v7468_v60 }
 0x3ad   : > { %3551 = vadd.xlane.f32.xlu0 %v3550_v42  ;;  %v7558_v9 = vpop.eup %5692  ;;  %3832 = vmatmul.mubr.bf16.gmra.mxu1 %v3629_v11  ;;  %v3556_v34 = vadd.f32 %v7554_v38, %v7550_v53  ;;  %v2252_v30 = vpop.xlane.xlu1 %2251  ;;  %v3635_v60 = vpack.c.bf16 %v7536_v6, %v7486_v61  ;;  %v3638_v25 = vpack.c.bf16 %v7554_v38, %v7508_v32 }
 0x3ae   : > { %5714 = vpow2.f32 %v3483_v0  ;;  %v7562_v22 = vpop.eup %5694  ;;  %3839 = vmatprep.mubr.bf16.mxu1 %v3632_v57  ;;  %v3565_v14 = vadd.f32 %v7558_v9, %v7544_v2  ;;  %v7600_v31 = vpop.f32.mrf.mxu1  ;;  %v3637_v57 = vpack.c.bf16 %v7550_v53, %v7502_v28 }
 0x3af   : > { %5716 = vpow2.f32 %v3485_v33  ;;  %v7568_v44 = vpop.eup %5696  ;;  %v2255_v0 = vpop.xlane.xlu0 %2254 }
 0x3b0   : > { %v5699_v39 = vpop.eup %5698  ;;  %3560 = vadd.xlane.f32.xlu1 %v3559_v17  ;;  %v7611_v63 = vpop.f32.mrf.mxu1  ;;  %v3639_v38 = vpack.c.bf16 %v7568_v44, %v7524_v52  ;;  %5718 = vrcp.f32 %v2255_v0  ;;  %v4904_v0 = vadd.f32 %v7546_v4, %v7532_v20 }
 0x3b1   : > { %3557 = vadd.xlane.f32.xlu0 %v3556_v34  ;;  %v7570_v51 = vpop.eup %5700  ;;  %v3562_v5 = vadd.f32 %v5699_v39, %v7568_v44  ;;  %v2258_v12 = vpop.xlane.xlu1 %2257  ;;  %v3640_v34 = vpack.c.bf16 %v5699_v39, %v7530_v21  ;;  %5720 = vrcp.f32 %v2252_v30 }
 0x3b2   : > { %v3571_v24 = vadd.f32 %v7570_v51, %v7562_v22  ;;  %v7613_v42 = vpop.f32.mrf.mxu1 }
 0x3b3   : > { %v7573_v29 = vpop.eup %5702  ;;  %v2261_v23 = vpop.xlane.xlu0 %2260 }
 0x3b4   : > { %v5705_v16 = vpop.eup %5704  ;;  %3566 = vadd.xlane.f32.xlu1 %v3565_v14  ;;  %v7619_v33 = vpop.f32.mrf.mxu1  ;;  %v3641_v39 = vpack.c.bf16 %v7573_v29, %v7544_v2  ;;  %5722 = vrcp.f32 %v2261_v23 }
 0x3b5   : > { %3563 = vadd.xlane.f32.xlu0 %v3562_v5  ;;  %v3568_v36 = vadd.f32 %v5705_v16, %v7573_v29  ;;  %3840 = vmatmul.mubr.bf16.gmra.mxu1 %v3631_v48  ;;  %v2264_v61 = vpop.xlane.xlu1 %2263  ;;  %v3642_v5 = vpack.c.bf16 %v5705_v16, %v7558_v9 }
 0x3b6   : > { %v7584_v19 = vpop.eup %5706  ;;  %3847 = vmatprep.mubr.bf16.mxu1 %v3634_v13  ;;  %v7621_v11 = vpop.f32.mrf.mxu1 }
 0x3b7   : > { %v7586_v7 = vpop.eup %5708  ;;  %v2267_v6 = vpop.xlane.xlu0 %2266 }
 0x3b8   : > { %v7592_v43 = vpop.eup %5710  ;;  %3572 = vadd.xlane.f32.xlu1 %v3571_v24  ;;  %v3577_v41 = vadd.f32 %v7586_v7, %v7584_v19  ;;  %v7626_v17 = vpop.f32.mrf.mxu1  ;;  %5724 = vrcp.f32 %v2267_v6 }
 0x3b9   : > { %v5713_v27 = vpop.eup %5712  ;;  %3569 = vadd.xlane.f32.xlu0 %v3568_v36  ;;  %v2270_v14 = vpop.xlane.xlu1 %2269  ;;  %5726 = vrcp.f32 %v2258_v12  ;;  %v3643_v24 = vpack.c.bf16 %v7592_v43, %v7562_v22 }
 0x3ba   : > { %v3574_v37 = vadd.f32 %v5713_v27, %v7592_v43  ;;  %v7628_v32 = vpop.f32.mrf.mxu1  ;;  %v3644_v36 = vpack.c.bf16 %v5713_v27, %v7570_v51  ;;  %5728 = vrcp.f32 %v2264_v61  ;;  %v4892_v51 = vadd.f32 %v7420_v15, %v7412_v45 }
 0x3bb   : > { %v7598_v56 = vpop.eup %5714  ;;  %v2273_v48 = vpop.xlane.xlu0 %2272 }
 0x3bc   : > { %v5717_v55 = vpop.eup %5716  ;;  %3578 = vadd.xlane.f32.xlu1 %v3577_v41  ;;  %v7633_v13 = vpop.f32.mrf.mxu1  ;;  %5730 = vrcp.f32 %v2273_v48  ;;  %v3645_v45 = vpack.c.bf16 %v7598_v56, %v7584_v19 }
 0x3bd   : > { %3575 = vadd.xlane.f32.xlu0 %v3574_v37  ;;  %v3580_v47 = vadd.f32 %v5717_v55, %v7598_v56  ;;  %3848 = vmatmul.mubr.bf16.gmra.mxu1 %v3633_v26  ;;  %v2276_v21 = vpop.xlane.xlu1 %2275  ;;  %v3646_v37 = vpack.c.bf16 %v5717_v55, %v7586_v7  ;;  %v5719_v2 = vpop.eup %5718  ;;  %v4895_v56 = vadd.f32 %v7443_v35, %v7431_v50 }
 0x3be   : > { %3855 = vmatprep.mubr.bf16.mxu1 %v3636_v49  ;;  %v7635_v28 = vpop.f32.mrf.mxu1  ;;  %v5721_v27 = vpop.eup %5720  ;;  %v2668_v26 = vmul.f32 %v5719_v2, %v4892_v51  ;;  %v4910_v35 = vadd.f32 %v7600_v31, %v7588_v10 }
 0x3bf   : > { %v2279_v53 = vpop.xlane.xlu0 %2278  ;;  %v2667_v7 = vmul.f32 %v5721_v27, %v4889_v1 }
 0x3c0   : > { %v7640_v52 = vpop.f32.mrf.mxu1  ;;  %5732 = vrcp.f32 %v2279_v53 }
 0x3c1   : > { %3581 = vadd.xlane.f32.xlu0 %v3580_v47  ;;  %v2282_v9 = vpop.xlane.xlu1 %2281  ;;  %5734 = vrcp.f32 %v2270_v14  ;;  %v5723_v15 = vpop.eup %5722  ;;  %v2699_v55 = vpack.c.bf16 %v2668_v26, %v2667_v7  ;;  %v4898_v47 = vadd.f32 %v7475_v3, %v7459_v8  ;;  %v4901_v8 = vadd.f32 %v7510_v40, %v7494_v59 }
 0x3c2   : > { %v7642_v16 = vpop.f32.mrf.mxu1  ;;  %5736 = vrcp.f32 %v2276_v21  ;;  %v4916_v40 = vadd.f32 %v7621_v11, %v7619_v33  ;;  %v4907_v21 = vadd.f32 %v7575_v62, %v7564_v46  ;;  %v4922_v62 = vadd.f32 %v7635_v28, %v7633_v13 }
 0x3c3   : > { %v2285_v44 = vpop.xlane.xlu0 %2284 }
 0x3c4   : > { %v7649_v29 = vpop.f32.mrf.mxu1  ;;  %5738 = vrcp.f32 %v2285_v44 }
 0x3c5   : > { %3856 = vmatmul.mubr.bf16.gmra.mxu1 %v3635_v60  ;;  %v2288_v54 = vpop.xlane.xlu1 %2287  ;;  %v5725_v49 = vpop.eup %5724 }
 0x3c6   : > { %3863 = vmatprep.mubr.bf16.mxu1 %v3638_v25  ;;  %v7653_v22 = vpop.f32.mrf.mxu1  ;;  %v5727_v18 = vpop.eup %5726  ;;  %v2670_v25 = vmul.f32 %v5723_v15, %v4898_v47  ;;  %v2672_v12 = vmul.f32 %v5725_v49, %v4904_v0 }
 0x3c7   : > { %v2291_v41 = vpop.xlane.xlu0 %2290  ;;  %v5729_v19 = vpop.eup %5728  ;;  %v2669_v23 = vmul.f32 %v5727_v18, %v4895_v56 }
 0x3c8   : > { %5740 = vrcp.f32 %v2291_v41  ;;  %v2671_v4 = vmul.f32 %v5729_v19, %v4901_v8  ;;  %v4919_v41 = vadd.f32 %v7628_v32, %v7626_v17 }
 0x3c9   : > { %v2294_v30 = vpop.xlane.xlu1 %2293  ;;  %5742 = vrcp.f32 %v2282_v9  ;;  %v5731_v6 = vpop.eup %5730 }
 0x3ca   : > { %5744 = vrcp.f32 %v2288_v54  ;;  %v2674_v53 = vmul.f32 %v5731_v6, %v4910_v35 }
 0x3cb   : > { %v2297_v58 = vpop.xlane.xlu0 %2296 }
 0x3cc   : > { %5746 = vrcp.f32 %v2297_v58 }
 0x3cd   : > { %3864 = vmatmul.mubr.bf16.gmra.mxu1 %v3637_v57  ;;  %v2700_v57 = vpack.c.bf16 %v2670_v25, %v2669_v23  ;;  %v5733_v50 = vpop.eup %5732 }
 0x3ce   : > { %3871 = vmatprep.mubr.bf16.mxu1 %v3640_v34  ;;  %v2300_v34 = vpop.xlane.xlu1 %2299  ;;  %v5735_v59 = vpop.eup %5734  ;;  %v2676_v9 = vmul.f32 %v5733_v50, %v4916_v40 }
 0x3cf   : > { %v2303_v61 = vpop.xlane.xlu0 %2302  ;;  %v5737_v48 = vpop.eup %5736  ;;  %v2673_v44 = vmul.f32 %v5735_v59, %v4907_v21 }
 0x3d0   : > { %5748 = vrcp.f32 %v2303_v61 }
 0x3d1   : > { %5750 = vrcp.f32 %v2294_v30  ;;  %v2702_v11 = vpack.c.bf16 %v2674_v53, %v2673_v44 }
 0x3d2   : > { %v2306_v10 = vpop.xlane.xlu1 %2305  ;;  %5752 = vrcp.f32 %v2300_v34 }
 0x3d3   : > { %v2309_v31 = vpop.xlane.xlu0 %2308 }
 0x3d4   : > { %5754 = vrcp.f32 %v2309_v31 }
 0x3d5   : > { %3872 = vmatmul.mubr.bf16.gmra.mxu1 %v3639_v38 }
 0x3d6   : > { %3879 = vmatprep.mubr.bf16.mxu1 %v3642_v5  ;;  %v2701_v5 = vpack.c.bf16 %v2672_v12, %v2671_v4  ;;  %v2312_v1 = vpop.xlane.xlu1 %2311 }
 0x3d7   : > { %v2315_v26 = vpop.xlane.xlu0 %2314 }
 0x3d8   : > { %5756 = vrcp.f32 %v2315_v26 }
 0x3d9   : > { %5758 = vrcp.f32 %v2306_v10 }
 0x3da   : > { %5760 = vrcp.f32 %v2312_v1  ;;  %v2318_v32 = vpop.xlane.xlu1 %2317 }
 0x3dd   : > { %3880 = vmatmul.mubr.bf16.gmra.mxu1 %v3641_v39  ;;  %v4913_v39 = vadd.f32 %v7613_v42, %v7611_v63  ;;  %v4928_v42 = vadd.f32 %v7653_v22, %v7649_v29 }
 0x3de   : > { %3887 = vmatprep.mubr.bf16.mxu1 %v3644_v36 }
 0x3df   : > { %v2675_v33 = vmul.f32 %v5737_v48, %v4913_v39 }
 0x3e1   : > { %v2703_v51 = vpack.c.bf16 %v2676_v9, %v2675_v33 }
 0x3e5   : > { %3888 = vmatmul.mubr.bf16.gmra.mxu1 %v3643_v24 }
 0x3e6   : > { %3895 = vmatprep.mubr.bf16.mxu1 %v3646_v37  ;;  %v5739_v37 = vpop.eup %5738 }
 0x3e7   : > { %v5741_v46 = vpop.eup %5740  ;;  %v2678_v7 = vmul.f32 %v5739_v37, %v4922_v62 }
 0x3e8   : > { %v5743_v63 = vpop.eup %5742  ;;  %v2680_v28 = vmul.f32 %v5741_v46, %v4928_v42 }
 0x3e9   : > { %v5745_v54 = vpop.eup %5744  ;;  %v2677_v15 = vmul.f32 %v5743_v63, %v4919_v41 }
 0x3eb   : > { %v7657_v43 = vpop.f32.mrf.mxu1  ;;  %v2704_v49 = vpack.c.bf16 %v2678_v7, %v2677_v15 }
 0x3ed   : > { %3896 = vmatmul.mubr.bf16.gmra.mxu1 %v3645_v45  ;;  %v7663_v60 = vpop.f32.mrf.mxu1  ;;  %v4925_v45 = vadd.f32 %v7642_v16, %v7640_v52  ;;  %v5747_v52 = vpop.eup %5746 }
 0x3ee   : > { %5285 = vmatprep.mubr.msk.bf16.mxu1 %vm1672_vm2, %v2699_v55  ;;  %v4931_v58 = vadd.f32 %v7663_v60, %v7657_v43  ;;  %v2321_v16 = vpop.xlane.xlu0 %2320  ;;  %v5749_v19 = vpop.eup %5748 }
 0x3ef   : > { %v4932_v3 = vpop.f32.mrf.mxu1  ;;  %v2679_v29 = vmul.f32 %v5745_v54, %v4925_v45  ;;  %v5751_v25 = vpop.eup %5750  ;;  %5762 = vrcp.f32 %v2321_v16 }
 0x3f0   : > { %v5753_v12 = vpop.eup %5752  ;;  %v2681_v23 = vmul.f32 %v5751_v25, %v4931_v58  ;;  %5764 = vrcp.f32 %v2318_v32  ;;  %v2324_v43 = vpop.xlane.xlu1 %2323 }
 0x3f1   : > { %v4933_v20 = vpop.f32.mrf.mxu1  ;;  %v2705_v17 = vpack.c.bf16 %v2680_v28, %v2679_v29  ;;  %v5755_v50 = vpop.eup %5754  ;;  %5766 = vrcp.f32 %v2324_v43 }
 0x3f2   : > { %v4934_v22 = vadd.f32 %v4933_v20, %v4932_v3  ;;  %v2327_v34 = vpop.xlane.xlu0 %2326  ;;  %v5757_v40 = vpop.eup %5756 }
 0x3f3   : > { %v4935_v38 = vpop.f32.mrf.mxu1  ;;  %5768 = vrcp.f32 %v2327_v34  ;;  %v5759_v48 = vpop.eup %5758 }
 0x3f4   : > { %v2682_v56 = vmul.f32 %v5747_v52, %v4934_v22  ;;  %v5761_v39 = vpop.eup %5760  ;;  %v2330_v31 = vpop.xlane.xlu1 %2329 }
 0x3f5   : > { %5286 = vmatmul.mubr.msk.bf16.vlgmr.msra.gmra.mxu1 %vm1672_vm2, %v2700_v57  ;;  %v4936_v14 = vpop.f32.mrf.mxu1  ;;  %5770 = vrcp.f32 %v2330_v31 }
 0x3f6   : > { %5289 = vmatprep.mubr.msk.bf16.mxu1 %vm1672_vm2, %v2701_v5  ;;  %v4937_v18 = vadd.f32 %v4936_v14, %v4935_v38  ;;  %v2706_v60 = vpack.c.bf16 %v2682_v56, %v2681_v23  ;;  %v2333_v33 = vpop.xlane.xlu0 %2332 }
 0x3f7   : > { %v4938_v36 = vpop.f32.mrf.mxu1  ;;  %5772 = vrcp.f32 %v2333_v33 }
 0x3f8   : > { %v2683_v20 = vmul.f32 %v5753_v12, %v4937_v18  ;;  %v2336_v26 = vpop.xlane.xlu1 %2335 }
 0x3f9   : > { %v4939_v24 = vpop.f32.mrf.mxu1  ;;  %5774 = vrcp.f32 %v2336_v26 }
 0x3fa   : > { %v4940_v47 = vadd.f32 %v4939_v24, %v4938_v36  ;;  %v2339_v28 = vpop.xlane.xlu0 %2338 }
 0x3fb   : > { %v4941_v2 = vpop.f32.mrf.mxu1  ;;  %5776 = vrcp.f32 %v2339_v28 }
 0x3fc   : > { %v2684_v8 = vmul.f32 %v5749_v19, %v4940_v47  ;;  %v2342_v58 = vpop.xlane.xlu1 %2341 }
 0x3fd   : > { %5290 = vmatmul.mubr.msk.bf16.gmra.mxu1 %vm1672_vm2, %v2702_v11  ;;  %v4942_v27 = vpop.f32.mrf.mxu1  ;;  %5778 = vrcp.f32 %v2342_v58 }
 0x3fe   : > { %5293 = vmatprep.mubr.msk.bf16.mxu1 %vm1672_vm2, %v2703_v51  ;;  %v2707_v61 = vpack.c.bf16 %v2684_v8, %v2683_v20  ;;  %v4943_v5 = vadd.f32 %v4942_v27, %v4941_v2  ;;  %v5763_v51 = vpop.eup %5762  ;;  %v2345_v18 = vpop.xlane.xlu0 %2344 }
 0x3ff   : > { %v4944_v13 = vpop.f32.mrf.mxu1  ;;  %v5765_v63 = vpop.eup %5764  ;;  %5780 = vrcp.f32 %v2345_v18 }
 0x400   : > { %v2685_v36 = vmul.f32 %v5759_v48, %v4943_v5  ;;  %v5767_v1 = vpop.eup %5766 }
 0x401   : > { %v4945_v55 = vpop.f32.mrf.mxu1 }
 0x402   : > { %v4946_v57 = vadd.f32 %v4945_v55, %v4944_v13  ;;  %v5769_v13 = vpop.eup %5768 }
 0x403   : > { %v4947_v30 = vpop.f32.mrf.mxu1  ;;  %v5771_v32 = vpop.eup %5770 }
 0x404   : > { %v2686_v14 = vmul.f32 %v5755_v50, %v4946_v57  ;;  %v5773_v16 = vpop.eup %5772  ;;  %v3492_v57 = vpop.xlane.xlu0 %3491 }
 0x405   : > { %5294 = vmatmul.mubr.msk.bf16.gmra.mxu1 %vm1672_vm2, %v2704_v49  ;;  %v4948_v0 = vpop.f32.mrf.mxu1 }
 0x406   : > { %5297 = vmatprep.mubr.msk.bf16.mxu1 %vm1672_vm2, %v2705_v17  ;;  %v4949_v35 = vadd.f32 %v4948_v0, %v4947_v30  ;;  %v2708_v44 = vpack.c.bf16 %v2686_v14, %v2685_v36  ;;  %v5775_v20 = vpop.eup %5774 }
 0x407   : > { %v4950_v3 = vpop.f32.mrf.mxu1 }
 0x408   : > { %v2687_v9 = vmul.f32 %v5761_v39, %v4949_v35 }
 0x409   : > { %v4951_v4 = vpop.f32.mrf.mxu1 }
 0x40a   : > { %v4952_v6 = vadd.f32 %v4951_v4, %v4950_v3  ;;  %v3489_v4 = vpop.xlane.xlu1 %3488 }
 0x40b   : > { %v4953_v38 = vpop.f32.mrf.mxu1  ;;  %5782 = vrcp.f32 %v3489_v4 }
 0x40c   : > { %v2688_v21 = vmul.f32 %v5757_v40, %v4952_v6  ;;  %5784 = vrcp.f32 %v3492_v57 }
 0x40d   : > { %5298 = vmatmul.mubr.msk.bf16.gmra.mxu1 %vm1672_vm2, %v2706_v60  ;;  %v4954_v59 = vpop.f32.mrf.mxu1  ;;  %v5777_v60 = vpop.eup %5776 }
 0x40e   : > { %5301 = vmatprep.mubr.msk.bf16.mxu1 %vm1672_vm2, %v2707_v61  ;;  %v2709_v11 = vpack.c.bf16 %v2688_v21, %v2687_v9  ;;  %v4955_v2 = vadd.f32 %v4954_v59, %v4953_v38  ;;  %v5779_v40 = vpop.eup %5778  ;;  %v3495_v14 = vpop.xlane.xlu1 %3494 }
 0x40f   : > { %v4956_v53 = vpop.f32.mrf.mxu1  ;;  %v5781_v21 = vpop.eup %5780  ;;  %5786 = vrcp.f32 %v3495_v14 }
 0x410   : > { %v2689_v27 = vmul.f32 %v5765_v63, %v4955_v2 }
 0x411   : > { %v4957_v10 = vpop.f32.mrf.mxu1 }
 0x412   : > { %v4958_v24 = vadd.f32 %v4957_v10, %v4956_v53  ;;  %v3498_v53 = vpop.xlane.xlu0 %3497 }
 0x413   : > { %v4959_v37 = vpop.f32.mrf.mxu1  ;;  %5788 = vrcp.f32 %v3498_v53 }
 0x414   : > { %v2690_v62 = vmul.f32 %v5763_v51, %v4958_v24 }
 0x415   : > { %5302 = vmatmul.mubr.msk.bf16.gmra.mxu1 %vm1672_vm2, %v2708_v44  ;;  %v4960_v46 = vpop.f32.mrf.mxu1 }
 0x416   : > { %5305 = vmatprep.mubr.msk.bf16.mxu1 %vm1672_vm2, %v2709_v11  ;;  %v4961_v54 = vadd.f32 %v4960_v46, %v4959_v37  ;;  %v2710_v7 = vpack.c.bf16 %v2690_v62, %v2689_v27  ;;  %v3501_v37 = vpop.xlane.xlu1 %3500  ;;  %v3504_v46 = vpop.xlane.xlu0 %3503 }
 0x417   : > { %v4962_v42 = vpop.f32.mrf.mxu1  ;;  %5790 = vrcp.f32 %v3501_v37 }
 0x418   : > { %v2691_v55 = vmul.f32 %v5767_v1, %v4961_v54  ;;  %v5783_v11 = vpop.eup %5782  ;;  %5792 = vrcp.f32 %v3504_v46 }
 0x419   : > { %v4963_v41 = vpop.f32.mrf.mxu1  ;;  %v5785_v51 = vpop.eup %5784 }
 0x41a   : > { %v4964_v45 = vadd.f32 %v4963_v41, %v4962_v42  ;;  %v3510_v28 = vpop.xlane.xlu0 %3509 }
 0x41b   : > { %v4965_v15 = vpop.f32.mrf.mxu1  ;;  %5794 = vrcp.f32 %v3510_v28 }
 0x41c   : > { %v2692_v29 = vmul.f32 %v5769_v13, %v4964_v45 }
 0x41d   : > { %5306 = vmatmul.mubr.msk.bf16.gmra.mxu1 %vm1672_vm2, %v2710_v7  ;;  %v4966_v22 = vpop.f32.mrf.mxu1  ;;  %v5787_v7 = vpop.eup %5786 }
 0x41e   : > { %v2711_v49 = vpack.c.bf16 %v2692_v29, %v2691_v55  ;;  %v4967_v30 = vadd.f32 %v4966_v22, %v4965_v15  ;;  %v3507_v55 = vpop.xlane.xlu1 %3506 }
 0x41f   : > { %v4968_v47 = vpop.f32.mrf.mxu1  ;;  %5796 = vrcp.f32 %v3507_v55 }
 0x420   : > { %5309 = vmatprep.mubr.msk.bf16.mxu1 %vm1672_vm2, %v2711_v49  ;;  %v2693_v19 = vmul.f32 %v5771_v32, %v4967_v30  ;;  %v5789_v13 = vpop.eup %5788 }
 0x421   : > { %v4969_v17 = vpop.f32.mrf.mxu1 }
 0x422   : > { %v4970_v52 = vadd.f32 %v4969_v17, %v4968_v47  ;;  %v3513_v18 = vpop.xlane.xlu1 %3512 }
 0x423   : > { %v4971_v0 = vpop.f32.mrf.mxu1  ;;  %5798 = vrcp.f32 %v3513_v18 }
 0x424   : > { %v2694_v56 = vmul.f32 %v5773_v16, %v4970_v52  ;;  %v5791_v58 = vpop.eup %5790 }
 0x425   : > { %v4972_v25 = vpop.f32.mrf.mxu1  ;;  %v5793_v16 = vpop.eup %5792 }
 0x426   : > { %v2712_v8 = vpack.c.bf16 %v2694_v56, %v2693_v19  ;;  %v4973_v12 = vadd.f32 %v4972_v25, %v4971_v0  ;;  %v3516_v0 = vpop.xlane.xlu0 %3515 }
 0x427   : > { %v4974_v3 = vpop.f32.mrf.mxu1  ;;  %5800 = vrcp.f32 %v3516_v0 }
 0x428   : > { %5310 = vmatmul.mubr.msk.bf16.gmra.mxu1 %vm1672_vm2, %v2712_v8  ;;  %v2695_v61 = vmul.f32 %v5775_v20, %v4973_v12  ;;  %v5795_v4 = vpop.eup %5794 }
 0x429   : > { %v4975_v23 = vpop.f32.mrf.mxu1 }
 0x42a   : > { %v4976_v43 = vadd.f32 %v4975_v23, %v4974_v3 }
 0x42b   : > { %v4977_v34 = vpop.f32.mrf.mxu1 }
 0x42c   : > { %v2696_v6 = vmul.f32 %v5777_v60, %v4976_v43  ;;  %v3519_v43 = vpop.xlane.xlu1 %3518  ;;  %v5797_v57 = vpop.eup %5796 }
 0x42d   : > { %v4978_v38 = vpop.f32.mrf.mxu1  ;;  %5802 = vrcp.f32 %v3519_v43 }
 0x42e   : > { %v2713_v5 = vpack.c.bf16 %v2696_v6, %v2695_v61  ;;  %v4979_v35 = vadd.f32 %v4978_v38, %v4977_v34  ;;  %v3522_v34 = vpop.xlane.xlu0 %3521 }
 0x42f   : > { %v4980_v50 = vpop.f32.mrf.mxu1  ;;  %5804 = vrcp.f32 %v3522_v34 }
 0x430   : > { %5313 = vmatprep.mubr.msk.bf16.mxu1 %vm1672_vm2, %v2713_v5  ;;  %v2697_v36 = vmul.f32 %v5779_v40, %v4979_v35  ;;  %v5799_v14 = vpop.eup %5798 }
 0x431   : > { %v4981_v59 = vpop.f32.mrf.mxu1 }
 0x432   : > { %v4982_v48 = vadd.f32 %v4981_v59, %v4980_v50 }
 0x433   : > { %v5047_v39 = vpop.f32.mrf.mxu1 }
 0x434   : > { %v2698_v9 = vmul.f32 %v5781_v21, %v4982_v48  ;;  %v3525_v48 = vpop.xlane.xlu1 %3524  ;;  %v5801_v53 = vpop.eup %5800 }
 0x435   : > { %v5048_v10 = vpop.f32.mrf.mxu1  ;;  %5806 = vrcp.f32 %v3525_v48 }
 0x436   : > { %v2714_v31 = vpack.c.bf16 %v2698_v9, %v2697_v36  ;;  %v5049_v24 = vadd.f32 %v5048_v10, %v5047_v39  ;;  %v3528_v39 = vpop.xlane.xlu0 %3527 }
 0x437   : > { %v5050_v44 = vpop.f32.mrf.mxu1  ;;  %5808 = vrcp.f32 %v3528_v39 }
 0x438   : > { %5314 = vmatmul.mubr.msk.bf16.gmra.mxu1 %vm1672_vm2, %v2714_v31  ;;  %v3904_v63 = vmul.f32 %v5783_v11, %v5049_v24 }
 0x439   : > { %v5051_v33 = vpop.f32.mrf.mxu1 }
 0x43a   : > { %v5052_v2 = vadd.f32 %v5051_v33, %v5050_v44  ;;  %v5803_v37 = vpop.eup %5802 }
 0x43b   : > { %v5053_v62 = vpop.f32.mrf.mxu1 }
 0x43c   : > { %v3905_v42 = vmul.f32 %v5785_v51, %v5052_v2  ;;  %v3531_v2 = vpop.xlane.xlu1 %3530  ;;  %v5805_v46 = vpop.eup %5804 }
 0x43d   : > { %v5054_v27 = vpop.f32.mrf.mxu1  ;;  %5810 = vrcp.f32 %v3531_v2 }
 0x43e   : > { %v3936_v54 = vpack.c.bf16 %v3905_v42, %v3904_v63  ;;  %v5055_v1 = vadd.f32 %v5054_v27, %v5053_v62  ;;  %v3534_v62 = vpop.xlane.xlu0 %3533 }
 0x43f   : > { %v5056_v41 = vpop.f32.mrf.mxu1  ;;  %5812 = vrcp.f32 %v3534_v62 }
 0x440   : > { %5251 = vmatprep.mubr.msk.bf16.mxu0 %vm1672_vm2, %v3936_v54  ;;  %v3906_v29 = vmul.f32 %v5787_v7, %v5055_v1 }
 0x441   : > { %v5057_v26 = vpop.f32.mrf.mxu1 }
 0x442   : > { %v5058_v45 = vadd.f32 %v5057_v26, %v5056_v41  ;;  %v3540_v55 = vpop.xlane.xlu0 %3539 }
 0x443   : > { %v5059_v15 = vpop.f32.mrf.mxu1 }
 0x444   : > { %v3907_v22 = vmul.f32 %v5789_v13, %v5058_v45  ;;  %v5807_v45 = vpop.eup %5806  ;;  %v3537_v13 = vpop.xlane.xlu1 %3536 }
 0x445   : > { %v5060_v49 = vpop.f32.mrf.mxu1  ;;  %5814 = vrcp.f32 %v3537_v13 }
 0x446   : > { %v3937_v47 = vpack.c.bf16 %v3907_v22, %v3906_v29  ;;  %v5061_v17 = vadd.f32 %v5060_v49, %v5059_v15  ;;  %v5809_v15 = vpop.eup %5808  ;;  %5816 = vrcp.f32 %v3540_v55 }
 0x447   : > { %v5062_v30 = vpop.f32.mrf.mxu1 }
 0x448   : > { %5252 = vmatmul.mubr.msk.bf16.vlgmr.msra.gmra.mxu0 %vm1672_vm2, %v3937_v47  ;;  %v3908_v19 = vmul.f32 %v5791_v58, %v5061_v17 }
 0x449   : > { %v5063_v32 = vpop.f32.mrf.mxu1 }
 0x44a   : > { %v5064_v52 = vadd.f32 %v5063_v32, %v5062_v30 }
 0x44c   : > { %v3909_v56 = vmul.f32 %v5793_v16, %v5064_v52  ;;  %v5811_v52 = vpop.eup %5810  ;;  %v3543_v16 = vpop.xlane.xlu1 %3542 }
 0x44d   : > { %v5065_v25 = vpop.f32.mrf.mxu1  ;;  %v5813_v0 = vpop.eup %5812  ;;  %5818 = vrcp.f32 %v3543_v16 }
 0x44e   : > { %v3938_v8 = vpack.c.bf16 %v3909_v56, %v3908_v19  ;;  %v3546_v19 = vpop.xlane.xlu0 %3545 }
 0x44f   : > { %v5066_v3 = vpop.f32.mrf.mxu1  ;;  %5820 = vrcp.f32 %v3546_v19 }
 0x450   : > { %5255 = vmatprep.mubr.msk.bf16.mxu0 %vm1672_vm2, %v3938_v8  ;;  %v5067_v23 = vadd.f32 %v5066_v3, %v5065_v25 }
 0x451   : > { %v5068_v12 = vpop.f32.mrf.mxu1 }
 0x452   : > { %v3910_v6 = vmul.f32 %v5797_v57, %v5067_v23  ;;  %v5815_v43 = vpop.eup %5814 }
 0x453   : > { %v5069_v20 = vpop.f32.mrf.mxu1  ;;  %v5817_v34 = vpop.eup %5816 }
 0x454   : > { %v5070_v60 = vadd.f32 %v5069_v20, %v5068_v12 }
 0x455   : > { %v5071_v61 = vpop.f32.mrf.mxu1 }
 0x456   : > { %v3911_v38 = vmul.f32 %v5795_v4, %v5070_v60  ;;  %v3549_v60 = vpop.xlane.xlu1 %3548 }
 0x457   : > { %v5072_v5 = vpop.f32.mrf.mxu1  ;;  %5822 = vrcp.f32 %v3549_v60 }
 0x458   : > { %v3939_v50 = vpack.c.bf16 %v3911_v38, %v3910_v6  ;;  %v5073_v59 = vadd.f32 %v5072_v5, %v5071_v61  ;;  %v3552_v61 = vpop.xlane.xlu0 %3551 }
 0x459   : > { %v5074_v35 = vpop.f32.mrf.mxu1  ;;  %5824 = vrcp.f32 %v3552_v61 }
 0x45a   : > { %5256 = vmatmul.mubr.msk.bf16.gmra.mxu0 %vm1672_vm2, %v3939_v50  ;;  %v3912_v9 = vmul.f32 %v5799_v14, %v5073_v59  ;;  %v5819_v48 = vpop.eup %5818 }
 0x45b   : > { %v5075_v40 = vpop.f32.mrf.mxu1 }
 0x45c   : > { %v5076_v21 = vadd.f32 %v5075_v40, %v5074_v35  ;;  %v5821_v39 = vpop.eup %5820 }
 0x45d   : > { %v5077_v36 = vpop.f32.mrf.mxu1 }
 0x45e   : > { %v3913_v10 = vmul.f32 %v5801_v53, %v5076_v21  ;;  %v3555_v21 = vpop.xlane.xlu1 %3554 }
 0x45f   : > { %v5078_v31 = vpop.f32.mrf.mxu1  ;;  %5826 = vrcp.f32 %v3555_v21 }
 0x460   : > { %v3940_v44 = vpack.c.bf16 %v3913_v10, %v3912_v9  ;;  %v5079_v33 = vadd.f32 %v5078_v31, %v5077_v36  ;;  %v3558_v36 = vpop.xlane.xlu0 %3557 }
 0x461   : > { %v5080_v24 = vpop.f32.mrf.mxu1  ;;  %5828 = vrcp.f32 %v3558_v36 }
 0x462   : > { %5259 = vmatprep.mubr.msk.bf16.mxu0 %vm1672_vm2, %v3940_v44  ;;  %v3914_v42 = vmul.f32 %v5803_v37, %v5079_v33 }
 0x463   : > { %v5081_v11 = vpop.f32.mrf.mxu1 }
 0x464   : > { %v5082_v51 = vadd.f32 %v5081_v11, %v5080_v24  ;;  %v5823_v2 = vpop.eup %5822 }
 0x465   : > { %v5083_v63 = vpop.f32.mrf.mxu1 }
 0x466   : > { %v3915_v27 = vmul.f32 %v5805_v46, %v5082_v51  ;;  %v3561_v51 = vpop.xlane.xlu1 %3560  ;;  %v5825_v62 = vpop.eup %5824 }
 0x467   : > { %v5084_v54 = vpop.f32.mrf.mxu1  ;;  %5830 = vrcp.f32 %v3561_v51 }
 0x468   : > { %v3941_v41 = vpack.c.bf16 %v3915_v27, %v3914_v42  ;;  %v5085_v26 = vadd.f32 %v5084_v54, %v5083_v63  ;;  %v3564_v63 = vpop.xlane.xlu0 %3563 }
 0x469   : > { %v5086_v1 = vpop.f32.mrf.mxu1  ;;  %5832 = vrcp.f32 %v3564_v63 }
 0x46a   : > { %5260 = vmatmul.mubr.msk.bf16.gmra.mxu0 %vm1672_vm2, %v3941_v41  ;;  %v3916_v22 = vmul.f32 %v5807_v45, %v5085_v26 }
 0x46b   : > { %v5087_v7 = vpop.f32.mrf.mxu1 }
 0x46c   : > { %v5088_v28 = vadd.f32 %v5087_v7, %v5086_v1  ;;  %v5827_v13 = vpop.eup %5826 }
 0x46d   : > { %v5089_v29 = vpop.f32.mrf.mxu1 }
 0x46e   : > { %v3917_v49 = vmul.f32 %v5809_v15, %v5088_v28  ;;  %v3567_v28 = vpop.xlane.xlu1 %3566  ;;  %v5829_v55 = vpop.eup %5828 }
 0x46f   : > { %v5090_v47 = vpop.f32.mrf.mxu1  ;;  %5834 = vrcp.f32 %v3567_v28 }
 0x470   : > { %v3942_v30 = vpack.c.bf16 %v3917_v49, %v3916_v22  ;;  %v5091_v32 = vadd.f32 %v5090_v47, %v5089_v29  ;;  %v3570_v29 = vpop.xlane.xlu0 %3569 }
 0x471   : > { %v5092_v17 = vpop.f32.mrf.mxu1  ;;  %5836 = vrcp.f32 %v3570_v29 }
 0x472   : > { %5263 = vmatprep.mubr.msk.bf16.mxu0 %vm1672_vm2, %v3942_v30  ;;  %v3918_v25 = vmul.f32 %v5811_v52, %v5091_v32 }
 0x473   : > { %v5093_v58 = vpop.f32.mrf.mxu1 }
 0x474   : > { %v5094_v18 = vadd.f32 %v5093_v58, %v5092_v17  ;;  %v5831_v16 = vpop.eup %5830 }
 0x475   : > { %v5095_v56 = vpop.f32.mrf.mxu1 }
 0x476   : > { %v3919_v8 = vmul.f32 %v5813_v0, %v5094_v18  ;;  %v3573_v18 = vpop.xlane.xlu1 %3572  ;;  %v5833_v19 = vpop.eup %5832 }
 0x477   : > { %v5096_v3 = vpop.f32.mrf.mxu1  ;;  %5838 = vrcp.f32 %v3573_v18 }
 0x478   : > { %v3943_v12 = vpack.c.bf16 %v3919_v8, %v3918_v25  ;;  %v5097_v20 = vadd.f32 %v5096_v3, %v5095_v56  ;;  %v3576_v56 = vpop.xlane.xlu0 %3575 }
 0x479   : > { %v5098_v23 = vpop.f32.mrf.mxu1  ;;  %5840 = vrcp.f32 %v3576_v56 }
 0x47a   : > { %5264 = vmatmul.mubr.msk.bf16.gmra.mxu0 %vm1672_vm2, %v3943_v12  ;;  %v3920_v38 = vmul.f32 %v5815_v43, %v5097_v20 }
 0x47b   : > { %v5099_v4 = vpop.f32.mrf.mxu1 }
 0x47c   : > { %v5100_v57 = vadd.f32 %v5099_v4, %v5098_v23  ;;  %v5835_v60 = vpop.eup %5834 }
 0x47d   : > { %v5101_v6 = vpop.f32.mrf.mxu1 }
 0x47e   : > { %v3921_v5 = vmul.f32 %v5817_v34, %v5100_v57  ;;  %v3579_v57 = vpop.xlane.xlu1 %3578  ;;  %v5837_v61 = vpop.eup %5836 }
 0x47f   : > { %v5102_v50 = vpop.f32.mrf.mxu1  ;;  %5842 = vrcp.f32 %v3579_v57 }
 0x480   : > { %v3944_v35 = vpack.c.bf16 %v3921_v5, %v3920_v38  ;;  %v5103_v40 = vadd.f32 %v5102_v50, %v5101_v6  ;;  %v3582_v6 = vpop.xlane.xlu0 %3581 }
 0x481   : > { %v5104_v59 = vpop.f32.mrf.mxu1  ;;  %5844 = vrcp.f32 %v3582_v6 }
 0x482   : > { %5267 = vmatprep.mubr.msk.bf16.mxu0 %vm1672_vm2, %v3944_v35  ;;  %v3922_v10 = vmul.f32 %v5819_v48, %v5103_v40 }
 0x483   : > { %v5105_v14 = vpop.f32.mrf.mxu1 }
 0x484   : > { %v5106_v53 = vadd.f32 %v5105_v14, %v5104_v59  ;;  %v5839_v21 = vpop.eup %5838 }
 0x485   : > { %v5107_v9 = vpop.f32.mrf.mxu1 }
 0x486   : > { %v3923_v31 = vmul.f32 %v5821_v39, %v5106_v53  ;;  %v5841_v39 = vpop.eup %5840 }
 0x487   : > { %v5108_v44 = vpop.f32.mrf.mxu1 }
 0x488   : > { %v3945_v24 = vpack.c.bf16 %v3923_v31, %v3922_v10  ;;  %v5109_v11 = vadd.f32 %v5108_v44, %v5107_v9 }
 0x489   : > { %v5110_v33 = vpop.f32.mrf.mxu1 }
 0x48a   : > { %5268 = vmatmul.mubr.msk.bf16.gmra.mxu0 %vm1672_vm2, %v3945_v24  ;;  %v3924_v27 = vmul.f32 %v5823_v2, %v5109_v11 }
 0x48b   : > { %v5111_v37 = vpop.f32.mrf.mxu1 }
 0x48c   : > { %v5112_v46 = vadd.f32 %v5111_v37, %v5110_v33  ;;  %v5843_v37 = vpop.eup %5842 }
 0x48d   : > { %v5113_v42 = vpop.f32.mrf.mxu1 }
 0x48e   : > { %v3925_v54 = vmul.f32 %v5825_v62, %v5112_v46  ;;  %v5845_v51 = vpop.eup %5844 }
 0x48f   : > { %v5114_v41 = vpop.f32.mrf.mxu1 }
 0x490   : > { %v3946_v1 = vpack.c.bf16 %v3925_v54, %v3924_v27  ;;  %v5115_v7 = vadd.f32 %v5114_v41, %v5113_v42 }
 0x491   : > { %v5116_v26 = vpop.f32.mrf.mxu1 }
 0x492   : > { %5271 = vmatprep.mubr.msk.bf16.mxu0 %vm1672_vm2, %v3946_v1  ;;  %v3926_v49 = vmul.f32 %v5827_v13, %v5115_v7 }
 0x493   : > { %v5117_v45 = vpop.f32.mrf.mxu1 }
 0x494   : > { %v5118_v15 = vadd.f32 %v5117_v45, %v5116_v26 }
 0x495   : > { %v5119_v22 = vpop.f32.mrf.mxu1 }
 0x496   : > { %v3927_v47 = vmul.f32 %v5829_v55, %v5118_v15 }
 0x497   : > { %v5120_v30 = vpop.f32.mrf.mxu1 }
 0x498   : > { %v3947_v17 = vpack.c.bf16 %v3927_v47, %v3926_v49  ;;  %v5121_v58 = vadd.f32 %v5120_v30, %v5119_v22 }
 0x499   : > { %v5122_v32 = vpop.f32.mrf.mxu1 }
 0x49a   : > { %5272 = vmatmul.mubr.msk.bf16.gmra.mxu0 %vm1672_vm2, %v3947_v17  ;;  %v3928_v8 = vmul.f32 %v5831_v16, %v5121_v58 }
 0x49b   : > { %v5123_v52 = vpop.f32.mrf.mxu1 }
 0x49c   : > { %v5124_v0 = vadd.f32 %v5123_v52, %v5122_v32 }
 0x49d   : > { %v5125_v25 = vpop.f32.mrf.mxu1 }
 0x49e   : > { %v3929_v3 = vmul.f32 %v5833_v19, %v5124_v0 }
 0x49f   : > { %v5126_v12 = vpop.f32.mrf.mxu1 }
 0x4a0   : > { %v3948_v23 = vpack.c.bf16 %v3929_v3, %v3928_v8  ;;  %v5127_v4 = vadd.f32 %v5126_v12, %v5125_v25 }
 0x4a1   : > { %v5128_v20 = vpop.f32.mrf.mxu1 }
 0x4a2   : > { %5275 = vmatprep.mubr.msk.bf16.mxu0 %vm1672_vm2, %v3948_v23  ;;  %v3930_v5 = vmul.f32 %v5835_v60, %v5127_v4 }
 0x4a3   : > { %v5129_v43 = vpop.f32.mrf.mxu1 }
 0x4a4   : > { %v5130_v34 = vadd.f32 %v5129_v43, %v5128_v20 }
 0x4a5   : > { %v5131_v38 = vpop.f32.mrf.mxu1 }
 0x4a6   : > { %v3931_v50 = vmul.f32 %v5837_v61, %v5130_v34 }
 0x4a7   : > { %v5132_v35 = vpop.f32.mrf.mxu1 }
 0x4a8   : > { %v3949_v59 = vpack.c.bf16 %v3931_v50, %v3930_v5  ;;  %v5133_v14 = vadd.f32 %v5132_v35, %v5131_v38 }
 0x4a9   : > { %v5134_v40 = vpop.f32.mrf.mxu1 }
 0x4aa   : > { %5276 = vmatmul.mubr.msk.bf16.gmra.mxu0 %vm1672_vm2, %v3949_v59  ;;  %v3932_v9 = vmul.f32 %v5839_v21, %v5133_v14 }
 0x4ab   : > { %v5135_v48 = vpop.f32.mrf.mxu1 }
 0x4ac   : > { %v5136_v53 = vadd.f32 %v5135_v48, %v5134_v40 }
 0x4ad   : > { %v5137_v36 = vpop.f32.mrf.mxu1 }
 0x4ae   : > { %v3933_v10 = vmul.f32 %v5841_v39, %v5136_v53 }
 0x4af   : > { %v5138_v31 = vpop.f32.mrf.mxu1 }
 0x4b0   : > { %v3950_v44 = vpack.c.bf16 %v3933_v10, %v3932_v9  ;;  %v5139_v33 = vadd.f32 %v5138_v31, %v5137_v36 }
 0x4b1   : > { %v5140_v24 = vpop.f32.mrf.mxu1 }
 0x4b2   : > { %5279 = vmatprep.mubr.msk.bf16.mxu0 %vm1672_vm2, %v3950_v44  ;;  %v3934_v46 = vmul.f32 %v5843_v37, %v5139_v33 }
 0x4b3   : > { %v5141_v11 = vpop.f32.mrf.mxu1 }
 0x4b4   : > { %v5142_v2 = vadd.f32 %v5141_v11, %v5140_v24 }
 0x4b5   : > { %v5287_v42 = vpop.f32.mrf.mxu1 }
 0x4b6   : > { %v3935_v62 = vmul.f32 %v5845_v51, %v5142_v2 }
 0x4b7   : > { %v4252_v27 = vpop.f32.mrf.mxu1 }
 0x4b8   : > { %v3951_v63 = vpack.c.bf16 %v3935_v62, %v3934_v46 }
 0x4b9   : > { %v5288_v1 = vpop.f32.mrf.mxu1 }
 0x4ba   : > { %5280 = vmatmul.mubr.msk.bf16.gmra.mxu0 %vm1672_vm2, %v3951_v63 }
 0x4bb   : > { %v4255_v28 = vpop.f32.mrf.mxu1 }
 0x4bd   : > { %v5291_v29 = vpop.f32.mrf.mxu1 }
 0x4bf   : > { %v4268_v22 = vpop.f32.mrf.mxu1 }
 0x4c1   : > { %v5292_v30 = vpop.f32.mrf.mxu1 }
 0x4c3   : > { %v4271_v16 = vpop.f32.mrf.mxu1 }
 0x4c5   : > { %v5295_v19 = vpop.f32.mrf.mxu1 }
 0x4c7   : > { %v4284_v56 = vpop.f32.mrf.mxu1 }
 0x4c9   : > { %v5296_v3 = vpop.f32.mrf.mxu1 }
 0x4cb   : > { %v4287_v43 = vpop.f32.mrf.mxu1 }
 0x4cd   : > { %v5299_v34 = vpop.f32.mrf.mxu1 }
 0x4cf   : > { %v4300_v61 = vpop.f32.mrf.mxu1 }
 0x4d1   : > { %v5300_v5 = vpop.f32.mrf.mxu1 }
 0x4d3   : > { %v4303_v14 = vpop.f32.mrf.mxu1 }
 0x4d5   : > { %v5303_v53 = vpop.f32.mrf.mxu1 }
 0x4d7   : > { %v4316_v39 = vpop.f32.mrf.mxu1 }
 0x4d9   : > { %v5304_v10 = vpop.f32.mrf.mxu1 }
 0x4db   : > { %v4319_v11 = vpop.f32.mrf.mxu1 }
 0x4dd   : > { %v5307_v51 = vpop.f32.mrf.mxu1 }
 0x4df   : > { %v4332_v46 = vpop.f32.mrf.mxu1 }
 0x508   : > { %v5253_v54 = vpop.f32.mrf.mxu0 }
 0x509   : > { %v4261_v41 = vadd.f32 %v5287_v42, %v5253_v54  ;;  %v5308_v42 = vpop.f32.mrf.mxu1 }
 0x50a   : > { %v4040_v26 = vpop.f32.mrf.mxu0 }
 0x50b   : > { %4381 = vst.msk [vmem:[%s7723_s26 + $0x10] sm:$0xff] %vm417_vm0, %v4261_v41  ;;  %v4253_v7 = vadd.f32 %v4252_v27, %v4040_v26  ;;  %v4335_v26 = vpop.f32.mrf.mxu1 }
 0x50c   : > { %v5254_v45 = vpop.f32.mrf.mxu0 }
 0x50d   : > { %4379 = vst.msk [vmem:[%s7723_s26] sm:$0xff] %vm417_vm0, %v4253_v7  ;;  %v4264_v13 = vadd.f32 %v5288_v1, %v5254_v45 }
 0x50e   : > { %v4043_v15 = vpop.f32.mrf.mxu0 }
 0x50f   : > { %4382 = vst.msk [vmem:[%s7723_s26 + $0x18] sm:$0xff] %vm417_vm0, %v4264_v13  ;;  %v4256_v55 = vadd.f32 %v4255_v28, %v4043_v15  ;;  %v5311_v13 = vpop.f32.mrf.mxu1 }
 0x511   : > { %4380 = vst.msk [vmem:[%s7723_s26 + $0x8] sm:$0xff] %vm417_vm0, %v4256_v55  ;;  %v4348_v28 = vpop.f32.mrf.mxu1 }
 0x51a   : > { %v5257_v49 = vpop.f32.mrf.mxu0 }
 0x51b   : > { %v4277_v47 = vadd.f32 %v5291_v29, %v5257_v49  ;;  %v5312_v29 = vpop.f32.mrf.mxu1 }
 0x51c   : > { %v4056_v17 = vpop.f32.mrf.mxu0 }
 0x51d   : > { %4385 = vst.msk [vmem:[%s7723_s26 + $0x30] sm:$0xff] %vm417_vm0, %v4277_v47  ;;  %v4269_v32 = vadd.f32 %v4268_v22, %v4056_v17  ;;  %v4351_v17 = vpop.f32.mrf.mxu1 }
 0x51e   : > { %v5258_v58 = vpop.f32.mrf.mxu0 }
 0x51f   : > { %4383 = vst.msk [vmem:[%s7723_s26 + $0x20] sm:$0xff] %vm417_vm0, %v4269_v32  ;;  %v4280_v52 = vadd.f32 %v5292_v30, %v5258_v58 }
 0x520   : > { %v4059_v18 = vpop.f32.mrf.mxu0 }
 0x521   : > { %4386 = vst.msk [vmem:[%s7723_s26 + $0x38] sm:$0xff] %vm417_vm0, %v4280_v52  ;;  %v4272_v0 = vadd.f32 %v4271_v16, %v4059_v18  ;;  %v5315_v52 = vpop.f32.mrf.mxu1 }
 0x523   : > { %4384 = vst.msk [vmem:[%s7723_s26 + $0x28] sm:$0xff] %vm417_vm0, %v4272_v0  ;;  %v4364_v16 = vpop.f32.mrf.mxu1 }
 0x52a   : > { %v5261_v25 = vpop.f32.mrf.mxu0 }
 0x52b   : > { %v4293_v8 = vadd.f32 %v5295_v19, %v5261_v25  ;;  %v5316_v19 = vpop.f32.mrf.mxu1 }
 0x52c   : > { %v4072_v12 = vpop.f32.mrf.mxu0 }
 0x52d   : > { %4389 = vst.msk [vmem:[%s7723_s26 + $0x50] sm:$0xff] %vm417_vm0, %v4293_v8  ;;  %v4285_v23 = vadd.f32 %v4284_v56, %v4072_v12  ;;  %v4367_v12 = vpop.f32.mrf.mxu1 }
 0x52e   : > { %v5262_v20 = vpop.f32.mrf.mxu0 }
 0x52f   : > { %4387 = vst.msk [vmem:[%s7723_s26 + $0x40] sm:$0xff] %vm417_vm0, %v4285_v23  ;;  %v4296_v4 = vadd.f32 %v5296_v3, %v5262_v20 }
 0x530   : > { %v4075_v60 = vpop.f32.mrf.mxu0 }
 0x531   : > { %4390 = vst.msk [vmem:[%s7723_s26 + $0x58] sm:$0xff] %vm417_vm0, %v4296_v4  ;;  %v4288_v57 = vadd.f32 %v4287_v43, %v4075_v60 }
 0x533   : > { %4388 = vst.msk [vmem:[%s7723_s26 + $0x48] sm:$0xff] %vm417_vm0, %v4288_v57 }
 0x53a   : > { %v5265_v6 = vpop.f32.mrf.mxu0 }
 0x53b   : > { %v4309_v38 = vadd.f32 %v5299_v34, %v5265_v6 }
 0x53c   : > { %v4088_v50 = vpop.f32.mrf.mxu0 }
 0x53d   : > { %4393 = vst.msk [vmem:[%s7723_s26 + $0x70] sm:$0xff] %vm417_vm0, %v4309_v38  ;;  %v4301_v35 = vadd.f32 %v4300_v61, %v4088_v50 }
 0x53e   : > { %v5266_v59 = vpop.f32.mrf.mxu0 }
 0x53f   : > { %4391 = vst.msk [vmem:[%s7723_s26 + $0x60] sm:$0xff] %vm417_vm0, %v4301_v35  ;;  %v4312_v40 = vadd.f32 %v5300_v5, %v5266_v59 }
 0x540   : > { %v4091_v48 = vpop.f32.mrf.mxu0 }
 0x541   : > { %4394 = vst.msk [vmem:[%s7723_s26 + $0x78] sm:$0xff] %vm417_vm0, %v4312_v40  ;;  %v4304_v21 = vadd.f32 %v4303_v14, %v4091_v48 }
 0x543   : > { %4392 = vst.msk [vmem:[%s7723_s26 + $0x68] sm:$0xff] %vm417_vm0, %v4304_v21 }
 0x54a   : > { %v5269_v36 = vpop.f32.mrf.mxu0 }
 0x54b   : > { %v4325_v9 = vadd.f32 %v5303_v53, %v5269_v36 }
 0x54c   : > { %v4104_v31 = vpop.f32.mrf.mxu0 }
 0x54d   : > { %4397 = vst.msk [vmem:[%s7723_s26 + $0x90] sm:$0xff] %vm417_vm0, %v4325_v9  ;;  %v4317_v44 = vadd.f32 %v4316_v39, %v4104_v31 }
 0x54e   : > { %v5270_v24 = vpop.f32.mrf.mxu0 }
 0x54f   : > { %4395 = vst.msk [vmem:[%s7723_s26 + $0x80] sm:$0xff] %vm417_vm0, %v4317_v44  ;;  %v4328_v33 = vadd.f32 %v5304_v10, %v5270_v24 }
 0x550   : > { %v4107_v37 = vpop.f32.mrf.mxu0 }
 0x551   : > { %4398 = vst.msk [vmem:[%s7723_s26 + $0x98] sm:$0xff] %vm417_vm0, %v4328_v33  ;;  %v4320_v2 = vadd.f32 %v4319_v11, %v4107_v37 }
 0x553   : > { %4396 = vst.msk [vmem:[%s7723_s26 + $0x88] sm:$0xff] %vm417_vm0, %v4320_v2 }
 0x55a   : > { %v5273_v62 = vpop.f32.mrf.mxu0 }
 0x55b   : > { %v4341_v63 = vadd.f32 %v5307_v51, %v5273_v62 }
 0x55c   : > { %v4120_v27 = vpop.f32.mrf.mxu0 }
 0x55d   : > { %4401 = vst.msk [vmem:[%s7723_s26 + $0xb0] sm:$0xff] %vm417_vm0, %v4341_v63  ;;  %v4333_v54 = vadd.f32 %v4332_v46, %v4120_v27 }
 0x55e   : > { %v5274_v41 = vpop.f32.mrf.mxu0 }
 0x55f   : > { %4399 = vst.msk [vmem:[%s7723_s26 + $0xa0] sm:$0xff] %vm417_vm0, %v4333_v54  ;;  %v4344_v1 = vadd.f32 %v5308_v42, %v5274_v41 }
 0x560   : > { %v4123_v7 = vpop.f32.mrf.mxu0 }
 0x561   : > { %4402 = vst.msk [vmem:[%s7723_s26 + $0xb8] sm:$0xff] %vm417_vm0, %v4344_v1  ;;  %v4336_v45 = vadd.f32 %v4335_v26, %v4123_v7 }
 0x563   : > { %4400 = vst.msk [vmem:[%s7723_s26 + $0xa8] sm:$0xff] %vm417_vm0, %v4336_v45 }
 0x56a   : > { %v5277_v15 = vpop.f32.mrf.mxu0 }
 0x56b   : > { %v4357_v55 = vadd.f32 %v5311_v13, %v5277_v15 }
 0x56c   : > { %v4136_v22 = vpop.f32.mrf.mxu0 }
 0x56d   : > { %4405 = vst.msk [vmem:[%s7723_s26 + $0xd0] sm:$0xff] %vm417_vm0, %v4357_v55  ;;  %v4349_v49 = vadd.f32 %v4348_v28, %v4136_v22 }
 0x56e   : > { %v5278_v47 = vpop.f32.mrf.mxu0 }
 0x56f   : > { %4403 = vst.msk [vmem:[%s7723_s26 + $0xc0] sm:$0xff] %vm417_vm0, %v4349_v49  ;;  %v4360_v30 = vadd.f32 %v5312_v29, %v5278_v47 }
 0x570   : > { %v4139_v32 = vpop.f32.mrf.mxu0 }
 0x571   : > { %4406 = vst.msk [vmem:[%s7723_s26 + $0xd8] sm:$0xff] %vm417_vm0, %v4360_v30  ;;  %v4352_v58 = vadd.f32 %v4351_v17, %v4139_v32 }
 0x573   : > { %4404 = vst.msk [vmem:[%s7723_s26 + $0xc8] sm:$0xff] %vm417_vm0, %v4352_v58 }
 0x57a   : > { %v5281_v18 = vpop.f32.mrf.mxu0 }
 0x57b   : > { %v4373_v0 = vadd.f32 %v5315_v52, %v5281_v18 }
 0x57c   : > { %v4152_v56 = vpop.f32.mrf.mxu0 }
 0x57d   : > { %4409 = vst.msk [vmem:[%s7723_s26 + $0xf0] sm:$0xff] %vm417_vm0, %v4373_v0  ;;  %v4365_v25 = vadd.f32 %v4364_v16, %v4152_v56 }
 0x57e   : > { %v5282_v8 = vpop.f32.mrf.mxu0 }
 0x57f   : > { %4407 = vst.msk [vmem:[%s7723_s26 + $0xe0] sm:$0xff] %vm417_vm0, %v4365_v25  ;;  %v4376_v3 = vadd.f32 %v5316_v19, %v5282_v8 }
 0x580   : > { %v4155_v23 = vpop.f32.mrf.mxu0 }
 0x581   : > { %4410 = vst.msk [vmem:[%s7723_s26 + $0xf8] sm:$0xff] %vm417_vm0, %v4376_v3  ;;  %v4368_v20 = vadd.f32 %v4367_v12, %v4155_v23 }
 0x583   : > { %4408 = vst.msk [vmem:[%s7723_s26 + $0xe8] sm:$0xff] %vm417_vm0, %v4368_v20 }
 0x584 PF: > { %s15_s20 = sadd.s32 1, %s5868_s20   ;;  %s7992_s18 = smov %s5864_s19 }
 0x585   : > { %p12_p5 = scmp.ge.s32.totalorder %s15_s20, 4   ;;  %s7993_s19 = smov %s7995_s21 }
 0x587   :  { %14 = sbr.rel (!%p12_p5) target bundleno = 2 (0x2), region = 82 }

</bundles_post_ra>
